<compile_context>
chip_gen: v6e
topology: v6e:2x2x1
jax: 0.10.0
libtpu: 0.0.40
codegen_flags: <defaults>
</compile_context>

<pallas_src>
import math

import jax
import jax.numpy as jnp
from jax.experimental import pallas as pl
from jax.experimental.pallas import tpu as pltpu


# --------------------------------------------------------------------------
# helpers
# --------------------------------------------------------------------------
def _round_up(x, m):
    return ((x + m - 1) // m) * m


def _default_tile_t_cap():
    # v5e: 4x128^2 MXUs -> M=128 (tile_t=16 with b_pad=8) is the sweet spot.
    # v6e/v7x: 2x256^2 MXUs -> fill them with M=256 (tile_t=32).
    try:
        kind = jax.devices()[0].device_kind.lower()
    except Exception:
        kind = ""
    return 16 if "v5" in kind else 32


def _derive_vmem_limit(rows, d_in0, layer_in_dims, h_pad, o_pad, num_layers,
                       b_pad):
    """Resident-buffer based VMEM budget (double-buffered inputs/outputs)."""
    by = 2 * rows * d_in0 * 4                              # x chunk (f32)
    for d_in_pad in layer_in_dims:
        by += 2 * (d_in_pad * 3 * h_pad * 2)               # W_ih^T (bf16)
        by += 2 * (h_pad * 3 * h_pad * 2)                  # W_hh^T (bf16)
        by += 2 * (3 * h_pad * 4 + h_pad * 4)              # biases (f32)
    by += 2 * (h_pad * o_pad * 2 + o_pad * 4)              # Linear head
    by += 2 * (b_pad * o_pad * 4)                          # output block
    by += num_layers * b_pad * h_pad * 4                   # h scratch
    by += rows * 3 * h_pad * 4                             # gx scratch
    if num_layers > 1:
        by += rows * h_pad * 4                             # inter-layer scratch
    # 2x headroom for compiler-internal scratch; clamp for v7x's 64 MiB VMEM.
    return int(min(max(2 * by + (8 << 20), 16 << 20), 40 << 20))


# --------------------------------------------------------------------------
# Fused Pallas kernel (all layers + Linear head, grid over time chunks)
# --------------------------------------------------------------------------
def _make_fused_kernel(num_layers, tile_t, b_pad, h_pad, seq_len, ragged):
    """Kernel args (in order):
      x (rows, Din0)
      per layer: W_ih^T (Din_l, 3H_pad) bf16 | W_hh^T (H_pad, 3H_pad) bf16 |
                 b_gx (1, 3H_pad) f32 | b_hn (1, H_pad) f32
      lin_W^T (H_pad, O_pad) bf16 | lin_b (1, O_pad) f32
      out (b_pad, O_pad) f32
      scratch: h_l (b_pad, H_pad) f32 per layer (carried across chunks),
               gx (rows, 3H_pad) f32 (reused per layer),
               seq (rows, H_pad) f32 (layer->layer handoff, if num_layers > 1)
    """

    def kernel(*refs):
        pos = 0
        x_ref = refs[pos]; pos += 1
        layers = []
        for _ in range(num_layers):
            layers.append(refs[pos:pos + 4]); pos += 4
        lw_ref, lb_ref = refs[pos], refs[pos + 1]; pos += 2
        out_ref = refs[pos]; pos += 1
        h_scrs = refs[pos:pos + num_layers]; pos += num_layers
        gx_scr = refs[pos]; pos += 1
        seq_scr = refs[pos] if num_layers > 1 else None

        chunk = pl.program_id(0)

        # h_0 = 0 (nn.GRU default) for every layer on the first time chunk.
        @pl.when(chunk == 0)
        def _():
            for hs in h_scrs:
                hs[...] = jnp.zeros_like(hs)

        t0 = chunk * tile_t  # first global time index of this chunk

        h_last = None
        for l in range(num_layers):
            wih_ref, whh_ref, bgx_ref, bhn_ref = layers[l]

            # ---- Phase 1: hoisted input projection for the whole chunk -----
            if l == 0:
                src = x_ref[...].astype(jnp.bfloat16)
            else:
                src = seq_scr[...].astype(jnp.bfloat16)
            gx_scr[...] = (
                jnp.dot(src, wih_ref[...], preferred_element_type=jnp.float32)
                + bgx_ref[...]
            )

            # ---- Phase 2: serial recurrence over the chunk (static unroll) -
            whh = whh_ref[...]
            bhn = jnp.broadcast_to(bhn_ref[...], (b_pad, h_pad))  # hoisted
            h = h_scrs[l][...]
            for t in range(tile_t):
                gx = gx_scr[t * b_pad:(t + 1) * b_pad, :]
                gh = jnp.dot(h.astype(jnp.bfloat16), whh,
                             preferred_element_type=jnp.float32)
                # lane-aligned 128-wide gate tiles (gate order r | z | n)
                r = jax.nn.sigmoid(gx[:, 0:h_pad] + gh[:, 0:h_pad])
                z = jax.nn.sigmoid(gx[:, h_pad:2 * h_pad]
                                   + gh[:, h_pad:2 * h_pad])
                n = jnp.tanh(gx[:, 2 * h_pad:] + r * (gh[:, 2 * h_pad:] + bhn))
                h_new = (1.0 - z) * n + z * h
                if ragged:
                    # masked tail: discard updates past the true sequence end
                    h = jnp.where((t0 + t) < seq_len, h_new, h)
                else:
                    h = h_new
                if l + 1 < num_layers:
                    # hand this step's hidden state to the next layer (VMEM
                    # only; never written to HBM)
                    seq_scr[t * b_pad:(t + 1) * b_pad, :] = h
            h_scrs[l][...] = h
            h_last = h

        # Fused Linear head on the final hidden state of the last layer.
        # Written every chunk (cheap, off the serial chain); the last grid
        # step's value is the one that lands in HBM.
        out_ref[...] = (
            jnp.dot(h_last.astype(jnp.bfloat16), lw_ref[...],
                    preferred_element_type=jnp.float32)
            + lb_ref[...]
        )

    return kernel


def gru_model_forward(x, prepared, output_size, tile_t_cap=None):
    """Fused forward pass: x (B, T, Din) -> (B, output_size)."""
    B, T, D = x.shape
    b_pad = _round_up(B, 8)
    h_pad = prepared["H_pad"]
    o_pad = prepared["O_pad"]
    num_layers = len(prepared["gru"])

    if tile_t_cap is None:
        tile_t_cap = _default_tile_t_cap()
    tile_t = min(tile_t_cap, T)
    t_pad = _round_up(T, tile_t)
    n_chunks = t_pad // tile_t
    rows = tile_t * b_pad
    ragged = (t_pad != T)

    # (B,T,D) -> time-major, zero-pad batch to 8 sublanes and time to a
    # multiple of tile_t (padded steps are masked in-kernel), flatten to 2-D.
    x_tm = jnp.transpose(x, (1, 0, 2)).astype(jnp.float32)
    x_tm = jnp.pad(x_tm, ((0, t_pad - T), (0, b_pad - B), (0, 0)))
    x2d = x_tm.reshape(t_pad * b_pad, D)

    in_specs = [pl.BlockSpec((rows, D), lambda i: (i, 0))]
    args = [x2d]
    layer_in_dims = []
    for (wih, whh, bgx, bhn) in prepared["gru"]:
        d_in_pad = wih.shape[0]
        layer_in_dims.append(d_in_pad)
        in_specs += [
            pl.BlockSpec((d_in_pad, 3 * h_pad), lambda i: (0, 0)),
            pl.BlockSpec((h_pad, 3 * h_pad), lambda i: (0, 0)),
            pl.BlockSpec((1, 3 * h_pad), lambda i: (0, 0)),
            pl.BlockSpec((1, h_pad), lambda i: (0, 0)),
        ]
        args += [wih, whh, bgx, bhn]
    in_specs += [
        pl.BlockSpec((h_pad, o_pad), lambda i: (0, 0)),
        pl.BlockSpec((1, o_pad), lambda i: (0, 0)),
    ]
    args += [prepared["lin_w"], prepared["lin_b"]]

    scratch_shapes = [pltpu.VMEM((b_pad, h_pad), jnp.float32)
                      for _ in range(num_layers)]
    scratch_shapes.append(pltpu.VMEM((rows, 3 * h_pad), jnp.float32))
    if num_layers > 1:
        scratch_shapes.append(pltpu.VMEM((rows, h_pad), jnp.float32))

    vmem_limit = _derive_vmem_limit(rows, D, layer_in_dims, h_pad, o_pad,
                                    num_layers, b_pad)

    kernel = _make_fused_kernel(num_layers, tile_t, b_pad, h_pad, T, ragged)
    out = pl.pallas_call(
        kernel,
        out_shape=jax.ShapeDtypeStruct((b_pad, o_pad), jnp.float32),
        grid=(n_chunks,),
        in_specs=in_specs,
        out_specs=pl.BlockSpec((b_pad, o_pad), lambda i: (0, 0)),
        scratch_shapes=scratch_shapes,
        compiler_params=pltpu.CompilerParams(
            dimension_semantics=("arbitrary",),   # h carried across time chunks
            vmem_limit_bytes=vmem_limit,
        ),
    )(*args)
    return out[:B, :output_size]


# --------------------------------------------------------------------------
# Parameter construction / padding
# --------------------------------------------------------------------------
def make_raw_params(key, input_size, hidden_size, output_size, num_layers):
    """Matches nn.GRU default init + the module's constant-zero Linear init."""
    k = 1.0 / math.sqrt(hidden_size)
    gru = []
    for layer in range(num_layers):
        d_in = input_size if layer == 0 else hidden_size
        key, k1, k2, k3, k4 = jax.random.split(key, 5)
        w_ih = jax.random.uniform(k1, (3 * hidden_size, d_in), jnp.float32, -k, k)
        w_hh = jax.random.uniform(k2, (3 * hidden_size, hidden_size), jnp.float32, -k, k)
        b_ih = jax.random.uniform(k3, (3 * hidden_size,), jnp.float32, -k, k)
        b_hh = jax.random.uniform(k4, (3 * hidden_size,), jnp.float32, -k, k)
        gru.append((w_ih, w_hh, b_ih, b_hh))
    lin_w = jnp.zeros((output_size, hidden_size), jnp.float32)  # spec: zero init
    lin_b = jnp.zeros((output_size,), jnp.float32)
    return {"gru": gru, "lin_w": lin_w, "lin_b": lin_b}


def prepare_params(raw, input_size, hidden_size, output_size):
    """Pad/re-layout to lane-aligned gate tiles; bf16 matmul weights."""
    H = hidden_size
    H_pad = _round_up(H, 128)
    O_pad = _round_up(output_size, 128)
    layers = []
    for li, (w_ih, w_hh, b_ih, b_hh) in enumerate(raw["gru"]):
        d_in = input_size if li == 0 else hidden_size
        d_in_pad = d_in if li == 0 else H_pad
        wih_t = jnp.zeros((d_in_pad, 3 * H_pad), jnp.float32)
        whh_t = jnp.zeros((H_pad, 3 * H_pad), jnp.float32)
        bgx = jnp.zeros((1, 3 * H_pad), jnp.float32)
        bhn = jnp.zeros((1, H_pad), jnp.float32)
        for g in range(3):  # gate order r, z, n — each gets its own 128-lane tile
            wih_t = wih_t.at[:d_in, g * H_pad:g * H_pad + H].set(
                w_ih[g * H:(g + 1) * H, :].T)
            whh_t = whh_t.at[:H, g * H_pad:g * H_pad + H].set(
                w_hh[g * H:(g + 1) * H, :].T)
        # bias folded into gx: r/z get b_ih+b_hh, n gets b_ih; b_hh_n separate.
        bgx = bgx.at[0, 0:H].set(b_ih[0:H] + b_hh[0:H])
        bgx = bgx.at[0, H_pad:H_pad + H].set(b_ih[H:2 * H] + b_hh[H:2 * H])
        bgx = bgx.at[0, 2 * H_pad:2 * H_pad + H].set(b_ih[2 * H:3 * H])
        bhn = bhn.at[0, 0:H].set(b_hh[2 * H:3 * H])
        layers.append((wih_t.astype(jnp.bfloat16),
                       whh_t.astype(jnp.bfloat16), bgx, bhn))
    lin_w_t = (jnp.zeros((H_pad, O_pad), jnp.float32)
               .at[:H, :output_size].set(raw["lin_w"].T)
               .astype(jnp.bfloat16))
    lin_b = jnp.zeros((1, O_pad), jnp.float32).at[0, :output_size].set(raw["lin_b"])
    return {"gru": layers, "lin_w": lin_w_t, "lin_b": lin_b,
            "H_pad": H_pad, "O_pad": O_pad}


# --------------------------------------------------------------------------
# Pure-JAX reference mirroring the kernel math (bf16 matmul inputs, f32 gates)
# --------------------------------------------------------------------------
def gru_model_reference(x, prepared, output_size):
    B, T, _ = x.shape
    H_pad = prepared["H_pad"]
    bf = jnp.bfloat16
    cur = jnp.transpose(x, (1, 0, 2)).astype(jnp.float32)   # (T, B, Din)
    h = None
    for (wih, whh, bgx, bhn) in prepared["gru"]:
        h = jnp.zeros((B, H_pad), jnp.float32)
        outs = []
        for t in range(T):
            gx = jnp.dot(cur[t].astype(bf), wih,
                         preferred_element_type=jnp.float32) + bgx
            gh = jnp.dot(h.astype(bf), whh, preferred_element_type=jnp.float32)
            r = jax.nn.sigmoid(gx[:, :H_pad] + gh[:, :H_pad])
            z = jax.nn.sigmoid(gx[:, H_pad:2 * H_pad] + gh[:, H_pad:2 * H_pad])
            n = jnp.tanh(gx[:, 2 * H_pad:] + r * (gh[:, 2 * H_pad:] + bhn))
            h = (1.0 - z) * n + z * h
            outs.append(h)
        cur = jnp.stack(outs, axis=0)
    out = (jnp.dot(h.astype(bf), prepared["lin_w"],
                   preferred_element_type=jnp.float32) + prepared["lin_b"])
    return out[:, :output_size]


# --------------------------------------------------------------------------
if __name__ == "__main__":
    batch, seq = 2, 8
    input_size, hidden_size, output_size, num_layers = 4, 32, 8, 2

    key = jax.random.PRNGKey(0)
    key, xk = jax.random.split(key)
    x = jax.random.normal(xk, (batch, seq, input_size), jnp.float32)

    raw = make_raw_params(key, input_size, hidden_size, output_size, num_layers)

    # 1) spec-faithful model (zero-initialized Linear => output is exactly 0)
    prep0 = prepare_params(raw, input_size, hidden_size, output_size)
    out0 = jax.block_until_ready(gru_model_forward(x, prep0, output_size))
    assert out0.shape == (batch, output_size)
    assert jnp.allclose(out0, 0.0), "zero-init Linear must give zero output"

    # 2) meaningful numeric check: same forward math with non-zero Linear
    #    weights so the GRU recurrence actually reaches the output.
    kv1, kv2 = jax.random.split(jax.random.PRNGKey(1))
    raw_v = dict(raw)
    raw_v["lin_w"] = jax.random.uniform(kv1, (output_size, hidden_size),
                                        jnp.float32, -0.2, 0.2)
    raw_v["lin_b"] = jax.random.uniform(kv2, (output_size,),
                                        jnp.float32, -0.2, 0.2)
    prep1 = prepare_params(raw_v, input_size, hidden_size, output_size)
    out1 = jax.block_until_ready(gru_model_forward(x, prep1, output_size))
    ref1 = gru_model_reference(x, prep1, output_size)
    assert out1.shape == (batch, output_size)
    assert jnp.allclose(out1, ref1, atol=2e-3, rtol=2e-3), (out1, ref1)

    # 3) multi-chunk + ragged-tail check (T not a multiple of tile_t):
    #    exercises the carried hidden state across grid steps and the masked
    #    last chunk.
    seq_long = 37
    key, xk2 = jax.random.split(key)
    x2 = jax.random.normal(xk2, (batch, seq_long, input_size), jnp.float32)
    out2 = jax.block_until_ready(gru_model_forward(x2, prep1, output_size))
    ref2 = gru_model_reference(x2, prep1, output_size)
    assert out2.shape == (batch, output_size)
    assert jnp.allclose(out2, ref2, atol=3e-3, rtol=3e-3), (out2, ref2)

    print("KERNEL_OK")
</pallas_src>

<mosaic_0001>
module attributes {stable_mosaic.version = 11 : i64} {
  func.func @kernel(%arg0: i32, %arg1: memref<64x4xf32, #tpu.memory_space<vmem>>, %arg2: memref<4x384xbf16, #tpu.memory_space<vmem>>, %arg3: memref<128x384xbf16, #tpu.memory_space<vmem>>, %arg4: memref<1x384xf32, #tpu.memory_space<vmem>>, %arg5: memref<1x128xf32, #tpu.memory_space<vmem>>, %arg6: memref<128x384xbf16, #tpu.memory_space<vmem>>, %arg7: memref<128x384xbf16, #tpu.memory_space<vmem>>, %arg8: memref<1x384xf32, #tpu.memory_space<vmem>>, %arg9: memref<1x128xf32, #tpu.memory_space<vmem>>, %arg10: memref<128x128xbf16, #tpu.memory_space<vmem>>, %arg11: memref<1x128xf32, #tpu.memory_space<vmem>>, %arg12: memref<8x128xf32, #tpu.memory_space<vmem>>, %arg13: memref<8x128xf32, #tpu.memory_space<vmem>>, %arg14: memref<8x128xf32, #tpu.memory_space<vmem>>, %arg15: memref<64x384xf32, #tpu.memory_space<vmem>>, %arg16: memref<64x128xf32, #tpu.memory_space<vmem>>) attributes {dimension_semantics = [#tpu.dimension_semantics<arbitrary>], iteration_bounds = array<i64: 1>, scalar_prefetch = 0 : i64, scratch_operands = 4 : i64, tpu.core_type = #tpu.core_type<tc>, window_params = [{transform_indices = @transform_0, window_bounds = array<i64: 64, 4>}, {pipeline_mode = #tpu.pipeline_mode<synchronous>, transform_indices = @transform_1, window_bounds = array<i64: 4, 384>}, {pipeline_mode = #tpu.pipeline_mode<synchronous>, transform_indices = @transform_2, window_bounds = array<i64: 128, 384>}, {pipeline_mode = #tpu.pipeline_mode<synchronous>, transform_indices = @transform_3, window_bounds = array<i64: 1, 384>}, {pipeline_mode = #tpu.pipeline_mode<synchronous>, transform_indices = @transform_4, window_bounds = array<i64: 1, 128>}, {pipeline_mode = #tpu.pipeline_mode<synchronous>, transform_indices = @transform_5, window_bounds = array<i64: 128, 384>}, {pipeline_mode = #tpu.pipeline_mode<synchronous>, transform_indices = @transform_6, window_bounds = array<i64: 128, 384>}, {pipeline_mode = #tpu.pipeline_mode<synchronous>, transform_indices = @transform_7, window_bounds = array<i64: 1, 384>}, {pipeline_mode = #tpu.pipeline_mode<synchronous>, transform_indices = @transform_8, window_bounds = array<i64: 1, 128>}, {pipeline_mode = #tpu.pipeline_mode<synchronous>, transform_indices = @transform_9, window_bounds = array<i64: 128, 128>}, {pipeline_mode = #tpu.pipeline_mode<synchronous>, transform_indices = @transform_10, window_bounds = array<i64: 1, 128>}, {pipeline_mode = #tpu.pipeline_mode<synchronous>, transform_indices = @transform_11, window_bounds = array<i64: 8, 128>}]} {
    %c0_i32 = arith.constant 0 : i32
    %0 = arith.cmpi eq, %arg0, %c0_i32 : i32
    %1 = arith.extui %0 : i1 to i32
    %c0_i32_0 = arith.constant 0 : i32
    %2 = arith.cmpi ne, %1, %c0_i32_0 : i32
    scf.if %2 {
      %cst_145 = arith.constant 0.000000e+00 : f32
      %526 = vector.broadcast %cst_145 : f32 to vector<8x128xf32>
      %c0_146 = arith.constant 0 : index
      %c0_147 = arith.constant 0 : index
      %527 = vector.load %arg13[%c0_146, %c0_147] : memref<8x128xf32, #tpu.memory_space<vmem>>, vector<8x128xf32>
      tpu.vector_store %arg13[%c0_146, %c0_147], %526 {strides = array<i32>} : memref<8x128xf32, #tpu.memory_space<vmem>>, vector<8x128xf32>,
      %cst_148 = arith.constant 0.000000e+00 : f32
      %528 = vector.broadcast %cst_148 : f32 to vector<8x128xf32>
      %c0_149 = arith.constant 0 : index
      %c0_150 = arith.constant 0 : index
      %529 = vector.load %arg14[%c0_149, %c0_150] : memref<8x128xf32, #tpu.memory_space<vmem>>, vector<8x128xf32>
      tpu.vector_store %arg14[%c0_149, %c0_150], %528 {strides = array<i32>} : memref<8x128xf32, #tpu.memory_space<vmem>>, vector<8x128xf32>,
    } else {
    }
    %c0 = arith.constant 0 : index
    %c0_1 = arith.constant 0 : index
    %3 = vector.load %arg1[%c0, %c0_1] : memref<64x4xf32, #tpu.memory_space<vmem>>, vector<64x4xf32>
    %4 = arith.truncf %3 : vector<64x4xf32> to vector<64x4xbf16>
    %c0_2 = arith.constant 0 : index
    %c0_3 = arith.constant 0 : index
    %5 = vector.load %arg2[%c0_2, %c0_3] : memref<4x384xbf16, #tpu.memory_space<vmem>>, vector<4x384xbf16>
    %cst = arith.constant dense<0.000000e+00> : vector<64x384xf32>
    %6 = tpu.matmul %4, %5, %cst {dimension_numbers = #tpu.dot_dimension_numbers<[1], [0], [0], [1], [0, 0, 1, 1], [], []>} : vector<64x4xbf16>, vector<4x384xbf16>, vector<64x384xf32> -> vector<64x384xf32>
    %c0_4 = arith.constant 0 : index
    %c0_5 = arith.constant 0 : index
    %7 = vector.load %arg4[%c0_4, %c0_5] : memref<1x384xf32, #tpu.memory_space<vmem>>, vector<1x384xf32>
    %8 = vector.broadcast %7 : vector<1x384xf32> to vector<64x384xf32>
    %9 = arith.addf %6, %8 : vector<64x384xf32>
    %c0_6 = arith.constant 0 : index
    %c0_7 = arith.constant 0 : index
    %10 = vector.load %arg15[%c0_6, %c0_7] : memref<64x384xf32, #tpu.memory_space<vmem>>, vector<64x384xf32>
    tpu.vector_store %arg15[%c0_6, %c0_7], %9 {strides = array<i32>} : memref<64x384xf32, #tpu.memory_space<vmem>>, vector<64x384xf32>,
    %c0_8 = arith.constant 0 : index
    %c0_9 = arith.constant 0 : index
    %11 = vector.load %arg3[%c0_8, %c0_9] : memref<128x384xbf16, #tpu.memory_space<vmem>>, vector<128x384xbf16>
    %c0_10 = arith.constant 0 : index
    %c0_11 = arith.constant 0 : index
    %12 = vector.load %arg5[%c0_10, %c0_11] : memref<1x128xf32, #tpu.memory_space<vmem>>, vector<1x128xf32>
    %13 = vector.shape_cast %12 : vector<1x128xf32> to vector<1x128xf32>
    %14 = vector.broadcast %13 : vector<1x128xf32> to vector<8x128xf32>
    %c0_12 = arith.constant 0 : index
    %c0_13 = arith.constant 0 : index
    %15 = vector.load %arg13[%c0_12, %c0_13] : memref<8x128xf32, #tpu.memory_space<vmem>>, vector<8x128xf32>
    %c0_14 = arith.constant 0 : index
    %c0_15 = arith.constant 0 : index
    %16 = vector.load %arg15[%c0_14, %c0_15] : memref<64x384xf32, #tpu.memory_space<vmem>>, vector<8x384xf32>
    %17 = arith.truncf %15 : vector<8x128xf32> to vector<8x128xbf16>
    %cst_16 = arith.constant dense<0.000000e+00> : vector<8x384xf32>
    %18 = tpu.matmul %17, %11, %cst_16 {dimension_numbers = #tpu.dot_dimension_numbers<[1], [0], [0], [1], [0, 0, 1, 1], [], []>} : vector<8x128xbf16>, vector<128x384xbf16>, vector<8x384xf32> -> vector<8x384xf32>
    %19 = vector.extract_strided_slice %16 {offsets = [0, 0], sizes = [8, 128], strides = [1, 1]} : vector<8x384xf32> to vector<8x128xf32>
    %20 = vector.extract_strided_slice %18 {offsets = [0, 0], sizes = [8, 128], strides = [1, 1]} : vector<8x384xf32> to vector<8x128xf32>
    %21 = arith.addf %19, %20 : vector<8x128xf32>
    %22 = arith.negf %21 : vector<8x128xf32>
    %23 = math.exp %22 : vector<8x128xf32>
    %cst_17 = arith.constant 1.000000e+00 : f32
    %24 = vector.broadcast %cst_17 : f32 to vector<8x128xf32>
    %25 = arith.addf %24, %23 : vector<8x128xf32>
    %26 = arith.divf %24, %25 : vector<8x128xf32>
    %27 = vector.extract_strided_slice %16 {offsets = [0, 128], sizes = [8, 128], strides = [1, 1]} : vector<8x384xf32> to vector<8x128xf32>
    %28 = vector.extract_strided_slice %18 {offsets = [0, 128], sizes = [8, 128], strides = [1, 1]} : vector<8x384xf32> to vector<8x128xf32>
    %29 = arith.addf %27, %28 : vector<8x128xf32>
    %30 = arith.negf %29 : vector<8x128xf32>
    %31 = math.exp %30 : vector<8x128xf32>
    %cst_18 = arith.constant 1.000000e+00 : f32
    %32 = vector.broadcast %cst_18 : f32 to vector<8x128xf32>
    %33 = arith.addf %32, %31 : vector<8x128xf32>
    %34 = arith.divf %32, %33 : vector<8x128xf32>
    %35 = vector.extract_strided_slice %16 {offsets = [0, 256], sizes = [8, 128], strides = [1, 1]} : vector<8x384xf32> to vector<8x128xf32>
    %36 = vector.extract_strided_slice %18 {offsets = [0, 256], sizes = [8, 128], strides = [1, 1]} : vector<8x384xf32> to vector<8x128xf32>
    %37 = arith.addf %36, %14 : vector<8x128xf32>
    %38 = arith.mulf %26, %37 : vector<8x128xf32>
    %39 = arith.addf %35, %38 : vector<8x128xf32>
    %40 = math.tanh %39 : vector<8x128xf32>
    %cst_19 = arith.constant 1.000000e+00 : f32
    %41 = vector.broadcast %cst_19 : f32 to vector<8x128xf32>
    %42 = arith.subf %41, %34 : vector<8x128xf32>
    %43 = arith.mulf %42, %40 : vector<8x128xf32>
    %44 = arith.mulf %34, %15 : vector<8x128xf32>
    %45 = arith.addf %43, %44 : vector<8x128xf32>
    %c0_20 = arith.constant 0 : index
    %c0_21 = arith.constant 0 : index
    %46 = vector.load %arg16[%c0_20, %c0_21] : memref<64x128xf32, #tpu.memory_space<vmem>>, vector<8x128xf32>
    tpu.vector_store %arg16[%c0_20, %c0_21], %45 {strides = array<i32>} : memref<64x128xf32, #tpu.memory_space<vmem>>, vector<8x128xf32>,
    %c8 = arith.constant 8 : index
    %c0_22 = arith.constant 0 : index
    %47 = vector.load %arg15[%c8, %c0_22] : memref<64x384xf32, #tpu.memory_space<vmem>>, vector<8x384xf32>
    %48 = arith.truncf %45 : vector<8x128xf32> to vector<8x128xbf16>
    %cst_23 = arith.constant dense<0.000000e+00> : vector<8x384xf32>
    %49 = tpu.matmul %48, %11, %cst_23 {dimension_numbers = #tpu.dot_dimension_numbers<[1], [0], [0], [1], [0, 0, 1, 1], [], []>} : vector<8x128xbf16>, vector<128x384xbf16>, vector<8x384xf32> -> vector<8x384xf32>
    %50 = vector.extract_strided_slice %47 {offsets = [0, 0], sizes = [8, 128], strides = [1, 1]} : vector<8x384xf32> to vector<8x128xf32>
    %51 = vector.extract_strided_slice %49 {offsets = [0, 0], sizes = [8, 128], strides = [1, 1]} : vector<8x384xf32> to vector<8x128xf32>
    %52 = arith.addf %50, %51 : vector<8x128xf32>
    %53 = arith.negf %52 : vector<8x128xf32>
    %54 = math.exp %53 : vector<8x128xf32>
    %cst_24 = arith.constant 1.000000e+00 : f32
    %55 = vector.broadcast %cst_24 : f32 to vector<8x128xf32>
    %56 = arith.addf %55, %54 : vector<8x128xf32>
    %57 = arith.divf %55, %56 : vector<8x128xf32>
    %58 = vector.extract_strided_slice %47 {offsets = [0, 128], sizes = [8, 128], strides = [1, 1]} : vector<8x384xf32> to vector<8x128xf32>
    %59 = vector.extract_strided_slice %49 {offsets = [0, 128], sizes = [8, 128], strides = [1, 1]} : vector<8x384xf32> to vector<8x128xf32>
    %60 = arith.addf %58, %59 : vector<8x128xf32>
    %61 = arith.negf %60 : vector<8x128xf32>
    %62 = math.exp %61 : vector<8x128xf32>
    %cst_25 = arith.constant 1.000000e+00 : f32
    %63 = vector.broadcast %cst_25 : f32 to vector<8x128xf32>
    %64 = arith.addf %63, %62 : vector<8x128xf32>
    %65 = arith.divf %63, %64 : vector<8x128xf32>
    %66 = vector.extract_strided_slice %47 {offsets = [0, 256], sizes = [8, 128], strides = [1, 1]} : vector<8x384xf32> to vector<8x128xf32>
    %67 = vector.extract_strided_slice %49 {offsets = [0, 256], sizes = [8, 128], strides = [1, 1]} : vector<8x384xf32> to vector<8x128xf32>
    %68 = arith.addf %67, %14 : vector<8x128xf32>
    %69 = arith.mulf %57, %68 : vector<8x128xf32>
    %70 = arith.addf %66, %69 : vector<8x128xf32>
    %71 = math.tanh %70 : vector<8x128xf32>
    %cst_26 = arith.constant 1.000000e+00 : f32
    %72 = vector.broadcast %cst_26 : f32 to vector<8x128xf32>
    %73 = arith.subf %72, %65 : vector<8x128xf32>
    %74 = arith.mulf %73, %71 : vector<8x128xf32>
    %75 = arith.mulf %65, %45 : vector<8x128xf32>
    %76 = arith.addf %74, %75 : vector<8x128xf32>
    %c8_27 = arith.constant 8 : index
    %c0_28 = arith.constant 0 : index
    %77 = vector.load %arg16[%c8_27, %c0_28] : memref<64x128xf32, #tpu.memory_space<vmem>>, vector<8x128xf32>
    tpu.vector_store %arg16[%c8_27, %c0_28], %76 {strides = array<i32>} : memref<64x128xf32, #tpu.memory_space<vmem>>, vector<8x128xf32>,
    %c16 = arith.constant 16 : index
    %c0_29 = arith.constant 0 : index
    %78 = vector.load %arg15[%c16, %c0_29] : memref<64x384xf32, #tpu.memory_space<vmem>>, vector<8x384xf32>
    %79 = arith.truncf %76 : vector<8x128xf32> to vector<8x128xbf16>
    %cst_30 = arith.constant dense<0.000000e+00> : vector<8x384xf32>
    %80 = tpu.matmul %79, %11, %cst_30 {dimension_numbers = #tpu.dot_dimension_numbers<[1], [0], [0], [1], [0, 0, 1, 1], [], []>} : vector<8x128xbf16>, vector<128x384xbf16>, vector<8x384xf32> -> vector<8x384xf32>
    %81 = vector.extract_strided_slice %78 {offsets = [0, 0], sizes = [8, 128], strides = [1, 1]} : vector<8x384xf32> to vector<8x128xf32>
    %82 = vector.extract_strided_slice %80 {offsets = [0, 0], sizes = [8, 128], strides = [1, 1]} : vector<8x384xf32> to vector<8x128xf32>
    %83 = arith.addf %81, %82 : vector<8x128xf32>
    %84 = arith.negf %83 : vector<8x128xf32>
    %85 = math.exp %84 : vector<8x128xf32>
    %cst_31 = arith.constant 1.000000e+00 : f32
    %86 = vector.broadcast %cst_31 : f32 to vector<8x128xf32>
    %87 = arith.addf %86, %85 : vector<8x128xf32>
    %88 = arith.divf %86, %87 : vector<8x128xf32>
    %89 = vector.extract_strided_slice %78 {offsets = [0, 128], sizes = [8, 128], strides = [1, 1]} : vector<8x384xf32> to vector<8x128xf32>
    %90 = vector.extract_strided_slice %80 {offsets = [0, 128], sizes = [8, 128], strides = [1, 1]} : vector<8x384xf32> to vector<8x128xf32>
    %91 = arith.addf %89, %90 : vector<8x128xf32>
    %92 = arith.negf %91 : vector<8x128xf32>
    %93 = math.exp %92 : vector<8x128xf32>
    %cst_32 = arith.constant 1.000000e+00 : f32
    %94 = vector.broadcast %cst_32 : f32 to vector<8x128xf32>
    %95 = arith.addf %94, %93 : vector<8x128xf32>
    %96 = arith.divf %94, %95 : vector<8x128xf32>
    %97 = vector.extract_strided_slice %78 {offsets = [0, 256], sizes = [8, 128], strides = [1, 1]} : vector<8x384xf32> to vector<8x128xf32>
    %98 = vector.extract_strided_slice %80 {offsets = [0, 256], sizes = [8, 128], strides = [1, 1]} : vector<8x384xf32> to vector<8x128xf32>
    %99 = arith.addf %98, %14 : vector<8x128xf32>
    %100 = arith.mulf %88, %99 : vector<8x128xf32>
    %101 = arith.addf %97, %100 : vector<8x128xf32>
    %102 = math.tanh %101 : vector<8x128xf32>
    %cst_33 = arith.constant 1.000000e+00 : f32
    %103 = vector.broadcast %cst_33 : f32 to vector<8x128xf32>
    %104 = arith.subf %103, %96 : vector<8x128xf32>
    %105 = arith.mulf %104, %102 : vector<8x128xf32>
    %106 = arith.mulf %96, %76 : vector<8x128xf32>
    %107 = arith.addf %105, %106 : vector<8x128xf32>
    %c16_34 = arith.constant 16 : index
    %c0_35 = arith.constant 0 : index
    %108 = vector.load %arg16[%c16_34, %c0_35] : memref<64x128xf32, #tpu.memory_space<vmem>>, vector<8x128xf32>
    tpu.vector_store %arg16[%c16_34, %c0_35], %107 {strides = array<i32>} : memref<64x128xf32, #tpu.memory_space<vmem>>, vector<8x128xf32>,
    %c24 = arith.constant 24 : index
    %c0_36 = arith.constant 0 : index
    %109 = vector.load %arg15[%c24, %c0_36] : memref<64x384xf32, #tpu.memory_space<vmem>>, vector<8x384xf32>
    %110 = arith.truncf %107 : vector<8x128xf32> to vector<8x128xbf16>
    %cst_37 = arith.constant dense<0.000000e+00> : vector<8x384xf32>
    %111 = tpu.matmul %110, %11, %cst_37 {dimension_numbers = #tpu.dot_dimension_numbers<[1], [0], [0], [1], [0, 0, 1, 1], [], []>} : vector<8x128xbf16>, vector<128x384xbf16>, vector<8x384xf32> -> vector<8x384xf32>
    %112 = vector.extract_strided_slice %109 {offsets = [0, 0], sizes = [8, 128], strides = [1, 1]} : vector<8x384xf32> to vector<8x128xf32>
    %113 = vector.extract_strided_slice %111 {offsets = [0, 0], sizes = [8, 128], strides = [1, 1]} : vector<8x384xf32> to vector<8x128xf32>
    %114 = arith.addf %112, %113 : vector<8x128xf32>
    %115 = arith.negf %114 : vector<8x128xf32>
    %116 = math.exp %115 : vector<8x128xf32>
    %cst_38 = arith.constant 1.000000e+00 : f32
    %117 = vector.broadcast %cst_38 : f32 to vector<8x128xf32>
    %118 = arith.addf %117, %116 : vector<8x128xf32>
    %119 = arith.divf %117, %118 : vector<8x128xf32>
    %120 = vector.extract_strided_slice %109 {offsets = [0, 128], sizes = [8, 128], strides = [1, 1]} : vector<8x384xf32> to vector<8x128xf32>
    %121 = vector.extract_strided_slice %111 {offsets = [0, 128], sizes = [8, 128], strides = [1, 1]} : vector<8x384xf32> to vector<8x128xf32>
    %122 = arith.addf %120, %121 : vector<8x128xf32>
    %123 = arith.negf %122 : vector<8x128xf32>
    %124 = math.exp %123 : vector<8x128xf32>
    %cst_39 = arith.constant 1.000000e+00 : f32
    %125 = vector.broadcast %cst_39 : f32 to vector<8x128xf32>
    %126 = arith.addf %125, %124 : vector<8x128xf32>
    %127 = arith.divf %125, %126 : vector<8x128xf32>
    %128 = vector.extract_strided_slice %109 {offsets = [0, 256], sizes = [8, 128], strides = [1, 1]} : vector<8x384xf32> to vector<8x128xf32>
    %129 = vector.extract_strided_slice %111 {offsets = [0, 256], sizes = [8, 128], strides = [1, 1]} : vector<8x384xf32> to vector<8x128xf32>
    %130 = arith.addf %129, %14 : vector<8x128xf32>
    %131 = arith.mulf %119, %130 : vector<8x128xf32>
    %132 = arith.addf %128, %131 : vector<8x128xf32>
    %133 = math.tanh %132 : vector<8x128xf32>
    %cst_40 = arith.constant 1.000000e+00 : f32
    %134 = vector.broadcast %cst_40 : f32 to vector<8x128xf32>
    %135 = arith.subf %134, %127 : vector<8x128xf32>
    %136 = arith.mulf %135, %133 : vector<8x128xf32>
    %137 = arith.mulf %127, %107 : vector<8x128xf32>
    %138 = arith.addf %136, %137 : vector<8x128xf32>
    %c24_41 = arith.constant 24 : index
    %c0_42 = arith.constant 0 : index
    %139 = vector.load %arg16[%c24_41, %c0_42] : memref<64x128xf32, #tpu.memory_space<vmem>>, vector<8x128xf32>
    tpu.vector_store %arg16[%c24_41, %c0_42], %138 {strides = array<i32>} : memref<64x128xf32, #tpu.memory_space<vmem>>, vector<8x128xf32>,
    %c32 = arith.constant 32 : index
    %c0_43 = arith.constant 0 : index
    %140 = vector.load %arg15[%c32, %c0_43] : memref<64x384xf32, #tpu.memory_space<vmem>>, vector<8x384xf32>
    %141 = arith.truncf %138 : vector<8x128xf32> to vector<8x128xbf16>
    %cst_44 = arith.constant dense<0.000000e+00> : vector<8x384xf32>
    %142 = tpu.matmul %141, %11, %cst_44 {dimension_numbers = #tpu.dot_dimension_numbers<[1], [0], [0], [1], [0, 0, 1, 1], [], []>} : vector<8x128xbf16>, vector<128x384xbf16>, vector<8x384xf32> -> vector<8x384xf32>
    %143 = vector.extract_strided_slice %140 {offsets = [0, 0], sizes = [8, 128], strides = [1, 1]} : vector<8x384xf32> to vector<8x128xf32>
    %144 = vector.extract_strided_slice %142 {offsets = [0, 0], sizes = [8, 128], strides = [1, 1]} : vector<8x384xf32> to vector<8x128xf32>
    %145 = arith.addf %143, %144 : vector<8x128xf32>
    %146 = arith.negf %145 : vector<8x128xf32>
    %147 = math.exp %146 : vector<8x128xf32>
    %cst_45 = arith.constant 1.000000e+00 : f32
    %148 = vector.broadcast %cst_45 : f32 to vector<8x128xf32>
    %149 = arith.addf %148, %147 : vector<8x128xf32>
    %150 = arith.divf %148, %149 : vector<8x128xf32>
    %151 = vector.extract_strided_slice %140 {offsets = [0, 128], sizes = [8, 128], strides = [1, 1]} : vector<8x384xf32> to vector<8x128xf32>
    %152 = vector.extract_strided_slice %142 {offsets = [0, 128], sizes = [8, 128], strides = [1, 1]} : vector<8x384xf32> to vector<8x128xf32>
    %153 = arith.addf %151, %152 : vector<8x128xf32>
    %154 = arith.negf %153 : vector<8x128xf32>
    %155 = math.exp %154 : vector<8x128xf32>
    %cst_46 = arith.constant 1.000000e+00 : f32
    %156 = vector.broadcast %cst_46 : f32 to vector<8x128xf32>
    %157 = arith.addf %156, %155 : vector<8x128xf32>
    %158 = arith.divf %156, %157 : vector<8x128xf32>
    %159 = vector.extract_strided_slice %140 {offsets = [0, 256], sizes = [8, 128], strides = [1, 1]} : vector<8x384xf32> to vector<8x128xf32>
    %160 = vector.extract_strided_slice %142 {offsets = [0, 256], sizes = [8, 128], strides = [1, 1]} : vector<8x384xf32> to vector<8x128xf32>
    %161 = arith.addf %160, %14 : vector<8x128xf32>
    %162 = arith.mulf %150, %161 : vector<8x128xf32>
    %163 = arith.addf %159, %162 : vector<8x128xf32>
    %164 = math.tanh %163 : vector<8x128xf32>
    %cst_47 = arith.constant 1.000000e+00 : f32
    %165 = vector.broadcast %cst_47 : f32 to vector<8x128xf32>
    %166 = arith.subf %165, %158 : vector<8x128xf32>
    %167 = arith.mulf %166, %164 : vector<8x128xf32>
    %168 = arith.mulf %158, %138 : vector<8x128xf32>
    %169 = arith.addf %167, %168 : vector<8x128xf32>
    %c32_48 = arith.constant 32 : index
    %c0_49 = arith.constant 0 : index
    %170 = vector.load %arg16[%c32_48, %c0_49] : memref<64x128xf32, #tpu.memory_space<vmem>>, vector<8x128xf32>
    tpu.vector_store %arg16[%c32_48, %c0_49], %169 {strides = array<i32>} : memref<64x128xf32, #tpu.memory_space<vmem>>, vector<8x128xf32>,
    %c40 = arith.constant 40 : index
    %c0_50 = arith.constant 0 : index
    %171 = vector.load %arg15[%c40, %c0_50] : memref<64x384xf32, #tpu.memory_space<vmem>>, vector<8x384xf32>
    %172 = arith.truncf %169 : vector<8x128xf32> to vector<8x128xbf16>
    %cst_51 = arith.constant dense<0.000000e+00> : vector<8x384xf32>
    %173 = tpu.matmul %172, %11, %cst_51 {dimension_numbers = #tpu.dot_dimension_numbers<[1], [0], [0], [1], [0, 0, 1, 1], [], []>} : vector<8x128xbf16>, vector<128x384xbf16>, vector<8x384xf32> -> vector<8x384xf32>
    %174 = vector.extract_strided_slice %171 {offsets = [0, 0], sizes = [8, 128], strides = [1, 1]} : vector<8x384xf32> to vector<8x128xf32>
    %175 = vector.extract_strided_slice %173 {offsets = [0, 0], sizes = [8, 128], strides = [1, 1]} : vector<8x384xf32> to vector<8x128xf32>
    %176 = arith.addf %174, %175 : vector<8x128xf32>
    %177 = arith.negf %176 : vector<8x128xf32>
    %178 = math.exp %177 : vector<8x128xf32>
    %cst_52 = arith.constant 1.000000e+00 : f32
    %179 = vector.broadcast %cst_52 : f32 to vector<8x128xf32>
    %180 = arith.addf %179, %178 : vector<8x128xf32>
    %181 = arith.divf %179, %180 : vector<8x128xf32>
    %182 = vector.extract_strided_slice %171 {offsets = [0, 128], sizes = [8, 128], strides = [1, 1]} : vector<8x384xf32> to vector<8x128xf32>
    %183 = vector.extract_strided_slice %173 {offsets = [0, 128], sizes = [8, 128], strides = [1, 1]} : vector<8x384xf32> to vector<8x128xf32>
    %184 = arith.addf %182, %183 : vector<8x128xf32>
    %185 = arith.negf %184 : vector<8x128xf32>
    %186 = math.exp %185 : vector<8x128xf32>
    %cst_53 = arith.constant 1.000000e+00 : f32
    %187 = vector.broadcast %cst_53 : f32 to vector<8x128xf32>
    %188 = arith.addf %187, %186 : vector<8x128xf32>
    %189 = arith.divf %187, %188 : vector<8x128xf32>
    %190 = vector.extract_strided_slice %171 {offsets = [0, 256], sizes = [8, 128], strides = [1, 1]} : vector<8x384xf32> to vector<8x128xf32>
    %191 = vector.extract_strided_slice %173 {offsets = [0, 256], sizes = [8, 128], strides = [1, 1]} : vector<8x384xf32> to vector<8x128xf32>
    %192 = arith.addf %191, %14 : vector<8x128xf32>
    %193 = arith.mulf %181, %192 : vector<8x128xf32>
    %194 = arith.addf %190, %193 : vector<8x128xf32>
    %195 = math.tanh %194 : vector<8x128xf32>
    %cst_54 = arith.constant 1.000000e+00 : f32
    %196 = vector.broadcast %cst_54 : f32 to vector<8x128xf32>
    %197 = arith.subf %196, %189 : vector<8x128xf32>
    %198 = arith.mulf %197, %195 : vector<8x128xf32>
    %199 = arith.mulf %189, %169 : vector<8x128xf32>
    %200 = arith.addf %198, %199 : vector<8x128xf32>
    %c40_55 = arith.constant 40 : index
    %c0_56 = arith.constant 0 : index
    %201 = vector.load %arg16[%c40_55, %c0_56] : memref<64x128xf32, #tpu.memory_space<vmem>>, vector<8x128xf32>
    tpu.vector_store %arg16[%c40_55, %c0_56], %200 {strides = array<i32>} : memref<64x128xf32, #tpu.memory_space<vmem>>, vector<8x128xf32>,
    %c48 = arith.constant 48 : index
    %c0_57 = arith.constant 0 : index
    %202 = vector.load %arg15[%c48, %c0_57] : memref<64x384xf32, #tpu.memory_space<vmem>>, vector<8x384xf32>
    %203 = arith.truncf %200 : vector<8x128xf32> to vector<8x128xbf16>
    %cst_58 = arith.constant dense<0.000000e+00> : vector<8x384xf32>
    %204 = tpu.matmul %203, %11, %cst_58 {dimension_numbers = #tpu.dot_dimension_numbers<[1], [0], [0], [1], [0, 0, 1, 1], [], []>} : vector<8x128xbf16>, vector<128x384xbf16>, vector<8x384xf32> -> vector<8x384xf32>
    %205 = vector.extract_strided_slice %202 {offsets = [0, 0], sizes = [8, 128], strides = [1, 1]} : vector<8x384xf32> to vector<8x128xf32>
    %206 = vector.extract_strided_slice %204 {offsets = [0, 0], sizes = [8, 128], strides = [1, 1]} : vector<8x384xf32> to vector<8x128xf32>
    %207 = arith.addf %205, %206 : vector<8x128xf32>
    %208 = arith.negf %207 : vector<8x128xf32>
    %209 = math.exp %208 : vector<8x128xf32>
    %cst_59 = arith.constant 1.000000e+00 : f32
    %210 = vector.broadcast %cst_59 : f32 to vector<8x128xf32>
    %211 = arith.addf %210, %209 : vector<8x128xf32>
    %212 = arith.divf %210, %211 : vector<8x128xf32>
    %213 = vector.extract_strided_slice %202 {offsets = [0, 128], sizes = [8, 128], strides = [1, 1]} : vector<8x384xf32> to vector<8x128xf32>
    %214 = vector.extract_strided_slice %204 {offsets = [0, 128], sizes = [8, 128], strides = [1, 1]} : vector<8x384xf32> to vector<8x128xf32>
    %215 = arith.addf %213, %214 : vector<8x128xf32>
    %216 = arith.negf %215 : vector<8x128xf32>
    %217 = math.exp %216 : vector<8x128xf32>
    %cst_60 = arith.constant 1.000000e+00 : f32
    %218 = vector.broadcast %cst_60 : f32 to vector<8x128xf32>
    %219 = arith.addf %218, %217 : vector<8x128xf32>
    %220 = arith.divf %218, %219 : vector<8x128xf32>
    %221 = vector.extract_strided_slice %202 {offsets = [0, 256], sizes = [8, 128], strides = [1, 1]} : vector<8x384xf32> to vector<8x128xf32>
    %222 = vector.extract_strided_slice %204 {offsets = [0, 256], sizes = [8, 128], strides = [1, 1]} : vector<8x384xf32> to vector<8x128xf32>
    %223 = arith.addf %222, %14 : vector<8x128xf32>
    %224 = arith.mulf %212, %223 : vector<8x128xf32>
    %225 = arith.addf %221, %224 : vector<8x128xf32>
    %226 = math.tanh %225 : vector<8x128xf32>
    %cst_61 = arith.constant 1.000000e+00 : f32
    %227 = vector.broadcast %cst_61 : f32 to vector<8x128xf32>
    %228 = arith.subf %227, %220 : vector<8x128xf32>
    %229 = arith.mulf %228, %226 : vector<8x128xf32>
    %230 = arith.mulf %220, %200 : vector<8x128xf32>
    %231 = arith.addf %229, %230 : vector<8x128xf32>
    %c48_62 = arith.constant 48 : index
    %c0_63 = arith.constant 0 : index
    %232 = vector.load %arg16[%c48_62, %c0_63] : memref<64x128xf32, #tpu.memory_space<vmem>>, vector<8x128xf32>
    tpu.vector_store %arg16[%c48_62, %c0_63], %231 {strides = array<i32>} : memref<64x128xf32, #tpu.memory_space<vmem>>, vector<8x128xf32>,
    %c56 = arith.constant 56 : index
    %c0_64 = arith.constant 0 : index
    %233 = vector.load %arg15[%c56, %c0_64] : memref<64x384xf32, #tpu.memory_space<vmem>>, vector<8x384xf32>
    %234 = arith.truncf %231 : vector<8x128xf32> to vector<8x128xbf16>
    %cst_65 = arith.constant dense<0.000000e+00> : vector<8x384xf32>
    %235 = tpu.matmul %234, %11, %cst_65 {dimension_numbers = #tpu.dot_dimension_numbers<[1], [0], [0], [1], [0, 0, 1, 1], [], []>} : vector<8x128xbf16>, vector<128x384xbf16>, vector<8x384xf32> -> vector<8x384xf32>
    %236 = vector.extract_strided_slice %233 {offsets = [0, 0], sizes = [8, 128], strides = [1, 1]} : vector<8x384xf32> to vector<8x128xf32>
    %237 = vector.extract_strided_slice %235 {offsets = [0, 0], sizes = [8, 128], strides = [1, 1]} : vector<8x384xf32> to vector<8x128xf32>
    %238 = arith.addf %236, %237 : vector<8x128xf32>
    %239 = arith.negf %238 : vector<8x128xf32>
    %240 = math.exp %239 : vector<8x128xf32>
    %cst_66 = arith.constant 1.000000e+00 : f32
    %241 = vector.broadcast %cst_66 : f32 to vector<8x128xf32>
    %242 = arith.addf %241, %240 : vector<8x128xf32>
    %243 = arith.divf %241, %242 : vector<8x128xf32>
    %244 = vector.extract_strided_slice %233 {offsets = [0, 128], sizes = [8, 128], strides = [1, 1]} : vector<8x384xf32> to vector<8x128xf32>
    %245 = vector.extract_strided_slice %235 {offsets = [0, 128], sizes = [8, 128], strides = [1, 1]} : vector<8x384xf32> to vector<8x128xf32>
    %246 = arith.addf %244, %245 : vector<8x128xf32>
    %247 = arith.negf %246 : vector<8x128xf32>
    %248 = math.exp %247 : vector<8x128xf32>
    %cst_67 = arith.constant 1.000000e+00 : f32
    %249 = vector.broadcast %cst_67 : f32 to vector<8x128xf32>
    %250 = arith.addf %249, %248 : vector<8x128xf32>
    %251 = arith.divf %249, %250 : vector<8x128xf32>
    %252 = vector.extract_strided_slice %233 {offsets = [0, 256], sizes = [8, 128], strides = [1, 1]} : vector<8x384xf32> to vector<8x128xf32>
    %253 = vector.extract_strided_slice %235 {offsets = [0, 256], sizes = [8, 128], strides = [1, 1]} : vector<8x384xf32> to vector<8x128xf32>
    %254 = arith.addf %253, %14 : vector<8x128xf32>
    %255 = arith.mulf %243, %254 : vector<8x128xf32>
    %256 = arith.addf %252, %255 : vector<8x128xf32>
    %257 = math.tanh %256 : vector<8x128xf32>
    %cst_68 = arith.constant 1.000000e+00 : f32
    %258 = vector.broadcast %cst_68 : f32 to vector<8x128xf32>
    %259 = arith.subf %258, %251 : vector<8x128xf32>
    %260 = arith.mulf %259, %257 : vector<8x128xf32>
    %261 = arith.mulf %251, %231 : vector<8x128xf32>
    %262 = arith.addf %260, %261 : vector<8x128xf32>
    %c56_69 = arith.constant 56 : index
    %c0_70 = arith.constant 0 : index
    %263 = vector.load %arg16[%c56_69, %c0_70] : memref<64x128xf32, #tpu.memory_space<vmem>>, vector<8x128xf32>
    tpu.vector_store %arg16[%c56_69, %c0_70], %262 {strides = array<i32>} : memref<64x128xf32, #tpu.memory_space<vmem>>, vector<8x128xf32>,
    %c0_71 = arith.constant 0 : index
    %c0_72 = arith.constant 0 : index
    %264 = vector.load %arg13[%c0_71, %c0_72] : memref<8x128xf32, #tpu.memory_space<vmem>>, vector<8x128xf32>
    tpu.vector_store %arg13[%c0_71, %c0_72], %262 {strides = array<i32>} : memref<8x128xf32, #tpu.memory_space<vmem>>, vector<8x128xf32>,
    %c0_73 = arith.constant 0 : index
    %c0_74 = arith.constant 0 : index
    %265 = vector.load %arg16[%c0_73, %c0_74] : memref<64x128xf32, #tpu.memory_space<vmem>>, vector<64x128xf32>
    %266 = arith.truncf %265 : vector<64x128xf32> to vector<64x128xbf16>
    %c0_75 = arith.constant 0 : index
    %c0_76 = arith.constant 0 : index
    %267 = vector.load %arg6[%c0_75, %c0_76] : memref<128x384xbf16, #tpu.memory_space<vmem>>, vector<128x384xbf16>
    %cst_77 = arith.constant dense<0.000000e+00> : vector<64x384xf32>
    %268 = tpu.matmul %266, %267, %cst_77 {dimension_numbers = #tpu.dot_dimension_numbers<[1], [0], [0], [1], [0, 0, 1, 1], [], []>} : vector<64x128xbf16>, vector<128x384xbf16>, vector<64x384xf32> -> vector<64x384xf32>
    %c0_78 = arith.constant 0 : index
    %c0_79 = arith.constant 0 : index
    %269 = vector.load %arg8[%c0_78, %c0_79] : memref<1x384xf32, #tpu.memory_space<vmem>>, vector<1x384xf32>
    %270 = vector.broadcast %269 : vector<1x384xf32> to vector<64x384xf32>
    %271 = arith.addf %268, %270 : vector<64x384xf32>
    %c0_80 = arith.constant 0 : index
    %c0_81 = arith.constant 0 : index
    %272 = vector.load %arg15[%c0_80, %c0_81] : memref<64x384xf32, #tpu.memory_space<vmem>>, vector<64x384xf32>
    tpu.vector_store %arg15[%c0_80, %c0_81], %271 {strides = array<i32>} : memref<64x384xf32, #tpu.memory_space<vmem>>, vector<64x384xf32>,
    %c0_82 = arith.constant 0 : index
    %c0_83 = arith.constant 0 : index
    %273 = vector.load %arg7[%c0_82, %c0_83] : memref<128x384xbf16, #tpu.memory_space<vmem>>, vector<128x384xbf16>
    %c0_84 = arith.constant 0 : index
    %c0_85 = arith.constant 0 : index
    %274 = vector.load %arg9[%c0_84, %c0_85] : memref<1x128xf32, #tpu.memory_space<vmem>>, vector<1x128xf32>
    %275 = vector.shape_cast %274 : vector<1x128xf32> to vector<1x128xf32>
    %276 = vector.broadcast %275 : vector<1x128xf32> to vector<8x128xf32>
    %c0_86 = arith.constant 0 : index
    %c0_87 = arith.constant 0 : index
    %277 = vector.load %arg14[%c0_86, %c0_87] : memref<8x128xf32, #tpu.memory_space<vmem>>, vector<8x128xf32>
    %c0_88 = arith.constant 0 : index
    %c0_89 = arith.constant 0 : index
    %278 = vector.load %arg15[%c0_88, %c0_89] : memref<64x384xf32, #tpu.memory_space<vmem>>, vector<8x384xf32>
    %279 = arith.truncf %277 : vector<8x128xf32> to vector<8x128xbf16>
    %cst_90 = arith.constant dense<0.000000e+00> : vector<8x384xf32>
    %280 = tpu.matmul %279, %273, %cst_90 {dimension_numbers = #tpu.dot_dimension_numbers<[1], [0], [0], [1], [0, 0, 1, 1], [], []>} : vector<8x128xbf16>, vector<128x384xbf16>, vector<8x384xf32> -> vector<8x384xf32>
    %281 = vector.extract_strided_slice %278 {offsets = [0, 0], sizes = [8, 128], strides = [1, 1]} : vector<8x384xf32> to vector<8x128xf32>
    %282 = vector.extract_strided_slice %280 {offsets = [0, 0], sizes = [8, 128], strides = [1, 1]} : vector<8x384xf32> to vector<8x128xf32>
    %283 = arith.addf %281, %282 : vector<8x128xf32>
    %284 = arith.negf %283 : vector<8x128xf32>
    %285 = math.exp %284 : vector<8x128xf32>
    %cst_91 = arith.constant 1.000000e+00 : f32
    %286 = vector.broadcast %cst_91 : f32 to vector<8x128xf32>
    %287 = arith.addf %286, %285 : vector<8x128xf32>
    %288 = arith.divf %286, %287 : vector<8x128xf32>
    %289 = vector.extract_strided_slice %278 {offsets = [0, 128], sizes = [8, 128], strides = [1, 1]} : vector<8x384xf32> to vector<8x128xf32>
    %290 = vector.extract_strided_slice %280 {offsets = [0, 128], sizes = [8, 128], strides = [1, 1]} : vector<8x384xf32> to vector<8x128xf32>
    %291 = arith.addf %289, %290 : vector<8x128xf32>
    %292 = arith.negf %291 : vector<8x128xf32>
    %293 = math.exp %292 : vector<8x128xf32>
    %cst_92 = arith.constant 1.000000e+00 : f32
    %294 = vector.broadcast %cst_92 : f32 to vector<8x128xf32>
    %295 = arith.addf %294, %293 : vector<8x128xf32>
    %296 = arith.divf %294, %295 : vector<8x128xf32>
    %297 = vector.extract_strided_slice %278 {offsets = [0, 256], sizes = [8, 128], strides = [1, 1]} : vector<8x384xf32> to vector<8x128xf32>
    %298 = vector.extract_strided_slice %280 {offsets = [0, 256], sizes = [8, 128], strides = [1, 1]} : vector<8x384xf32> to vector<8x128xf32>
    %299 = arith.addf %298, %276 : vector<8x128xf32>
    %300 = arith.mulf %288, %299 : vector<8x128xf32>
    %301 = arith.addf %297, %300 : vector<8x128xf32>
    %302 = math.tanh %301 : vector<8x128xf32>
    %cst_93 = arith.constant 1.000000e+00 : f32
    %303 = vector.broadcast %cst_93 : f32 to vector<8x128xf32>
    %304 = arith.subf %303, %296 : vector<8x128xf32>
    %305 = arith.mulf %304, %302 : vector<8x128xf32>
    %306 = arith.mulf %296, %277 : vector<8x128xf32>
    %307 = arith.addf %305, %306 : vector<8x128xf32>
    %c8_94 = arith.constant 8 : index
    %c0_95 = arith.constant 0 : index
    %308 = vector.load %arg15[%c8_94, %c0_95] : memref<64x384xf32, #tpu.memory_space<vmem>>, vector<8x384xf32>
    %309 = arith.truncf %307 : vector<8x128xf32> to vector<8x128xbf16>
    %cst_96 = arith.constant dense<0.000000e+00> : vector<8x384xf32>
    %310 = tpu.matmul %309, %273, %cst_96 {dimension_numbers = #tpu.dot_dimension_numbers<[1], [0], [0], [1], [0, 0, 1, 1], [], []>} : vector<8x128xbf16>, vector<128x384xbf16>, vector<8x384xf32> -> vector<8x384xf32>
    %311 = vector.extract_strided_slice %308 {offsets = [0, 0], sizes = [8, 128], strides = [1, 1]} : vector<8x384xf32> to vector<8x128xf32>
    %312 = vector.extract_strided_slice %310 {offsets = [0, 0], sizes = [8, 128], strides = [1, 1]} : vector<8x384xf32> to vector<8x128xf32>
    %313 = arith.addf %311, %312 : vector<8x128xf32>
    %314 = arith.negf %313 : vector<8x128xf32>
    %315 = math.exp %314 : vector<8x128xf32>
    %cst_97 = arith.constant 1.000000e+00 : f32
    %316 = vector.broadcast %cst_97 : f32 to vector<8x128xf32>
    %317 = arith.addf %316, %315 : vector<8x128xf32>
    %318 = arith.divf %316, %317 : vector<8x128xf32>
    %319 = vector.extract_strided_slice %308 {offsets = [0, 128], sizes = [8, 128], strides = [1, 1]} : vector<8x384xf32> to vector<8x128xf32>
    %320 = vector.extract_strided_slice %310 {offsets = [0, 128], sizes = [8, 128], strides = [1, 1]} : vector<8x384xf32> to vector<8x128xf32>
    %321 = arith.addf %319, %320 : vector<8x128xf32>
    %322 = arith.negf %321 : vector<8x128xf32>
    %323 = math.exp %322 : vector<8x128xf32>
    %cst_98 = arith.constant 1.000000e+00 : f32
    %324 = vector.broadcast %cst_98 : f32 to vector<8x128xf32>
    %325 = arith.addf %324, %323 : vector<8x128xf32>
    %326 = arith.divf %324, %325 : vector<8x128xf32>
    %327 = vector.extract_strided_slice %308 {offsets = [0, 256], sizes = [8, 128], strides = [1, 1]} : vector<8x384xf32> to vector<8x128xf32>
    %328 = vector.extract_strided_slice %310 {offsets = [0, 256], sizes = [8, 128], strides = [1, 1]} : vector<8x384xf32> to vector<8x128xf32>
    %329 = arith.addf %328, %276 : vector<8x128xf32>
    %330 = arith.mulf %318, %329 : vector<8x128xf32>
    %331 = arith.addf %327, %330 : vector<8x128xf32>
    %332 = math.tanh %331 : vector<8x128xf32>
    %cst_99 = arith.constant 1.000000e+00 : f32
    %333 = vector.broadcast %cst_99 : f32 to vector<8x128xf32>
    %334 = arith.subf %333, %326 : vector<8x128xf32>
    %335 = arith.mulf %334, %332 : vector<8x128xf32>
    %336 = arith.mulf %326, %307 : vector<8x128xf32>
    %337 = arith.addf %335, %336 : vector<8x128xf32>
    %c16_100 = arith.constant 16 : index
    %c0_101 = arith.constant 0 : index
    %338 = vector.load %arg15[%c16_100, %c0_101] : memref<64x384xf32, #tpu.memory_space<vmem>>, vector<8x384xf32>
    %339 = arith.truncf %337 : vector<8x128xf32> to vector<8x128xbf16>
    %cst_102 = arith.constant dense<0.000000e+00> : vector<8x384xf32>
    %340 = tpu.matmul %339, %273, %cst_102 {dimension_numbers = #tpu.dot_dimension_numbers<[1], [0], [0], [1], [0, 0, 1, 1], [], []>} : vector<8x128xbf16>, vector<128x384xbf16>, vector<8x384xf32> -> vector<8x384xf32>
    %341 = vector.extract_strided_slice %338 {offsets = [0, 0], sizes = [8, 128], strides = [1, 1]} : vector<8x384xf32> to vector<8x128xf32>
    %342 = vector.extract_strided_slice %340 {offsets = [0, 0], sizes = [8, 128], strides = [1, 1]} : vector<8x384xf32> to vector<8x128xf32>
    %343 = arith.addf %341, %342 : vector<8x128xf32>
    %344 = arith.negf %343 : vector<8x128xf32>
    %345 = math.exp %344 : vector<8x128xf32>
    %cst_103 = arith.constant 1.000000e+00 : f32
    %346 = vector.broadcast %cst_103 : f32 to vector<8x128xf32>
    %347 = arith.addf %346, %345 : vector<8x128xf32>
    %348 = arith.divf %346, %347 : vector<8x128xf32>
    %349 = vector.extract_strided_slice %338 {offsets = [0, 128], sizes = [8, 128], strides = [1, 1]} : vector<8x384xf32> to vector<8x128xf32>
    %350 = vector.extract_strided_slice %340 {offsets = [0, 128], sizes = [8, 128], strides = [1, 1]} : vector<8x384xf32> to vector<8x128xf32>
    %351 = arith.addf %349, %350 : vector<8x128xf32>
    %352 = arith.negf %351 : vector<8x128xf32>
    %353 = math.exp %352 : vector<8x128xf32>
    %cst_104 = arith.constant 1.000000e+00 : f32
    %354 = vector.broadcast %cst_104 : f32 to vector<8x128xf32>
    %355 = arith.addf %354, %353 : vector<8x128xf32>
    %356 = arith.divf %354, %355 : vector<8x128xf32>
    %357 = vector.extract_strided_slice %338 {offsets = [0, 256], sizes = [8, 128], strides = [1, 1]} : vector<8x384xf32> to vector<8x128xf32>
    %358 = vector.extract_strided_slice %340 {offsets = [0, 256], sizes = [8, 128], strides = [1, 1]} : vector<8x384xf32> to vector<8x128xf32>
    %359 = arith.addf %358, %276 : vector<8x128xf32>
    %360 = arith.mulf %348, %359 : vector<8x128xf32>
    %361 = arith.addf %357, %360 : vector<8x128xf32>
    %362 = math.tanh %361 : vector<8x128xf32>
    %cst_105 = arith.constant 1.000000e+00 : f32
    %363 = vector.broadcast %cst_105 : f32 to vector<8x128xf32>
    %364 = arith.subf %363, %356 : vector<8x128xf32>
    %365 = arith.mulf %364, %362 : vector<8x128xf32>
    %366 = arith.mulf %356, %337 : vector<8x128xf32>
    %367 = arith.addf %365, %366 : vector<8x128xf32>
    %c24_106 = arith.constant 24 : index
    %c0_107 = arith.constant 0 : index
    %368 = vector.load %arg15[%c24_106, %c0_107] : memref<64x384xf32, #tpu.memory_space<vmem>>, vector<8x384xf32>
    %369 = arith.truncf %367 : vector<8x128xf32> to vector<8x128xbf16>
    %cst_108 = arith.constant dense<0.000000e+00> : vector<8x384xf32>
    %370 = tpu.matmul %369, %273, %cst_108 {dimension_numbers = #tpu.dot_dimension_numbers<[1], [0], [0], [1], [0, 0, 1, 1], [], []>} : vector<8x128xbf16>, vector<128x384xbf16>, vector<8x384xf32> -> vector<8x384xf32>
    %371 = vector.extract_strided_slice %368 {offsets = [0, 0], sizes = [8, 128], strides = [1, 1]} : vector<8x384xf32> to vector<8x128xf32>
    %372 = vector.extract_strided_slice %370 {offsets = [0, 0], sizes = [8, 128], strides = [1, 1]} : vector<8x384xf32> to vector<8x128xf32>
    %373 = arith.addf %371, %372 : vector<8x128xf32>
    %374 = arith.negf %373 : vector<8x128xf32>
    %375 = math.exp %374 : vector<8x128xf32>
    %cst_109 = arith.constant 1.000000e+00 : f32
    %376 = vector.broadcast %cst_109 : f32 to vector<8x128xf32>
    %377 = arith.addf %376, %375 : vector<8x128xf32>
    %378 = arith.divf %376, %377 : vector<8x128xf32>
    %379 = vector.extract_strided_slice %368 {offsets = [0, 128], sizes = [8, 128], strides = [1, 1]} : vector<8x384xf32> to vector<8x128xf32>
    %380 = vector.extract_strided_slice %370 {offsets = [0, 128], sizes = [8, 128], strides = [1, 1]} : vector<8x384xf32> to vector<8x128xf32>
    %381 = arith.addf %379, %380 : vector<8x128xf32>
    %382 = arith.negf %381 : vector<8x128xf32>
    %383 = math.exp %382 : vector<8x128xf32>
    %cst_110 = arith.constant 1.000000e+00 : f32
    %384 = vector.broadcast %cst_110 : f32 to vector<8x128xf32>
    %385 = arith.addf %384, %383 : vector<8x128xf32>
    %386 = arith.divf %384, %385 : vector<8x128xf32>
    %387 = vector.extract_strided_slice %368 {offsets = [0, 256], sizes = [8, 128], strides = [1, 1]} : vector<8x384xf32> to vector<8x128xf32>
    %388 = vector.extract_strided_slice %370 {offsets = [0, 256], sizes = [8, 128], strides = [1, 1]} : vector<8x384xf32> to vector<8x128xf32>
    %389 = arith.addf %388, %276 : vector<8x128xf32>
    %390 = arith.mulf %378, %389 : vector<8x128xf32>
    %391 = arith.addf %387, %390 : vector<8x128xf32>
    %392 = math.tanh %391 : vector<8x128xf32>
    %cst_111 = arith.constant 1.000000e+00 : f32
    %393 = vector.broadcast %cst_111 : f32 to vector<8x128xf32>
    %394 = arith.subf %393, %386 : vector<8x128xf32>
    %395 = arith.mulf %394, %392 : vector<8x128xf32>
    %396 = arith.mulf %386, %367 : vector<8x128xf32>
    %397 = arith.addf %395, %396 : vector<8x128xf32>
    %c32_112 = arith.constant 32 : index
    %c0_113 = arith.constant 0 : index
    %398 = vector.load %arg15[%c32_112, %c0_113] : memref<64x384xf32, #tpu.memory_space<vmem>>, vector<8x384xf32>
    %399 = arith.truncf %397 : vector<8x128xf32> to vector<8x128xbf16>
    %cst_114 = arith.constant dense<0.000000e+00> : vector<8x384xf32>
    %400 = tpu.matmul %399, %273, %cst_114 {dimension_numbers = #tpu.dot_dimension_numbers<[1], [0], [0], [1], [0, 0, 1, 1], [], []>} : vector<8x128xbf16>, vector<128x384xbf16>, vector<8x384xf32> -> vector<8x384xf32>
    %401 = vector.extract_strided_slice %398 {offsets = [0, 0], sizes = [8, 128], strides = [1, 1]} : vector<8x384xf32> to vector<8x128xf32>
    %402 = vector.extract_strided_slice %400 {offsets = [0, 0], sizes = [8, 128], strides = [1, 1]} : vector<8x384xf32> to vector<8x128xf32>
    %403 = arith.addf %401, %402 : vector<8x128xf32>
    %404 = arith.negf %403 : vector<8x128xf32>
    %405 = math.exp %404 : vector<8x128xf32>
    %cst_115 = arith.constant 1.000000e+00 : f32
    %406 = vector.broadcast %cst_115 : f32 to vector<8x128xf32>
    %407 = arith.addf %406, %405 : vector<8x128xf32>
    %408 = arith.divf %406, %407 : vector<8x128xf32>
    %409 = vector.extract_strided_slice %398 {offsets = [0, 128], sizes = [8, 128], strides = [1, 1]} : vector<8x384xf32> to vector<8x128xf32>
    %410 = vector.extract_strided_slice %400 {offsets = [0, 128], sizes = [8, 128], strides = [1, 1]} : vector<8x384xf32> to vector<8x128xf32>
    %411 = arith.addf %409, %410 : vector<8x128xf32>
    %412 = arith.negf %411 : vector<8x128xf32>
    %413 = math.exp %412 : vector<8x128xf32>
    %cst_116 = arith.constant 1.000000e+00 : f32
    %414 = vector.broadcast %cst_116 : f32 to vector<8x128xf32>
    %415 = arith.addf %414, %413 : vector<8x128xf32>
    %416 = arith.divf %414, %415 : vector<8x128xf32>
    %417 = vector.extract_strided_slice %398 {offsets = [0, 256], sizes = [8, 128], strides = [1, 1]} : vector<8x384xf32> to vector<8x128xf32>
    %418 = vector.extract_strided_slice %400 {offsets = [0, 256], sizes = [8, 128], strides = [1, 1]} : vector<8x384xf32> to vector<8x128xf32>
    %419 = arith.addf %418, %276 : vector<8x128xf32>
    %420 = arith.mulf %408, %419 : vector<8x128xf32>
    %421 = arith.addf %417, %420 : vector<8x128xf32>
    %422 = math.tanh %421 : vector<8x128xf32>
    %cst_117 = arith.constant 1.000000e+00 : f32
    %423 = vector.broadcast %cst_117 : f32 to vector<8x128xf32>
    %424 = arith.subf %423, %416 : vector<8x128xf32>
    %425 = arith.mulf %424, %422 : vector<8x128xf32>
    %426 = arith.mulf %416, %397 : vector<8x128xf32>
    %427 = arith.addf %425, %426 : vector<8x128xf32>
    %c40_118 = arith.constant 40 : index
    %c0_119 = arith.constant 0 : index
    %428 = vector.load %arg15[%c40_118, %c0_119] : memref<64x384xf32, #tpu.memory_space<vmem>>, vector<8x384xf32>
    %429 = arith.truncf %427 : vector<8x128xf32> to vector<8x128xbf16>
    %cst_120 = arith.constant dense<0.000000e+00> : vector<8x384xf32>
    %430 = tpu.matmul %429, %273, %cst_120 {dimension_numbers = #tpu.dot_dimension_numbers<[1], [0], [0], [1], [0, 0, 1, 1], [], []>} : vector<8x128xbf16>, vector<128x384xbf16>, vector<8x384xf32> -> vector<8x384xf32>
    %431 = vector.extract_strided_slice %428 {offsets = [0, 0], sizes = [8, 128], strides = [1, 1]} : vector<8x384xf32> to vector<8x128xf32>
    %432 = vector.extract_strided_slice %430 {offsets = [0, 0], sizes = [8, 128], strides = [1, 1]} : vector<8x384xf32> to vector<8x128xf32>
    %433 = arith.addf %431, %432 : vector<8x128xf32>
    %434 = arith.negf %433 : vector<8x128xf32>
    %435 = math.exp %434 : vector<8x128xf32>
    %cst_121 = arith.constant 1.000000e+00 : f32
    %436 = vector.broadcast %cst_121 : f32 to vector<8x128xf32>
    %437 = arith.addf %436, %435 : vector<8x128xf32>
    %438 = arith.divf %436, %437 : vector<8x128xf32>
    %439 = vector.extract_strided_slice %428 {offsets = [0, 128], sizes = [8, 128], strides = [1, 1]} : vector<8x384xf32> to vector<8x128xf32>
    %440 = vector.extract_strided_slice %430 {offsets = [0, 128], sizes = [8, 128], strides = [1, 1]} : vector<8x384xf32> to vector<8x128xf32>
    %441 = arith.addf %439, %440 : vector<8x128xf32>
    %442 = arith.negf %441 : vector<8x128xf32>
    %443 = math.exp %442 : vector<8x128xf32>
    %cst_122 = arith.constant 1.000000e+00 : f32
    %444 = vector.broadcast %cst_122 : f32 to vector<8x128xf32>
    %445 = arith.addf %444, %443 : vector<8x128xf32>
    %446 = arith.divf %444, %445 : vector<8x128xf32>
    %447 = vector.extract_strided_slice %428 {offsets = [0, 256], sizes = [8, 128], strides = [1, 1]} : vector<8x384xf32> to vector<8x128xf32>
    %448 = vector.extract_strided_slice %430 {offsets = [0, 256], sizes = [8, 128], strides = [1, 1]} : vector<8x384xf32> to vector<8x128xf32>
    %449 = arith.addf %448, %276 : vector<8x128xf32>
    %450 = arith.mulf %438, %449 : vector<8x128xf32>
    %451 = arith.addf %447, %450 : vector<8x128xf32>
    %452 = math.tanh %451 : vector<8x128xf32>
    %cst_123 = arith.constant 1.000000e+00 : f32
    %453 = vector.broadcast %cst_123 : f32 to vector<8x128xf32>
    %454 = arith.subf %453, %446 : vector<8x128xf32>
    %455 = arith.mulf %454, %452 : vector<8x128xf32>
    %456 = arith.mulf %446, %427 : vector<8x128xf32>
    %457 = arith.addf %455, %456 : vector<8x128xf32>
    %c48_124 = arith.constant 48 : index
    %c0_125 = arith.constant 0 : index
    %458 = vector.load %arg15[%c48_124, %c0_125] : memref<64x384xf32, #tpu.memory_space<vmem>>, vector<8x384xf32>
    %459 = arith.truncf %457 : vector<8x128xf32> to vector<8x128xbf16>
    %cst_126 = arith.constant dense<0.000000e+00> : vector<8x384xf32>
    %460 = tpu.matmul %459, %273, %cst_126 {dimension_numbers = #tpu.dot_dimension_numbers<[1], [0], [0], [1], [0, 0, 1, 1], [], []>} : vector<8x128xbf16>, vector<128x384xbf16>, vector<8x384xf32> -> vector<8x384xf32>
    %461 = vector.extract_strided_slice %458 {offsets = [0, 0], sizes = [8, 128], strides = [1, 1]} : vector<8x384xf32> to vector<8x128xf32>
    %462 = vector.extract_strided_slice %460 {offsets = [0, 0], sizes = [8, 128], strides = [1, 1]} : vector<8x384xf32> to vector<8x128xf32>
    %463 = arith.addf %461, %462 : vector<8x128xf32>
    %464 = arith.negf %463 : vector<8x128xf32>
    %465 = math.exp %464 : vector<8x128xf32>
    %cst_127 = arith.constant 1.000000e+00 : f32
    %466 = vector.broadcast %cst_127 : f32 to vector<8x128xf32>
    %467 = arith.addf %466, %465 : vector<8x128xf32>
    %468 = arith.divf %466, %467 : vector<8x128xf32>
    %469 = vector.extract_strided_slice %458 {offsets = [0, 128], sizes = [8, 128], strides = [1, 1]} : vector<8x384xf32> to vector<8x128xf32>
    %470 = vector.extract_strided_slice %460 {offsets = [0, 128], sizes = [8, 128], strides = [1, 1]} : vector<8x384xf32> to vector<8x128xf32>
    %471 = arith.addf %469, %470 : vector<8x128xf32>
    %472 = arith.negf %471 : vector<8x128xf32>
    %473 = math.exp %472 : vector<8x128xf32>
    %cst_128 = arith.constant 1.000000e+00 : f32
    %474 = vector.broadcast %cst_128 : f32 to vector<8x128xf32>
    %475 = arith.addf %474, %473 : vector<8x128xf32>
    %476 = arith.divf %474, %475 : vector<8x128xf32>
    %477 = vector.extract_strided_slice %458 {offsets = [0, 256], sizes = [8, 128], strides = [1, 1]} : vector<8x384xf32> to vector<8x128xf32>
    %478 = vector.extract_strided_slice %460 {offsets = [0, 256], sizes = [8, 128], strides = [1, 1]} : vector<8x384xf32> to vector<8x128xf32>
    %479 = arith.addf %478, %276 : vector<8x128xf32>
    %480 = arith.mulf %468, %479 : vector<8x128xf32>
    %481 = arith.addf %477, %480 : vector<8x128xf32>
    %482 = math.tanh %481 : vector<8x128xf32>
    %cst_129 = arith.constant 1.000000e+00 : f32
    %483 = vector.broadcast %cst_129 : f32 to vector<8x128xf32>
    %484 = arith.subf %483, %476 : vector<8x128xf32>
    %485 = arith.mulf %484, %482 : vector<8x128xf32>
    %486 = arith.mulf %476, %457 : vector<8x128xf32>
    %487 = arith.addf %485, %486 : vector<8x128xf32>
    %c56_130 = arith.constant 56 : index
    %c0_131 = arith.constant 0 : index
    %488 = vector.load %arg15[%c56_130, %c0_131] : memref<64x384xf32, #tpu.memory_space<vmem>>, vector<8x384xf32>
    %489 = arith.truncf %487 : vector<8x128xf32> to vector<8x128xbf16>
    %cst_132 = arith.constant dense<0.000000e+00> : vector<8x384xf32>
    %490 = tpu.matmul %489, %273, %cst_132 {dimension_numbers = #tpu.dot_dimension_numbers<[1], [0], [0], [1], [0, 0, 1, 1], [], []>} : vector<8x128xbf16>, vector<128x384xbf16>, vector<8x384xf32> -> vector<8x384xf32>
    %491 = vector.extract_strided_slice %488 {offsets = [0, 0], sizes = [8, 128], strides = [1, 1]} : vector<8x384xf32> to vector<8x128xf32>
    %492 = vector.extract_strided_slice %490 {offsets = [0, 0], sizes = [8, 128], strides = [1, 1]} : vector<8x384xf32> to vector<8x128xf32>
    %493 = arith.addf %491, %492 : vector<8x128xf32>
    %494 = arith.negf %493 : vector<8x128xf32>
    %495 = math.exp %494 : vector<8x128xf32>
    %cst_133 = arith.constant 1.000000e+00 : f32
    %496 = vector.broadcast %cst_133 : f32 to vector<8x128xf32>
    %497 = arith.addf %496, %495 : vector<8x128xf32>
    %498 = arith.divf %496, %497 : vector<8x128xf32>
    %499 = vector.extract_strided_slice %488 {offsets = [0, 128], sizes = [8, 128], strides = [1, 1]} : vector<8x384xf32> to vector<8x128xf32>
    %500 = vector.extract_strided_slice %490 {offsets = [0, 128], sizes = [8, 128], strides = [1, 1]} : vector<8x384xf32> to vector<8x128xf32>
    %501 = arith.addf %499, %500 : vector<8x128xf32>
    %502 = arith.negf %501 : vector<8x128xf32>
    %503 = math.exp %502 : vector<8x128xf32>
    %cst_134 = arith.constant 1.000000e+00 : f32
    %504 = vector.broadcast %cst_134 : f32 to vector<8x128xf32>
    %505 = arith.addf %504, %503 : vector<8x128xf32>
    %506 = arith.divf %504, %505 : vector<8x128xf32>
    %507 = vector.extract_strided_slice %488 {offsets = [0, 256], sizes = [8, 128], strides = [1, 1]} : vector<8x384xf32> to vector<8x128xf32>
    %508 = vector.extract_strided_slice %490 {offsets = [0, 256], sizes = [8, 128], strides = [1, 1]} : vector<8x384xf32> to vector<8x128xf32>
    %509 = arith.addf %508, %276 : vector<8x128xf32>
    %510 = arith.mulf %498, %509 : vector<8x128xf32>
    %511 = arith.addf %507, %510 : vector<8x128xf32>
    %512 = math.tanh %511 : vector<8x128xf32>
    %cst_135 = arith.constant 1.000000e+00 : f32
    %513 = vector.broadcast %cst_135 : f32 to vector<8x128xf32>
    %514 = arith.subf %513, %506 : vector<8x128xf32>
    %515 = arith.mulf %514, %512 : vector<8x128xf32>
    %516 = arith.mulf %506, %487 : vector<8x128xf32>
    %517 = arith.addf %515, %516 : vector<8x128xf32>
    %c0_136 = arith.constant 0 : index
    %c0_137 = arith.constant 0 : index
    %518 = vector.load %arg14[%c0_136, %c0_137] : memref<8x128xf32, #tpu.memory_space<vmem>>, vector<8x128xf32>
    tpu.vector_store %arg14[%c0_136, %c0_137], %517 {strides = array<i32>} : memref<8x128xf32, #tpu.memory_space<vmem>>, vector<8x128xf32>,
    %519 = arith.truncf %517 : vector<8x128xf32> to vector<8x128xbf16>
    %c0_138 = arith.constant 0 : index
    %c0_139 = arith.constant 0 : index
    %520 = vector.load %arg10[%c0_138, %c0_139] : memref<128x128xbf16, #tpu.memory_space<vmem>>, vector<128x128xbf16>
    %cst_140 = arith.constant dense<0.000000e+00> : vector<8x128xf32>
    %521 = tpu.matmul %519, %520, %cst_140 {dimension_numbers = #tpu.dot_dimension_numbers<[1], [0], [0], [1], [0, 0, 1, 1], [], []>} : vector<8x128xbf16>, vector<128x128xbf16>, vector<8x128xf32> -> vector<8x128xf32>
    %c0_141 = arith.constant 0 : index
    %c0_142 = arith.constant 0 : index
    %522 = vector.load %arg11[%c0_141, %c0_142] : memref<1x128xf32, #tpu.memory_space<vmem>>, vector<1x128xf32>
    %523 = vector.broadcast %522 : vector<1x128xf32> to vector<8x128xf32>
    %524 = arith.addf %521, %523 : vector<8x128xf32>
    %c0_143 = arith.constant 0 : index
    %c0_144 = arith.constant 0 : index
    %525 = vector.load %arg12[%c0_143, %c0_144] : memref<8x128xf32, #tpu.memory_space<vmem>>, vector<8x128xf32>
    tpu.vector_store %arg12[%c0_143, %c0_144], %524 {strides = array<i32>} : memref<8x128xf32, #tpu.memory_space<vmem>>, vector<8x128xf32>,
    return
  }
  func.func @transform_0(%arg0: i32) -> (i32, i32) {
    %c0_i32 = arith.constant 0 : i32
    %c0_i32_0 = arith.constant 0 : i32
    return %arg0, %c0_i32 : i32, i32
  }
  func.func @transform_1(%arg0: i32) -> (i32, i32) {
    %c0_i32 = arith.constant 0 : i32
    %c0_i32_0 = arith.constant 0 : i32
    %c0_i32_1 = arith.constant 0 : i32
    return %c0_i32, %c0_i32_0 : i32, i32
  }
  func.func @transform_2(%arg0: i32) -> (i32, i32) {
    %c0_i32 = arith.constant 0 : i32
    %c0_i32_0 = arith.constant 0 : i32
    %c0_i32_1 = arith.constant 0 : i32
    return %c0_i32, %c0_i32_0 : i32, i32
  }
  func.func @transform_3(%arg0: i32) -> (i32, i32) {
    %c0_i32 = arith.constant 0 : i32
    %c0_i32_0 = arith.constant 0 : i32
    %c0_i32_1 = arith.constant 0 : i32
    return %c0_i32, %c0_i32_0 : i32, i32
  }
  func.func @transform_4(%arg0: i32) -> (i32, i32) {
    %c0_i32 = arith.constant 0 : i32
    %c0_i32_0 = arith.constant 0 : i32
    %c0_i32_1 = arith.constant 0 : i32
    return %c0_i32, %c0_i32_0 : i32, i32
  }
  func.func @transform_5(%arg0: i32) -> (i32, i32) {
    %c0_i32 = arith.constant 0 : i32
    %c0_i32_0 = arith.constant 0 : i32
    %c0_i32_1 = arith.constant 0 : i32
    return %c0_i32, %c0_i32_0 : i32, i32
  }
  func.func @transform_6(%arg0: i32) -> (i32, i32) {
    %c0_i32 = arith.constant 0 : i32
    %c0_i32_0 = arith.constant 0 : i32
    %c0_i32_1 = arith.constant 0 : i32
    return %c0_i32, %c0_i32_0 : i32, i32
  }
  func.func @transform_7(%arg0: i32) -> (i32, i32) {
    %c0_i32 = arith.constant 0 : i32
    %c0_i32_0 = arith.constant 0 : i32
    %c0_i32_1 = arith.constant 0 : i32
    return %c0_i32, %c0_i32_0 : i32, i32
  }
  func.func @transform_8(%arg0: i32) -> (i32, i32) {
    %c0_i32 = arith.constant 0 : i32
    %c0_i32_0 = arith.constant 0 : i32
    %c0_i32_1 = arith.constant 0 : i32
    return %c0_i32, %c0_i32_0 : i32, i32
  }
  func.func @transform_9(%arg0: i32) -> (i32, i32) {
    %c0_i32 = arith.constant 0 : i32
    %c0_i32_0 = arith.constant 0 : i32
    %c0_i32_1 = arith.constant 0 : i32
    return %c0_i32, %c0_i32_0 : i32, i32
  }
  func.func @transform_10(%arg0: i32) -> (i32, i32) {
    %c0_i32 = arith.constant 0 : i32
    %c0_i32_0 = arith.constant 0 : i32
    %c0_i32_1 = arith.constant 0 : i32
    return %c0_i32, %c0_i32_0 : i32, i32
  }
  func.func @transform_11(%arg0: i32) -> (i32, i32) {
    %c0_i32 = arith.constant 0 : i32
    %c0_i32_0 = arith.constant 0 : i32
    %c0_i32_1 = arith.constant 0 : i32
    return %c0_i32, %c0_i32_0 : i32, i32
  }
}

</mosaic_0001>

<bundles_post_ra>
// kernel: tpu_custom_call.1
= control target key start
LH: loop header
LB: loop body
LE: loop exit
PB: predicated region body
PF: predicated region fallthrough
CT: control target
= control target key end

     0   :  { %16 = vsyncpa [#allocation7], 0  ;;  %s5066_s0 = inlined_call_operand.vmem [shape: f32[64,4], index: 0, kind: input, shape index: {}]   ;;  %s5067_s1 = inlined_call_operand.vmem [shape: bf16[4,384], index: 1, kind: input, shape index: {}]   ;;  %s5068_s2 = inlined_call_operand.hbm [shape: bf16[128,384], index: 2, kind: input, shape index: {}]   ;;  %s5069_s3 = inlined_call_operand.vmem [shape: f32[1,384], index: 3, kind: input, shape index: {}]   ;;  %s5070_s4 = inlined_call_operand.vmem [shape: f32[1,128], index: 4, kind: input, shape index: {}]   ;;  %s5071_s5 = inlined_call_operand.hbm [shape: bf16[128,384], index: 5, kind: input, shape index: {}]   ;;  %s5072_s6 = inlined_call_operand.hbm [shape: bf16[128,384], index: 6, kind: input, shape index: {}]   ;;  %s5073_s7 = inlined_call_operand.vmem [shape: f32[1,384], index: 7, kind: input, shape index: {}]   ;;  %s5074_s8 = inlined_call_operand.vmem [shape: f32[1,128], index: 8, kind: input, shape index: {}]   ;;  %s5075_s9 = inlined_call_operand.vmem [shape: bf16[128,128], index: 9, kind: input, shape index: {}]   ;;  %s5076_s10 = inlined_call_operand.vmem [shape: f32[1,128], index: 10, kind: input, shape index: {}]   ;;  %s5077_s11 = inlined_call_operand.hbm [shape: f32[8,128], index: 11, kind: output, shape index: {}]  }
   0x1   :  { %17 = vsyncpa [#allocation10], 0 }
   0x2   :  { %18 = vsyncpa [#allocation8], 0  ;;  %s3936_s17 = smov [#allocation9]   ;;  %s3937_s19 = smov [#allocation6]  }
   0x3   :  { %s44_s18 = sshll.u32 %s3936_s17, 4  ;;  %s28_s20 = sshll.u32 %s3937_s19, 4  ;;  %s45_s18 = int_to_ptr.vmem [resolvable:$true] %s44_s18  ;;  %s29_s20 = int_to_ptr.vmem [resolvable:$true] %s28_s20 }
   0x4   :  { %s3858_s21 = scalar_lea.vmem %s45_s18, 3072  ;;  %p3863_p1 = scmp.lt.s32.totalorder %s45_s18, %s45_s18 }
   0x5   :  { %p3859_p0 = scmp.ne.s32.totalorder %s45_s18, %s3858_s21  ;;  %p3864_p2 = scmp.lt.s32.totalorder %s3858_s21, %s3858_s21 }
   0x7   :  { %p3865_p3 = por %p3864_p2, %p3863_p1 }
   0x9   :  { %p3866_p4 = pnand %p3865_p3, %p3859_p0 }
   0xb   :  { %3869 = shalt.err (!%p3866_p4)
}
   0xc   :  { %s3938_s22 = smov 192   ;;  %s3939_s23 = smov 12  }
   0xd   :  { %50 = dma.hbm_to_vmem [thread:$0]  %s5071_s5, 3072, %s45_s18, [#allocation10], %s3938_s22, %s3938_s22, %s3939_s23  }
   0xe   :  { %s3878_s26 = scalar_lea.vmem %s29_s20, 3072  ;;  %p3883_p6 = scmp.lt.s32.totalorder %s29_s20, %s29_s20 }
   0xf   :  { %p3879_p5 = scmp.ne.s32.totalorder %s29_s20, %s3878_s26  ;;  %p3884_p7 = scmp.lt.s32.totalorder %s3878_s26, %s3878_s26 }
  0x11   :  { %p3885_p8 = por %p3884_p7, %p3883_p6 }
  0x13   :  { %p3886_p9 = pnand %p3885_p8, %p3879_p5 }
  0x15   :  { %3889 = shalt.err (!%p3886_p9)
}
  0x16   :  { %34 = dma.hbm_to_vmem [thread:$0]  %s5068_s2, 3072, %s29_s20, [#allocation7], %s3938_s22, %s3938_s22, %s3939_s23  }
  0x17   :  { %s3940_s29 = smov [#allocation11]  }
  0x18   :  { %s56_s30 = sshll.u32 %s3940_s29, 4  ;;  %s57_s30 = int_to_ptr.vmem [resolvable:$true] %s56_s30 }
  0x19   :  { %s3898_s12 = scalar_lea.vmem %s57_s30, 3072  ;;  %p3903_p11 = scmp.lt.s32.totalorder %s57_s30, %s57_s30 }
  0x1a   :  { %p3899_p10 = scmp.ne.s32.totalorder %s57_s30, %s3898_s12  ;;  %p3904_p12 = scmp.lt.s32.totalorder %s3898_s12, %s3898_s12 }
  0x1c   :  { %p3905_p13 = por %p3904_p12, %p3903_p11 }
  0x1e   :  { %p3906_p0 = pnand %p3905_p13, %p3899_p10 }
  0x20   :  { %3909 = shalt.err (!%p3906_p0)
}
  0x21   :  { %62 = dma.hbm_to_vmem [thread:$0]  %s5072_s6, 3072, %s57_s30, [#allocation10], %s3938_s22, %s3938_s22, %s3939_s23  }
  0x22   :  { %3930 = dma.done.wait [#allocation7], 3072  }
  0x23   :  { %3931 = vsyncadd [#allocation7], 4294964224 }
  0x24   :  { %3932 = dma.done.wait [#allocation10], 6144  }
  0x25   :  { %3933 = vsyncadd [#allocation10], 4294961152  ;;  %v102_v0 = vlaneseq  ;;  %v3941_v1 = vmov 1983009808   ;;  %v5083_v3 = vmov 0   ;;  %vm147_vm0 = vcmask 1041408  }
  0x26   :  { %v120_v2 = vunpack.c.l.s4 %v3941_v1  ;;  %189 = vmatprep.mubr.bf16.mxu0 %v5083_v3  ;;  %v99_v7 = vld [vmem:[%s5067_s1] sm:$0x3f]  ;;  %v88_v10 = vld [vmem:[%s5066_s0 + $0x8] sm:$0xff]  ;;  %vm134_vm1 = vcmask 31744   ;;  %v89_v17 = vld [vmem:[%s5066_s0 + $0x10] sm:$0xff]  ;;  %v5085_v25 = vmov 0.0  }
  0x27   :  { %v4017_v4 = vshrl.u32 %v102_v0, 7  ;;  %v87_v9 = vld [vmem:[%s5066_s0] sm:$0xff]  ;;  %v4030_v14 = vld [vmem:[#allocation6 + $0xac] ss:$12 sps:$4 sm:$0xff]   ;;  %v118_v15 = vcombine.high %v99_v7, %v99_v7  ;;  %v4032_v16 = vld [vmem:[#allocation6 + $0xa8] ss:$12 sps:$4 sm:$0xff]  }
  0x28   :  { %v121_v5 = vunpack.c.0.s8 %v120_v2  ;;  %v95_v11 = vpack.c.bf16 %v88_v10, %v87_v9  ;;  %v90_v19 = vld [vmem:[%s5066_s0 + $0x18] sm:$0xff]  ;;  %v4043_v20 = vld [vmem:[#allocation6 + $0x94] ss:$12 sps:$4 sm:$0xff]   ;;  %v92_v23 = vld [vmem:[%s5066_s0 + $0x28] sm:$0xff]  ;;  %vm3944_vm2 = vmmov 0   ;;  %v5081_v51 = vmov 0.0|0.0  }
  0x29   :  { %5089 = vst [vmem:[#allocation16_spill] sm:$0xff] %v4017_v4  ;;  %v91_v21 = vld [vmem:[%s5066_s0 + $0x20] sm:$0xff]  ;;  %v96_v24 = vpack.c.bf16 %v90_v19, %v89_v17  ;;  %v4056_v26 = vld [vmem:[#allocation6 + $0x90] ss:$12 sps:$4 sm:$0xff]   ;;  %v4088_v37 = vld [vmem:[#allocation6 + $0x4c] ss:$12 sps:$4 sm:$0xff]  }
  0x2a   :  { %v124_v6 = vsub.s32 %v121_v5, %v4017_v4  ;;  %3153 = vmatprep.mubr.msk.bf16.mxu1 %vm134_vm1, %v95_v11  ;;  %v97_v27 = vpack.c.bf16 %v92_v23, %v91_v21  ;;  %v4060_v28 = vld [vmem:[#allocation6 + $0x7c] ss:$12 sps:$4 sm:$0xff]   ;;  %v4063_v29 = vld [vmem:[#allocation6 + $0x78] ss:$12 sps:$4 sm:$0xff]   ;;  %v93_v30 = vld [vmem:[%s5066_s0 + $0x30] sm:$0xff]  ;;  %v5078_v52 = vsub.s32 2, %v4017_v4 }
  0x2b   :  { %v94_v31 = vld [vmem:[%s5066_s0 + $0x38] sm:$0xff]  ;;  %v4076_v33 = vld [vmem:[#allocation6 + $0x64] ss:$12 sps:$4 sm:$0xff]   ;;  %v4084_v36 = vld [vmem:[#allocation6 + $0x60] ss:$12 sps:$4 sm:$0xff]   ;;  %v5080_v54 = vsub.s32 0, %v4017_v4 }
  0x2c   :  { %v125_v8 = vrot.slane %v99_v7, %v124_v6  ;;  %v132_v18 = vrot.slane %v118_v15, %v124_v6  ;;  %v4073_v32 = vld [vmem:[#allocation6 + $0xb0] ss:$12 sps:$4 sm:$0xff]   ;;  %v4079_v34 = vld [vmem:[#allocation6 + $0x98] ss:$12 sps:$4 sm:$0xff]   ;;  %v98_v35 = vpack.c.bf16 %v94_v31, %v93_v30  ;;  %v4091_v38 = vld [vmem:[#allocation6 + $0x48] ss:$12 sps:$4 sm:$0xff]  }
  0x2d   :  { %v4094_v39 = vld [vmem:[#allocation6 + $0x80] ss:$12 sps:$4 sm:$0xff]   ;;  %v4102_v41 = vld [vmem:[#allocation6 + $0x68] ss:$12 sps:$4 sm:$0xff]   ;;  %v4105_v42 = vld [vmem:[#allocation6 + $0x30] ss:$12 sps:$4 sm:$0xff]  }
  0x2e   :  { %v133_v12 = vcombine.high %v125_v8, %v125_v8  ;;  %v149_v13 = vsel %vm147_vm0, %v125_v8, 0  ;;  %3525 = vmatprep.subr.msk.bf16.mxu1 %vm147_vm0, %v132_v18  ;;  %v155_v22 = vsel %vm147_vm0, %v132_v18, 0  ;;  %v4098_v40 = vld [vmem:[#allocation6 + $0x34] ss:$12 sps:$4 sm:$0xff]   ;;  %v4109_v43 = vld [vmem:[#allocation6 + $0x1c] ss:$12 sps:$4 sm:$0xff]  }
  0x2f   :  { %3152 = vmatpush3.bf16.msra.mxu1 %v155_v22  ;;  %v4114_v44 = vld [vmem:[#allocation6 + $0x50] ss:$12 sps:$4 sm:$0xff]   ;;  %v4117_v45 = vld [vmem:[#allocation6 + $0x18] ss:$12 sps:$4 sm:$0xff]   ;;  %v4127_v48 = vld [vmem:[#allocation6] ss:$12 sps:$4 sm:$0xff]  }
  0x30   :  { %2857 = vmatprep.subr.msk.bf16.mxu0 %vm147_vm0, %v133_v12  ;;  %3161 = vmatprep.subr.bf16.mxu1 %v5085_v25  ;;  %v4120_v46 = vld [vmem:[#allocation6 + $0x4] ss:$12 sps:$4 sm:$0xff]   ;;  %v4134_v49 = vld [vmem:[#allocation6 + $0x20] ss:$12 sps:$4 sm:$0xff]   ;;  %v4140_v50 = vld [vmem:[#allocation6 + $0x8] ss:$12 sps:$4 sm:$0xff]  }
  0x31   :  { %172 = vmatpush1.bf16.msra.mxu0 %v149_v13  ;;  %v4124_v47 = vld [vmem:[#allocation6 + $0x38] ss:$12 sps:$4 sm:$0xff]   ;;  %v100_v53 = vld [vmem:[%s5069_s3] sm:$0x7]  ;;  %v5079_v57 = vsub.s32 1, %v4017_v4  ;;  %s3946_s28 = smov [#allocation12]  }
  0x32   :  { %491 = vmatprep.subr.bf16.mxu0 %v4030_v14  ;;  %3154 = vmatmul.mubr.msk.bf16.vlgmr.msra.gmra.mxu1 %vm134_vm1, %v96_v24  ;;  %v4191_v55 = vrot.slane %v100_v53, %v5078_v52  ;;  %v105_v60 = vrot.slane %v100_v53, %v5080_v54  ;;  %s2847_s0 = sshll.u32 %s3946_s28, 4  ;;  %s2848_s0 = int_to_ptr.vmem [resolvable:$true] %s2847_s0 }
  0x33   :  { %3157 = vmatprep.mubr.msk.bf16.mxu1 %vm134_vm1, %v97_v27  ;;  %3162 = vmatpush3.bf16.msra.mxu1 %v4073_v32  ;;  %v109_v0 = vrot.slane %v100_v53, %v5079_v57  ;;  %s3910_s29 = scalar_lea.vmem %s2848_s0, 128  ;;  %p3915_p2 = scmp.lt.s32.totalorder %s2848_s0, %s2848_s0 }
  0x34   :  { %2858 = vmatmul.mubr.msk.bf16.vlgmr.msra.gmra.mxu0 %vm134_vm1, %v95_v11  ;;  %3163 = vmatprep.subr.bf16.mxu1 %v5085_v25  ;;  %p3911_p1 = scmp.ne.s32.totalorder %s2848_s0, %s3910_s29  ;;  %p3916_p3 = scmp.lt.s32.totalorder %s3910_s29, %s3910_s29 }
  0x35   :  { %492 = vmatpush1.bf16.msra.mxu0 %v4032_v16  ;;  %199 = vmatprep.mubr.bf16.mxu0 %v5083_v3 }
  0x36   :  { %493 = vmatprep.subr.bf16.mxu0 %v4043_v20  ;;  %p3917_p4 = por %p3916_p3, %p3915_p2 }
  0x37   :  { %3164 = vmatpush3.bf16.msra.mxu1 %v4079_v34 }
  0x38   :  { %3165 = vmatprep.subr.bf16.mxu1 %v5085_v25  ;;  %p3918_p5 = pnand %p3917_p4, %p3911_p1 }
  0x39   :  { %494 = vmatpush1.bf16.msra.mxu0 %v4056_v26 }
  0x3a   :  { %495 = vmatprep.subr.bf16.mxu0 %v4060_v28  ;;  %3158 = vmatmul.mubr.msk.bf16.gmra.mxu1 %vm134_vm1, %v98_v35 }
  0x3b   :  { %3177 = vmatprep.mubr.msk.bf16.mxu1 %vm3944_vm2, %v5085_v25  ;;  %3166 = vmatpush3.bf16.msra.mxu1 %v4094_v39 }
  0x3c   :  { %2859 = vmatmul.mubr.msk.bf16.gmra.mxu0 %vm134_vm1, %v96_v24  ;;  %3167 = vmatprep.subr.bf16.mxu1 %v5085_v25 }
  0x3d   :  { %496 = vmatpush1.bf16.msra.mxu0 %v4063_v29  ;;  %209 = vmatprep.mubr.bf16.mxu0 %v5083_v3 }
  0x3e   :  { %497 = vmatprep.subr.bf16.mxu0 %v4076_v33 }
  0x3f   :  { %3168 = vmatpush3.bf16.msra.mxu1 %v4102_v41 }
  0x40   :  { %3169 = vmatprep.subr.bf16.mxu1 %v5085_v25 }
  0x41   :  { %498 = vmatpush1.bf16.msra.mxu0 %v4084_v36 }
  0x42   :  { %499 = vmatprep.subr.bf16.mxu0 %v4088_v37 }
  0x43   :  { %3170 = vmatpush3.bf16.msra.mxu1 %v4114_v44 }
  0x44   :  { %2860 = vmatmul.mubr.msk.bf16.gmra.mxu0 %vm134_vm1, %v97_v27  ;;  %3171 = vmatprep.subr.bf16.mxu1 %v5085_v25 }
  0x45   :  { %500 = vmatpush1.bf16.msra.mxu0 %v4091_v38  ;;  %219 = vmatprep.mubr.bf16.mxu0 %v5083_v3 }
  0x46   :  { %501 = vmatprep.subr.bf16.mxu0 %v4098_v40 }
  0x47   :  { %3172 = vmatpush3.bf16.msra.mxu1 %v4124_v47 }
  0x48   :  { %3173 = vmatprep.subr.bf16.mxu1 %v5085_v25 }
  0x49   :  { %502 = vmatpush1.bf16.msra.mxu0 %v4105_v42 }
  0x4a   :  { %503 = vmatprep.subr.bf16.mxu0 %v4109_v43 }
  0x4b   :  { %3174 = vmatpush3.bf16.msra.mxu1 %v4134_v49 }
  0x4c   :  { %2861 = vmatmul.mubr.msk.bf16.gmra.mxu0 %vm134_vm1, %v98_v35  ;;  %3175 = vmatprep.subr.bf16.mxu1 %v5085_v25 }
  0x4d   :  { %504 = vmatpush1.bf16.msra.mxu0 %v4117_v45  ;;  %523 = vmatprep.mubr.bf16.mxu0 %v5083_v3 }
  0x4e   :  { %505 = vmatprep.subr.bf16.mxu0 %v4120_v46 }
  0x4f   :  { %3176 = vmatpush3.bf16.msra.mxu1 %v4140_v50 }
  0x50   :  { %3181 = vmatprep.subr.bf16.mxu1 %v5085_v25 }
  0x51   :  { %506 = vmatpush1.bf16.msra.mxu0 %v4127_v48 }
  0x52   :  { %599 = vmatprep.subr.bf16.mxu0 %v4030_v14  ;;  %3178 = vmatmul.mubr.bf16.vlgmr.msra.gmra.mxu1 %v5081_v51 }
  0x53   :  { %3182 = vmatpush3.bf16.msra.mxu1 %v4073_v32  ;;  %3197 = vmatprep.mubr.msk.bf16.mxu1 %vm3944_vm2, %v5085_v25 }
  0x54   :  { %524 = vmatmul.mubr.bf16.vlgmr.msra.gmra.mxu0 %v5081_v51  ;;  %3183 = vmatprep.subr.bf16.mxu1 %v5085_v25 }
  0x55   :  { %600 = vmatpush1.bf16.msra.mxu0 %v4032_v16  ;;  %631 = vmatprep.mubr.bf16.mxu0 %v5083_v3 }
  0x56   :  { %601 = vmatprep.subr.bf16.mxu0 %v4043_v20 }
  0x57   :  { %3184 = vmatpush3.bf16.msra.mxu1 %v4079_v34 }
  0x58   :  { %3185 = vmatprep.subr.bf16.mxu1 %v5085_v25 }
  0x59   :  { %602 = vmatpush1.bf16.msra.mxu0 %v4056_v26 }
  0x5a   :  { %603 = vmatprep.subr.bf16.mxu0 %v4060_v28 }
  0x5b   :  { %3186 = vmatpush3.bf16.msra.mxu1 %v4094_v39 }
  0x5c   :  { %3187 = vmatprep.subr.bf16.mxu1 %v5085_v25 }
  0x5d   :  { %604 = vmatpush1.bf16.msra.mxu0 %v4063_v29 }
  0x5e   :  { %605 = vmatprep.subr.bf16.mxu0 %v4076_v33 }
  0x5f   :  { %3188 = vmatpush3.bf16.msra.mxu1 %v4102_v41 }
  0x60   :  { %3189 = vmatprep.subr.bf16.mxu1 %v5085_v25 }
  0x61   :  { %606 = vmatpush1.bf16.msra.mxu0 %v4084_v36 }
  0x62   :  { %607 = vmatprep.subr.bf16.mxu0 %v4088_v37 }
  0x63   :  { %3190 = vmatpush3.bf16.msra.mxu1 %v4114_v44 }
  0x64   :  { %3191 = vmatprep.subr.bf16.mxu1 %v5085_v25 }
  0x65   :  { %608 = vmatpush1.bf16.msra.mxu0 %v4091_v38 }
  0x66   :  { %609 = vmatprep.subr.bf16.mxu0 %v4098_v40 }
  0x67   :  { %3192 = vmatpush3.bf16.msra.mxu1 %v4124_v47 }
  0x68   :  { %3193 = vmatprep.subr.bf16.mxu1 %v5085_v25 }
  0x69   :  { %610 = vmatpush1.bf16.msra.mxu0 %v4105_v42 }
  0x6a   :  { %611 = vmatprep.subr.bf16.mxu0 %v4109_v43 }
  0x6b   :  { %3194 = vmatpush3.bf16.msra.mxu1 %v4134_v49 }
  0x6c   :  { %3195 = vmatprep.subr.bf16.mxu1 %v5085_v25 }
  0x6d   :  { %612 = vmatpush1.bf16.msra.mxu0 %v4117_v45 }
  0x6e   :  { %613 = vmatprep.subr.bf16.mxu0 %v4120_v46 }
  0x6f   :  { %3196 = vmatpush3.bf16.msra.mxu1 %v4140_v50 }
  0x70   :  { %3201 = vmatprep.subr.bf16.mxu1 %v5085_v25 }
  0x71   :  { %614 = vmatpush1.bf16.msra.mxu0 %v4127_v48 }
  0x72   :  { %707 = vmatprep.subr.bf16.mxu0 %v4030_v14 }
  0xf2   :  { %v3155_v59 = vpop.f32.mrf.mxu1 }
  0xf3   :  { %v4197_v61 = vadd.f32 %v3155_v59, %v4191_v55 }
  0xf4   :  { %v191_v56 = vpop.f32.mrf.mxu0  ;;  %v4199_v63 = vpop.f32.mrf.mxu1 }
  0xf5   :  { %v192_v52 = vadd.f32 %v191_v56, %v105_v60 }
  0xf6   :  { %v193_v58 = vpop.f32.mrf.mxu0  ;;  %v3156_v5 = vpop.f32.mrf.mxu1 }
  0xf7   :  { %v4208_v7 = vadd.f32 %v3156_v5, %v4191_v55 }
  0xf8   :  { %v195_v62 = vpop.f32.mrf.mxu0  ;;  %v267_v9 = vpop.f32.mrf.mxu1 }
  0xf9   :  { %v4203_v1 = vadd.f32 %v195_v62, %v105_v60  ;;  %v4213_v11 = vadd.f32 %v267_v9, %v4191_v55 }
  0xfa   :  { %v197_v2 = vpop.f32.mrf.mxu0  ;;  %v3159_v13 = vpop.f32.mrf.mxu1 }
  0xfb   :  { %v4205_v6 = vadd.f32 %v197_v2, %v109_v0  ;;  %v4218_v17 = vadd.f32 %v3159_v13, %v4191_v55 }
  0xfc   :  { %v201_v8 = vpop.f32.mrf.mxu0  ;;  %v280_v19 = vpop.f32.mrf.mxu1 }
  0xfd   :  { %v4210_v10 = vadd.f32 %v201_v8, %v105_v60  ;;  %5090 = vst [vmem:[#allocation17_spill] sm:$0xff] %v4218_v17  ;;  %v4223_v22 = vadd.f32 %v280_v19, %v4191_v55 }
  0xfe   :  { %v203_v12 = vpop.f32.mrf.mxu0  ;;  %v3160_v24 = vpop.f32.mrf.mxu1 }
  0xff   :  { %v4215_v15 = vadd.f32 %v203_v12, %v109_v0  ;;  %v4228_v30 = vadd.f32 %v3160_v24, %v4191_v55 }
 0x100   :  { %v205_v18 = vpop.f32.mrf.mxu0  ;;  %v283_v35 = vpop.f32.mrf.mxu1 }
 0x101   :  { %v4220_v21 = vadd.f32 %v205_v18, %v105_v60  ;;  %5091 = vst [vmem:[#allocation18_spill] sm:$0xff] %v4228_v30  ;;  %v4233_v59 = vadd.f32 %v283_v35, %v4191_v55 }
 0x102   :  { %v207_v23 = vpop.f32.mrf.mxu0 }
 0x103   :  { %v4225_v27 = vadd.f32 %v207_v23, %v109_v0 }
 0x104   :  { %v211_v31 = vpop.f32.mrf.mxu0 }
 0x105   :  { %v4230_v53 = vadd.f32 %v211_v31, %v105_v60 }
 0x106   :  { %v213_v62 = vpop.f32.mrf.mxu0 }
 0x107   :  { %v4235_v2 = vadd.f32 %v213_v62, %v109_v0 }
 0x108   :  { %v215_v5 = vpop.f32.mrf.mxu0 }
 0x109   :  { %v4237_v8 = vadd.f32 %v215_v5, %v105_v60 }
 0x10a   :  { %v217_v9 = vpop.f32.mrf.mxu0 }
 0x10b   :  { %v4239_v12 = vadd.f32 %v217_v9, %v109_v0  ;;  %v194_v9 = vadd.f32 %v193_v58, %v109_v0 }
 0x10c   :  { %v221_v13 = vpop.f32.mrf.mxu0 }
 0x10d   :  { %v4241_v18 = vadd.f32 %v221_v13, %v105_v60 }
 0x10e   :  { %v223_v19 = vpop.f32.mrf.mxu0 }
 0x10f   :  { %v4243_v23 = vadd.f32 %v223_v19, %v109_v0 }
 0x110   :  { %v225_v24 = vpop.f32.mrf.mxu0 }
 0x111   :  { %5092 = vst [vmem:[#allocation19_spill] sm:$0xff] %v4243_v23  ;;  %v4245_v31 = vadd.f32 %v225_v24, %v105_v60 }
 0x112   :  { %v227_v35 = vpop.f32.mrf.mxu0  ;;  %v566_v13 = vpop.f32.mrf.mxu1 }
 0x113   :  { %5093 = vst [vmem:[#allocation20_spill] sm:$0xff] %v4245_v31  ;;  %v4247_v57 = vadd.f32 %v227_v35, %v109_v0 }
 0x114   :  { %v525_v62 = vpop.f32.mrf.mxu0  ;;  %v3179_v30 = vpop.f32.mrf.mxu1 }
 0x115   :  { %v572_v54 = vadd.f32 %v525_v62, %v192_v52  ;;  %v4252_v52 = vld [vmem:[%s5070_s4] ss:$0 sm:$0xff] }
 0x116   :  { %v527_v5 = vpop.f32.mrf.mxu0  ;;  %v569_v19 = vpop.f32.mrf.mxu1 }
 0x117   :  { %v2891_v51 = vmul.f32 -1.442695, %v572_v54  ;;  %v579_v4 = vadd.f32 %v527_v5, %v194_v9  ;;  %v265_v54 = vadd.f32 %v4199_v63, %v4191_v55  ;;  %v5094_v55 = vmov 0.0  }
 0x118   :  { %v529_v3 = vpop.f32.mrf.mxu0  ;;  %v3180_v23 = vpop.f32.mrf.mxu1  ;;  %v5095_v63 = vmov 0  }
 0x119   :  { %3642 = vpow2.f32 %v2891_v51  ;;  %v2892_v17 = vmul.f32 -1.442695, %v579_v4  ;;  %v586_v51 = vadd.f32 %v4252_v52, %v566_v13 }
 0x11a   :  { %v530_v25 = vpop.f32.mrf.mxu0 }
 0x11b   :  { %3644 = vpow2.f32 %v2892_v17 }
 0x126   :  { %v3643_v24 = vpop.eup %3642 }
 0x127   :  { %v576_v31 = vadd.f32 1.0, %v3643_v24 }
 0x128   :  { %v3645_v56 = vpop.eup %3644 }
 0x129   :  { %3646 = vrcp.f32 %v576_v31  ;;  %v583_v3 = vadd.f32 1.0, %v3645_v56 }
 0x12b   :  { %3648 = vrcp.f32 %v583_v3 }
 0x136   :  { %v3647_v25 = vpop.eup %3646 }
 0x137   :  { %v587_v4 = vmul.f32 %v3647_v25, %v586_v51 }
 0x138   :  { %v3649_v60 = vpop.eup %3648 }
 0x139   :  { %v588_v58 = vadd.f32 %v587_v4, %v265_v54  ;;  %v590_v0 = vsub.f32 1.0, %v3649_v60  ;;  %v592_v23 = vmul.f32 0.0, %v3649_v60 }
 0x13b   :  { %3650 = vtanh.f32 %v588_v58 }
 0x148   :  { %v3651_v17 = vpop.eup %3650 }
 0x149   :  { %v591_v30 = vmul.f32 %v3651_v17, %v590_v0 }
 0x14b   :  { %v4257_v31 = vadd.f32 %v592_v23, %v591_v30 }
 0x14d   :  { %v598_v35 = vpack.c.bf16 %v4257_v31, %v4257_v31 }
 0x14f   :  { %632 = vmatmul.mubr.bf16.vlgmr.msra.gmra.mxu0 %v598_v35  ;;  %3198 = vmatmul.mubr.bf16.vlgmr.msra.gmra.mxu1 %v598_v35 }
 0x150   :  { %708 = vmatpush1.bf16.msra.mxu0 %v4032_v16  ;;  %3202 = vmatpush3.bf16.msra.mxu1 %v4073_v32 }
 0x151   :  { %709 = vmatprep.subr.bf16.mxu0 %v4043_v20  ;;  %3203 = vmatprep.subr.bf16.mxu1 %v5094_v55 }
 0x152   :  { %739 = vmatprep.mubr.bf16.mxu0 %v5095_v63  ;;  %3217 = vmatprep.mubr.msk.bf16.mxu1 %vm3944_vm2, %v5094_v55 }
 0x154   :  { %710 = vmatpush1.bf16.msra.mxu0 %v4056_v26  ;;  %3204 = vmatpush3.bf16.msra.mxu1 %v4079_v34 }
 0x155   :  { %711 = vmatprep.subr.bf16.mxu0 %v4060_v28  ;;  %3205 = vmatprep.subr.bf16.mxu1 %v5094_v55 }
 0x158   :  { %712 = vmatpush1.bf16.msra.mxu0 %v4063_v29  ;;  %3206 = vmatpush3.bf16.msra.mxu1 %v4094_v39 }
 0x159   :  { %713 = vmatprep.subr.bf16.mxu0 %v4076_v33  ;;  %3207 = vmatprep.subr.bf16.mxu1 %v5094_v55 }
 0x15c   :  { %714 = vmatpush1.bf16.msra.mxu0 %v4084_v36  ;;  %3208 = vmatpush3.bf16.msra.mxu1 %v4102_v41 }
 0x15d   :  { %715 = vmatprep.subr.bf16.mxu0 %v4088_v37  ;;  %3209 = vmatprep.subr.bf16.mxu1 %v5094_v55 }
 0x160   :  { %716 = vmatpush1.bf16.msra.mxu0 %v4091_v38  ;;  %3210 = vmatpush3.bf16.msra.mxu1 %v4114_v44 }
 0x161   :  { %717 = vmatprep.subr.bf16.mxu0 %v4098_v40  ;;  %3211 = vmatprep.subr.bf16.mxu1 %v5094_v55 }
 0x164   :  { %718 = vmatpush1.bf16.msra.mxu0 %v4105_v42  ;;  %3212 = vmatpush3.bf16.msra.mxu1 %v4124_v47 }
 0x165   :  { %719 = vmatprep.subr.bf16.mxu0 %v4109_v43  ;;  %3213 = vmatprep.subr.bf16.mxu1 %v5094_v55 }
 0x168   :  { %720 = vmatpush1.bf16.msra.mxu0 %v4117_v45  ;;  %3214 = vmatpush3.bf16.msra.mxu1 %v4134_v49 }
 0x169   :  { %721 = vmatprep.subr.bf16.mxu0 %v4120_v46  ;;  %3215 = vmatprep.subr.bf16.mxu1 %v5094_v55 }
 0x16c   :  { %722 = vmatpush1.bf16.msra.mxu0 %v4127_v48  ;;  %3216 = vmatpush3.bf16.msra.mxu1 %v4140_v50 }
 0x16d   :  { %815 = vmatprep.subr.bf16.mxu0 %v4030_v14  ;;  %3221 = vmatprep.subr.bf16.mxu1 %v5094_v55 }
 0x20f   :  { %v633_v62 = vpop.f32.mrf.mxu0  ;;  %v674_v5 = vpop.f32.mrf.mxu1 }
 0x210   :  { %v680_v9 = vadd.f32 %v633_v62, %v4203_v1  ;;  %v694_v30 = vadd.f32 %v4252_v52, %v674_v5 }
 0x211   :  { %v635_v13 = vpop.f32.mrf.mxu0  ;;  %v3199_v19 = vpop.f32.mrf.mxu1 }
 0x212   :  { %v2893_v24 = vmul.f32 -1.442695, %v680_v9  ;;  %v687_v54 = vadd.f32 %v635_v13, %v4205_v6 }
 0x213   :  { %v637_v56 = vpop.f32.mrf.mxu0  ;;  %v677_v3 = vpop.f32.mrf.mxu1 }
 0x214   :  { %3652 = vpow2.f32 %v2893_v24  ;;  %v2894_v4 = vmul.f32 -1.442695, %v687_v54 }
 0x215   :  { %v638_v51 = vpop.f32.mrf.mxu0  ;;  %v3200_v25 = vpop.f32.mrf.mxu1 }
 0x216   :  { %3654 = vpow2.f32 %v2894_v4 }
 0x221   :  { %v3653_v58 = vpop.eup %3652 }
 0x222   :  { %v684_v60 = vadd.f32 1.0, %v3653_v58 }
 0x223   :  { %v3655_v0 = vpop.eup %3654 }
 0x224   :  { %3656 = vrcp.f32 %v684_v60  ;;  %v691_v17 = vadd.f32 1.0, %v3655_v0 }
 0x226   :  { %3658 = vrcp.f32 %v691_v17 }
 0x231   :  { %v3657_v1 = vpop.eup %3656 }
 0x232   :  { %v695_v23 = vmul.f32 %v3657_v1, %v694_v30 }
 0x233   :  { %v3659_v62 = vpop.eup %3658 }
 0x234   :  { %v696_v35 = vadd.f32 %v695_v23, %v4213_v11  ;;  %v698_v9 = vsub.f32 1.0, %v3659_v62  ;;  %v700_v6 = vmul.f32 %v3659_v62, %v4257_v31 }
 0x236   :  { %3660 = vtanh.f32 %v696_v35 }
 0x243   :  { %v3661_v19 = vpop.eup %3660 }
 0x244   :  { %v699_v24 = vmul.f32 %v3661_v19, %v698_v9 }
 0x246   :  { %v4301_v13 = vadd.f32 %v700_v6, %v699_v24 }
 0x248   :  { %v706_v56 = vpack.c.bf16 %v4301_v13, %v4301_v13 }
 0x24a   :  { %740 = vmatmul.mubr.bf16.vlgmr.msra.gmra.mxu0 %v706_v56  ;;  %3218 = vmatmul.mubr.bf16.vlgmr.msra.gmra.mxu1 %v706_v56 }
 0x24b   :  { %816 = vmatpush1.bf16.msra.mxu0 %v4032_v16  ;;  %3222 = vmatpush3.bf16.msra.mxu1 %v4073_v32 }
 0x24c   :  { %817 = vmatprep.subr.bf16.mxu0 %v4043_v20  ;;  %3223 = vmatprep.subr.bf16.mxu1 %v5094_v55 }
 0x24d   :  { %847 = vmatprep.mubr.bf16.mxu0 %v5095_v63  ;;  %3237 = vmatprep.mubr.msk.bf16.mxu1 %vm3944_vm2, %v5094_v55 }
 0x24f   :  { %818 = vmatpush1.bf16.msra.mxu0 %v4056_v26  ;;  %3224 = vmatpush3.bf16.msra.mxu1 %v4079_v34 }
 0x250   :  { %819 = vmatprep.subr.bf16.mxu0 %v4060_v28  ;;  %3225 = vmatprep.subr.bf16.mxu1 %v5094_v55 }
 0x253   :  { %820 = vmatpush1.bf16.msra.mxu0 %v4063_v29  ;;  %3226 = vmatpush3.bf16.msra.mxu1 %v4094_v39 }
 0x254   :  { %821 = vmatprep.subr.bf16.mxu0 %v4076_v33  ;;  %3227 = vmatprep.subr.bf16.mxu1 %v5094_v55 }
 0x257   :  { %822 = vmatpush1.bf16.msra.mxu0 %v4084_v36  ;;  %3228 = vmatpush3.bf16.msra.mxu1 %v4102_v41 }
 0x258   :  { %823 = vmatprep.subr.bf16.mxu0 %v4088_v37  ;;  %3229 = vmatprep.subr.bf16.mxu1 %v5094_v55 }
 0x25b   :  { %824 = vmatpush1.bf16.msra.mxu0 %v4091_v38  ;;  %3230 = vmatpush3.bf16.msra.mxu1 %v4114_v44 }
 0x25c   :  { %825 = vmatprep.subr.bf16.mxu0 %v4098_v40  ;;  %3231 = vmatprep.subr.bf16.mxu1 %v5094_v55 }
 0x25f   :  { %826 = vmatpush1.bf16.msra.mxu0 %v4105_v42  ;;  %3232 = vmatpush3.bf16.msra.mxu1 %v4124_v47 }
 0x260   :  { %827 = vmatprep.subr.bf16.mxu0 %v4109_v43  ;;  %3233 = vmatprep.subr.bf16.mxu1 %v5094_v55 }
 0x263   :  { %828 = vmatpush1.bf16.msra.mxu0 %v4117_v45  ;;  %3234 = vmatpush3.bf16.msra.mxu1 %v4134_v49 }
 0x264   :  { %829 = vmatprep.subr.bf16.mxu0 %v4120_v46  ;;  %3235 = vmatprep.subr.bf16.mxu1 %v5094_v55 }
 0x267   :  { %830 = vmatpush1.bf16.msra.mxu0 %v4127_v48  ;;  %3236 = vmatpush3.bf16.msra.mxu1 %v4140_v50 }
 0x268   :  { %923 = vmatprep.subr.bf16.mxu0 %v4030_v14  ;;  %3241 = vmatprep.subr.bf16.mxu1 %v5094_v55 }
 0x30a   :  { %v741_v11 = vpop.f32.mrf.mxu0  ;;  %v782_v5 = vpop.f32.mrf.mxu1 }
 0x30b   :  { %v788_v3 = vadd.f32 %v741_v11, %v4210_v10  ;;  %v802_v9 = vadd.f32 %v4252_v52, %v782_v5 }
 0x30c   :  { %v743_v51 = vpop.f32.mrf.mxu0  ;;  %v3219_v25 = vpop.f32.mrf.mxu1 }
 0x30d   :  { %v2895_v54 = vmul.f32 -1.442695, %v788_v3  ;;  %v795_v17 = vadd.f32 %v743_v51, %v4215_v15 }
 0x30e   :  { %v745_v4 = vpop.f32.mrf.mxu0  ;;  %v785_v58 = vpop.f32.mrf.mxu1 }
 0x30f   :  { %3662 = vpow2.f32 %v2895_v54  ;;  %v2896_v30 = vmul.f32 -1.442695, %v795_v17 }
 0x310   :  { %v746_v60 = vpop.f32.mrf.mxu0  ;;  %v3220_v0 = vpop.f32.mrf.mxu1 }
 0x311   :  { %3664 = vpow2.f32 %v2896_v30 }
 0x31c   :  { %v3663_v1 = vpop.eup %3662 }
 0x31d   :  { %v792_v23 = vadd.f32 1.0, %v3663_v1 }
 0x31e   :  { %v3665_v35 = vpop.eup %3664 }
 0x31f   :  { %3666 = vrcp.f32 %v792_v23  ;;  %v799_v62 = vadd.f32 1.0, %v3665_v35 }
 0x321   :  { %3668 = vrcp.f32 %v799_v62 }
 0x32c   :  { %v3667_v10 = vpop.eup %3666 }
 0x32d   :  { %v803_v19 = vmul.f32 %v3667_v10, %v802_v9 }
 0x32e   :  { %v3669_v6 = vpop.eup %3668 }
 0x32f   :  { %v804_v24 = vadd.f32 %v803_v19, %v4197_v61  ;;  %v806_v56 = vsub.f32 1.0, %v3669_v6  ;;  %v808_v15 = vmul.f32 %v3669_v6, %v4301_v13 }
 0x331   :  { %3670 = vtanh.f32 %v804_v24 }
 0x33e   :  { %v3671_v11 = vpop.eup %3670 }
 0x33f   :  { %v807_v3 = vmul.f32 %v3671_v11, %v806_v56 }
 0x341   :  { %v4345_v51 = vadd.f32 %v808_v15, %v807_v3 }
 0x343   :  { %v814_v25 = vpack.c.bf16 %v4345_v51, %v4345_v51 }
 0x345   :  { %848 = vmatmul.mubr.bf16.vlgmr.msra.gmra.mxu0 %v814_v25  ;;  %3238 = vmatmul.mubr.bf16.vlgmr.msra.gmra.mxu1 %v814_v25  ;;  %v4393_v25 = vld [vmem:[#allocation6 + $0xa8] ss:$12 sps:$4 sm:$0xff]  }
 0x346   :  { %924 = vmatpush1.bf16.msra.mxu0 %v4032_v16  ;;  %3242 = vmatpush3.bf16.msra.mxu1 %v4073_v32 }
 0x347   :  { %925 = vmatprep.subr.bf16.mxu0 %v4043_v20  ;;  %3243 = vmatprep.subr.bf16.mxu1 %v5094_v55 }
 0x348   :  { %955 = vmatprep.mubr.bf16.mxu0 %v5095_v63  ;;  %3257 = vmatprep.mubr.msk.bf16.mxu1 %vm3944_vm2, %v5094_v55 }
 0x34a   :  { %926 = vmatpush1.bf16.msra.mxu0 %v4056_v26  ;;  %3244 = vmatpush3.bf16.msra.mxu1 %v4079_v34 }
 0x34b   :  { %927 = vmatprep.subr.bf16.mxu0 %v4060_v28  ;;  %3245 = vmatprep.subr.bf16.mxu1 %v5094_v55 }
 0x34e   :  { %928 = vmatpush1.bf16.msra.mxu0 %v4063_v29  ;;  %3246 = vmatpush3.bf16.msra.mxu1 %v4094_v39 }
 0x34f   :  { %929 = vmatprep.subr.bf16.mxu0 %v4076_v33  ;;  %3247 = vmatprep.subr.bf16.mxu1 %v5094_v55 }
 0x352   :  { %930 = vmatpush1.bf16.msra.mxu0 %v4084_v36  ;;  %3248 = vmatpush3.bf16.msra.mxu1 %v4102_v41 }
 0x353   :  { %931 = vmatprep.subr.bf16.mxu0 %v4088_v37  ;;  %3249 = vmatprep.subr.bf16.mxu1 %v5094_v55 }
 0x356   :  { %932 = vmatpush1.bf16.msra.mxu0 %v4091_v38  ;;  %3250 = vmatpush3.bf16.msra.mxu1 %v4114_v44 }
 0x357   :  { %933 = vmatprep.subr.bf16.mxu0 %v4098_v40  ;;  %3251 = vmatprep.subr.bf16.mxu1 %v5094_v55 }
 0x35a   :  { %934 = vmatpush1.bf16.msra.mxu0 %v4105_v42  ;;  %3252 = vmatpush3.bf16.msra.mxu1 %v4124_v47 }
 0x35b   :  { %935 = vmatprep.subr.bf16.mxu0 %v4109_v43  ;;  %3253 = vmatprep.subr.bf16.mxu1 %v5094_v55 }
 0x35e   :  { %936 = vmatpush1.bf16.msra.mxu0 %v4117_v45  ;;  %3254 = vmatpush3.bf16.msra.mxu1 %v4134_v49 }
 0x35f   :  { %937 = vmatprep.subr.bf16.mxu0 %v4120_v46  ;;  %3255 = vmatprep.subr.bf16.mxu1 %v5094_v55 }
 0x362   :  { %938 = vmatpush1.bf16.msra.mxu0 %v4127_v48  ;;  %3256 = vmatpush3.bf16.msra.mxu1 %v4140_v50 }
 0x363   :  { %1031 = vmatprep.subr.bf16.mxu0 %v4030_v14  ;;  %3261 = vmatprep.subr.bf16.mxu1 %v5094_v55 }
 0x405   :  { %v849_v16 = vpop.f32.mrf.mxu0  ;;  %v890_v20 = vpop.f32.mrf.mxu1 }
 0x406   :  { %v896_v61 = vadd.f32 %v849_v16, %v4220_v21  ;;  %v910_v9 = vadd.f32 %v4252_v52, %v890_v20 }
 0x407   :  { %v851_v5 = vpop.f32.mrf.mxu0  ;;  %v3239_v54 = vpop.f32.mrf.mxu1 }
 0x408   :  { %v2897_v4 = vmul.f32 -1.442695, %v896_v61  ;;  %v903_v30 = vadd.f32 %v851_v5, %v4225_v27 }
 0x409   :  { %v853_v58 = vpop.f32.mrf.mxu0  ;;  %v893_v60 = vpop.f32.mrf.mxu1 }
 0x40a   :  { %3672 = vpow2.f32 %v2897_v4  ;;  %v2898_v1 = vmul.f32 -1.442695, %v903_v30  ;;  %v4444_v30 = vld [vmem:[#allocation6 + $0xb0] ss:$12 sps:$4 sm:$0xff]  }
 0x40b   :  { %v854_v0 = vpop.f32.mrf.mxu0  ;;  %v3240_v17 = vpop.f32.mrf.mxu1 }
 0x40c   :  { %3674 = vpow2.f32 %v2898_v1  ;;  %v4455_v1 = vld [vmem:[#allocation6 + $0x98] ss:$12 sps:$4 sm:$0xff]  }
 0x417   :  { %v3673_v23 = vpop.eup %3672 }
 0x418   :  { %v900_v14 = vadd.f32 1.0, %v3673_v23  ;;  %v4458_v23 = vld [vmem:[#allocation6 + $0x7c] ss:$12 sps:$4 sm:$0xff]  }
 0x419   :  { %v3675_v35 = vpop.eup %3674 }
 0x41a   :  { %3676 = vrcp.f32 %v900_v14  ;;  %v907_v62 = vadd.f32 1.0, %v3675_v35  ;;  %v4462_v14 = vld [vmem:[#allocation6 + $0x78] ss:$12 sps:$4 sm:$0xff]   ;;  %v4465_v35 = vld [vmem:[#allocation6 + $0x80] ss:$12 sps:$4 sm:$0xff]  }
 0x41c   :  { %3678 = vrcp.f32 %v907_v62  ;;  %v4468_v62 = vld [vmem:[#allocation6 + $0x64] ss:$12 sps:$4 sm:$0xff]  }
 0x427   :  { %v3677_v21 = vpop.eup %3676 }
 0x428   :  { %v911_v10 = vmul.f32 %v3677_v21, %v910_v9  ;;  %v4472_v9 = vld [vmem:[#allocation6 + $0x60] ss:$12 sps:$4 sm:$0xff]   ;;  %v4475_v21 = vld [vmem:[#allocation6 + $0x68] ss:$12 sps:$4 sm:$0xff]  }
 0x429   :  { %v3679_v24 = vpop.eup %3678 }
 0x42a   :  { %v912_v19 = vadd.f32 %v911_v10, %v4208_v7  ;;  %v914_v6 = vsub.f32 1.0, %v3679_v24  ;;  %v916_v27 = vmul.f32 %v3679_v24, %v4345_v51  ;;  %v4397_v7 = vld [vmem:[#allocation6 + $0x94] ss:$12 sps:$4 sm:$0xff]   ;;  %v4478_v10 = vld [vmem:[#allocation6 + $0x4c] ss:$12 sps:$4 sm:$0xff]  }
 0x42b   :  { %v4485_v24 = vld [vmem:[#allocation6 + $0x50] ss:$12 sps:$4 sm:$0xff]  }
 0x42c   :  { %3680 = vtanh.f32 %v912_v19  ;;  %v4482_v19 = vld [vmem:[#allocation6 + $0x48] ss:$12 sps:$4 sm:$0xff]  }
 0x439   :  { %v3681_v56 = vpop.eup %3680 }
 0x43a   :  { %v915_v11 = vmul.f32 %v3681_v56, %v914_v6  ;;  %v4488_v6 = vld [vmem:[#allocation6 + $0x34] ss:$12 sps:$4 sm:$0xff]   ;;  %v4492_v56 = vld [vmem:[#allocation6 + $0x30] ss:$12 sps:$4 sm:$0xff]  }
 0x43c   :  { %v4389_v3 = vadd.f32 %v916_v27, %v915_v11  ;;  %v4496_v11 = vld [vmem:[#allocation6 + $0x1c] ss:$12 sps:$4 sm:$0xff]   ;;  %v4500_v27 = vld [vmem:[#allocation6 + $0x18] ss:$12 sps:$4 sm:$0xff]  }
 0x43e   :  { %v922_v15 = vpack.c.bf16 %v4389_v3, %v4389_v3 }
 0x440   :  { %956 = vmatmul.mubr.bf16.vlgmr.msra.gmra.mxu0 %v922_v15  ;;  %3258 = vmatmul.mubr.bf16.vlgmr.msra.gmra.mxu1 %v922_v15 }
 0x441   :  { %1032 = vmatpush1.bf16.msra.mxu0 %v4393_v25  ;;  %3262 = vmatpush3.bf16.msra.mxu1 %v4073_v32 }
 0x442   :  { %1033 = vmatprep.subr.bf16.mxu0 %v4397_v7  ;;  %3263 = vmatprep.subr.bf16.mxu1 %v5094_v55 }
 0x443   :  { %1063 = vmatprep.mubr.bf16.mxu0 %v5095_v63  ;;  %3277 = vmatprep.mubr.msk.bf16.mxu1 %vm3944_vm2, %v5094_v55 }
 0x445   :  { %1034 = vmatpush1.bf16.msra.mxu0 %v4056_v26  ;;  %3264 = vmatpush3.bf16.msra.mxu1 %v4079_v34  ;;  %v4430_v26 = vld [vmem:[#allocation6 + $0xac] ss:$12 sps:$4 sm:$0xff]  }
 0x446   :  { %1035 = vmatprep.subr.bf16.mxu0 %v4060_v28  ;;  %3265 = vmatprep.subr.bf16.mxu1 %v5094_v55 }
 0x449   :  { %1036 = vmatpush1.bf16.msra.mxu0 %v4063_v29  ;;  %3266 = vmatpush3.bf16.msra.mxu1 %v4094_v39 }
 0x44a   :  { %1037 = vmatprep.subr.bf16.mxu0 %v4076_v33  ;;  %3267 = vmatprep.subr.bf16.mxu1 %v5094_v55 }
 0x44d   :  { %1038 = vmatpush1.bf16.msra.mxu0 %v4084_v36  ;;  %3268 = vmatpush3.bf16.msra.mxu1 %v4102_v41 }
 0x44e   :  { %1039 = vmatprep.subr.bf16.mxu0 %v4088_v37  ;;  %3269 = vmatprep.subr.bf16.mxu1 %v5094_v55 }
 0x451   :  { %1040 = vmatpush1.bf16.msra.mxu0 %v4091_v38  ;;  %3270 = vmatpush3.bf16.msra.mxu1 %v4114_v44 }
 0x452   :  { %1041 = vmatprep.subr.bf16.mxu0 %v4098_v40  ;;  %3271 = vmatprep.subr.bf16.mxu1 %v5094_v55 }
 0x455   :  { %1042 = vmatpush1.bf16.msra.mxu0 %v4105_v42  ;;  %3272 = vmatpush3.bf16.msra.mxu1 %v4124_v47 }
 0x456   :  { %1043 = vmatprep.subr.bf16.mxu0 %v4109_v43  ;;  %3273 = vmatprep.subr.bf16.mxu1 %v5094_v55 }
 0x459   :  { %1044 = vmatpush1.bf16.msra.mxu0 %v4117_v45  ;;  %3274 = vmatpush3.bf16.msra.mxu1 %v4134_v49 }
 0x45a   :  { %1045 = vmatprep.subr.bf16.mxu0 %v4120_v46  ;;  %3275 = vmatprep.subr.bf16.mxu1 %v5094_v55 }
 0x45d   :  { %1046 = vmatpush1.bf16.msra.mxu0 %v4127_v48  ;;  %3276 = vmatpush3.bf16.msra.mxu1 %v4140_v50 }
 0x45e   :  { %1139 = vmatprep.subr.bf16.mxu0 %v4430_v26  ;;  %3281 = vmatprep.subr.bf16.mxu1 %v5094_v55 }
 0x500   :  { %v957_v28 = vpop.f32.mrf.mxu0  ;;  %v998_v29 = vpop.f32.mrf.mxu1 }
 0x501   :  { %v1004_v32 = vadd.f32 %v957_v28, %v4230_v53  ;;  %v1018_v20 = vadd.f32 %v4252_v52, %v998_v29 }
 0x502   :  { %v959_v33 = vpop.f32.mrf.mxu0  ;;  %v3259_v34 = vpop.f32.mrf.mxu1 }
 0x503   :  { %v2899_v36 = vmul.f32 -1.442695, %v1004_v32  ;;  %v1011_v41 = vadd.f32 %v959_v33, %v4235_v2 }
 0x504   :  { %v961_v37 = vpop.f32.mrf.mxu0  ;;  %v1001_v38 = vpop.f32.mrf.mxu1 }
 0x505   :  { %3682 = vpow2.f32 %v2899_v36  ;;  %v2900_v42 = vmul.f32 -1.442695, %v1011_v41 }
 0x506   :  { %v962_v39 = vpop.f32.mrf.mxu0  ;;  %v3260_v40 = vpop.f32.mrf.mxu1 }
 0x507   :  { %3684 = vpow2.f32 %v2900_v42 }
 0x512   :  { %v3683_v43 = vpop.eup %3682 }
 0x513   :  { %v1008_v44 = vadd.f32 1.0, %v3683_v43 }
 0x514   :  { %v3685_v45 = vpop.eup %3684 }
 0x515   :  { %3686 = vrcp.f32 %v1008_v44  ;;  %v1015_v16 = vadd.f32 1.0, %v3685_v45 }
 0x517   :  { %3688 = vrcp.f32 %v1015_v16 }
 0x522   :  { %v3687_v53 = vpop.eup %3686 }
 0x523   :  { %v1019_v61 = vmul.f32 %v3687_v53, %v1018_v20 }
 0x524   :  { %v3689_v54 = vpop.eup %3688 }
 0x525   :  { %v1020_v5 = vadd.f32 %v1019_v61, %v4223_v22  ;;  %v1022_v4 = vsub.f32 1.0, %v3689_v54  ;;  %v1024_v2 = vmul.f32 %v3689_v54, %v4389_v3  ;;  %v4452_v22 = vld [vmem:[#allocation6 + $0x90] ss:$12 sps:$4 sm:$0xff]   ;;  %v3824_v61 = vld [vmem:[#allocation6] ss:$12 sps:$4 sm:$0xff]  }
 0x526   :  { %v3572_v54 = vld [vmem:[#allocation9 + $0xac] ss:$12 sps:$4 sm:$0xff]  }
 0x527   :  { %3690 = vtanh.f32 %v1020_v5  ;;  %v3825_v5 = vld [vmem:[#allocation6 + $0x8] ss:$12 sps:$4 sm:$0xff]  }
 0x534   :  { %v3691_v58 = vpop.eup %3690 }
 0x535   :  { %v1023_v60 = vmul.f32 %v3691_v58, %v1022_v4  ;;  %v3573_v4 = vld [vmem:[#allocation9 + $0xb0] ss:$12 sps:$4 sm:$0xff]  }
 0x537   :  { %v4439_v0 = vadd.f32 %v1024_v2, %v1023_v60 }
 0x539   :  { %v1030_v17 = vpack.c.bf16 %v4439_v0, %v4439_v0 }
 0x53b   :  { %1064 = vmatmul.mubr.bf16.vlgmr.msra.gmra.mxu0 %v1030_v17  ;;  %3278 = vmatmul.mubr.bf16.vlgmr.msra.gmra.mxu1 %v1030_v17 }
 0x53c   :  { %1140 = vmatpush1.bf16.msra.mxu0 %v4393_v25  ;;  %3282 = vmatpush3.bf16.msra.mxu1 %v4444_v30 }
 0x53d   :  { %1141 = vmatprep.subr.bf16.mxu0 %v4397_v7  ;;  %3283 = vmatprep.subr.bf16.mxu1 %v5094_v55 }
 0x53e   :  { %1171 = vmatprep.mubr.bf16.mxu0 %v5095_v63  ;;  %3297 = vmatprep.mubr.msk.bf16.mxu1 %vm3944_vm2, %v5094_v55 }
 0x540   :  { %1142 = vmatpush1.bf16.msra.mxu0 %v4452_v22  ;;  %3284 = vmatpush3.bf16.msra.mxu1 %v4455_v1 }
 0x541   :  { %1143 = vmatprep.subr.bf16.mxu0 %v4458_v23  ;;  %3285 = vmatprep.subr.bf16.mxu1 %v5094_v55 }
 0x544   :  { %1144 = vmatpush1.bf16.msra.mxu0 %v4462_v14  ;;  %3286 = vmatpush3.bf16.msra.mxu1 %v4465_v35 }
 0x545   :  { %1145 = vmatprep.subr.bf16.mxu0 %v4468_v62  ;;  %3287 = vmatprep.subr.bf16.mxu1 %v5094_v55 }
 0x548   :  { %1146 = vmatpush1.bf16.msra.mxu0 %v4472_v9  ;;  %3288 = vmatpush3.bf16.msra.mxu1 %v4475_v21 }
 0x549   :  { %1147 = vmatprep.subr.bf16.mxu0 %v4478_v10  ;;  %3289 = vmatprep.subr.bf16.mxu1 %v5094_v55 }
 0x54c   :  { %1148 = vmatpush1.bf16.msra.mxu0 %v4482_v19  ;;  %3290 = vmatpush3.bf16.msra.mxu1 %v4485_v24 }
 0x54d   :  { %1149 = vmatprep.subr.bf16.mxu0 %v4488_v6  ;;  %3291 = vmatprep.subr.bf16.mxu1 %v5094_v55 }
 0x550   :  { %1150 = vmatpush1.bf16.msra.mxu0 %v4492_v56  ;;  %3292 = vmatpush3.bf16.msra.mxu1 %v4124_v47 }
 0x551   :  { %1151 = vmatprep.subr.bf16.mxu0 %v4496_v11  ;;  %3293 = vmatprep.subr.bf16.mxu1 %v5094_v55 }
 0x554   :  { %1152 = vmatpush1.bf16.msra.mxu0 %v4500_v27  ;;  %3294 = vmatpush3.bf16.msra.mxu1 %v4134_v49 }
 0x555   :  { %1153 = vmatprep.subr.bf16.mxu0 %v4120_v46  ;;  %3295 = vmatprep.subr.bf16.mxu1 %v5094_v55 }
 0x558   :  { %1154 = vmatpush1.bf16.msra.mxu0 %v4127_v48  ;;  %3296 = vmatpush3.bf16.msra.mxu1 %v4140_v50 }
 0x559   :  { %1247 = vmatprep.subr.bf16.mxu0 %v4430_v26  ;;  %3301 = vmatprep.subr.bf16.mxu1 %v5094_v55 }
 0x5fb   :  { %v1065_v47 = vpop.f32.mrf.mxu0  ;;  %v1106_v15 = vpop.f32.mrf.mxu1 }
 0x5fc   :  { %v1112_v28 = vadd.f32 %v1065_v47, %v4237_v8  ;;  %v1126_v40 = vadd.f32 %v4252_v52, %v1106_v15 }
 0x5fd   :  { %v1067_v29 = vpop.f32.mrf.mxu0  ;;  %v3279_v32 = vpop.f32.mrf.mxu1 }
 0x5fe   :  { %v2901_v33 = vmul.f32 -1.442695, %v1112_v28  ;;  %v1119_v48 = vadd.f32 %v1067_v29, %v4239_v12 }
 0x5ff   :  { %v1069_v49 = vpop.f32.mrf.mxu0  ;;  %v1109_v34 = vpop.f32.mrf.mxu1 }
 0x600   :  { %3692 = vpow2.f32 %v2901_v33  ;;  %v2902_v37 = vmul.f32 -1.442695, %v1119_v48  ;;  %v3570_v34 = vld [vmem:[#allocation9 + $0xa8] ss:$12 sps:$4 sm:$0xff]   ;;  %v1360_v48 = vpack.c.bf16 %v4301_v13, %v4257_v31  ;;  %v3582_v31 = vld [vmem:[#allocation9 + $0x60] ss:$12 sps:$4 sm:$0xff]  }
 0x601   :  { %v1070_v46 = vpop.f32.mrf.mxu0  ;;  %v3280_v36 = vpop.f32.mrf.mxu1  ;;  %v3588_v13 = vld [vmem:[#allocation9 + $0x4c] ss:$12 sps:$4 sm:$0xff]  }
 0x602   :  { %3694 = vpow2.f32 %v2902_v37  ;;  %v3576_v36 = vld [vmem:[#allocation9 + $0x94] ss:$12 sps:$4 sm:$0xff]   ;;  %v3574_v37 = vld [vmem:[#allocation9 + $0x90] ss:$12 sps:$4 sm:$0xff]  }
 0x60d   :  { %v3693_v50 = vpop.eup %3692 }
 0x60e   :  { %v1116_v26 = vadd.f32 1.0, %v3693_v50  ;;  %v3580_v50 = vld [vmem:[#allocation9 + $0x7c] ss:$12 sps:$4 sm:$0xff]  }
 0x60f   :  { %v3695_v38 = vpop.eup %3694 }
 0x610   :  { %3696 = vrcp.f32 %v1116_v26  ;;  %v1123_v39 = vadd.f32 1.0, %v3695_v38  ;;  %v3581_v26 = vld [vmem:[#allocation9 + $0x80] ss:$12 sps:$4 sm:$0xff]   ;;  %v3578_v38 = vld [vmem:[#allocation9 + $0x78] ss:$12 sps:$4 sm:$0xff]  }
 0x612   :  { %3698 = vrcp.f32 %v1123_v39  ;;  %v3584_v39 = vld [vmem:[#allocation9 + $0x64] ss:$12 sps:$4 sm:$0xff]  }
 0x61d   :  { %v3697_v8 = vpop.eup %3696 }
 0x61e   :  { %v1127_v41 = vmul.f32 %v3697_v8, %v1126_v40  ;;  %v3585_v40 = vld [vmem:[#allocation9 + $0x68] ss:$12 sps:$4 sm:$0xff]   ;;  %v3589_v8 = vld [vmem:[#allocation9 + $0x50] ss:$12 sps:$4 sm:$0xff]  }
 0x61f   :  { %v3699_v43 = vpop.eup %3698 }
 0x620   :  { %v1128_v42 = vadd.f32 %v1127_v41, %v4233_v59  ;;  %v1130_v44 = vsub.f32 1.0, %v3699_v43  ;;  %v1132_v12 = vmul.f32 %v3699_v43, %v4439_v0  ;;  %v3821_v59 = vld [vmem:[#allocation6 + $0x38] ss:$12 sps:$4 sm:$0xff]   ;;  %v3586_v41 = vld [vmem:[#allocation9 + $0x48] ss:$12 sps:$4 sm:$0xff]  }
 0x621   :  { %v3593_v43 = vld [vmem:[#allocation9 + $0x38] ss:$12 sps:$4 sm:$0xff]  }
 0x622   :  { %3700 = vtanh.f32 %v1128_v42  ;;  %v3592_v42 = vld [vmem:[#allocation9 + $0x34] ss:$12 sps:$4 sm:$0xff]  }
 0x62f   :  { %v3701_v45 = vpop.eup %3700 }
 0x630   :  { %v1131_v16 = vmul.f32 %v3701_v45, %v1130_v44  ;;  %v3590_v44 = vld [vmem:[#allocation9 + $0x30] ss:$12 sps:$4 sm:$0xff]  }
 0x631   :  { %v3596_v45 = vld [vmem:[#allocation9 + $0x1c] ss:$12 sps:$4 sm:$0xff]  }
 0x632   :  { %v4515_v20 = vadd.f32 %v1132_v12, %v1131_v16  ;;  %v3597_v16 = vld [vmem:[#allocation9 + $0x20] ss:$12 sps:$4 sm:$0xff]   ;;  %v3594_v12 = vld [vmem:[#allocation9 + $0x18] ss:$12 sps:$4 sm:$0xff]  }
 0x634   :  { %v1138_v53 = vpack.c.bf16 %v4515_v20, %v4515_v20 }
 0x636   :  { %1172 = vmatmul.mubr.bf16.vlgmr.msra.gmra.mxu0 %v1138_v53  ;;  %3298 = vmatmul.mubr.bf16.vlgmr.msra.gmra.mxu1 %v1138_v53  ;;  %v3600_v53 = vld [vmem:[#allocation9 + $0x4] ss:$12 sps:$4 sm:$0xff]  }
 0x637   :  { %1248 = vmatpush1.bf16.msra.mxu0 %v4393_v25  ;;  %3302 = vmatpush3.bf16.msra.mxu1 %v4444_v30  ;;  %v3822_v25 = vld [vmem:[#allocation6 + $0x20] ss:$12 sps:$4 sm:$0xff]  }
 0x638   :  { %1249 = vmatprep.subr.bf16.mxu0 %v4397_v7  ;;  %3303 = vmatprep.subr.bf16.mxu1 %v5094_v55  ;;  %v3823_v7 = vld [vmem:[#allocation6 + $0x4] ss:$12 sps:$4 sm:$0xff]  }
 0x639   :  { %1279 = vmatprep.mubr.bf16.mxu0 %v5095_v63  ;;  %3317 = vmatprep.mubr.msk.bf16.mxu1 %vm3944_vm2, %v5094_v55 }
 0x63b   :  { %1250 = vmatpush1.bf16.msra.mxu0 %v4452_v22  ;;  %3304 = vmatpush3.bf16.msra.mxu1 %v4455_v1 }
 0x63c   :  { %1251 = vmatprep.subr.bf16.mxu0 %v4458_v23  ;;  %3305 = vmatprep.subr.bf16.mxu1 %v5094_v55 }
 0x63f   :  { %1252 = vmatpush1.bf16.msra.mxu0 %v4462_v14  ;;  %3306 = vmatpush3.bf16.msra.mxu1 %v4465_v35 }
 0x640   :  { %1253 = vmatprep.subr.bf16.mxu0 %v4468_v62  ;;  %3307 = vmatprep.subr.bf16.mxu1 %v5094_v55  ;;  %v5096_v62 = vld [vmem:[#allocation19_spill] sm:$0xff] }
 0x643   :  { %1254 = vmatpush1.bf16.msra.mxu0 %v4472_v9  ;;  %3308 = vmatpush3.bf16.msra.mxu1 %v4475_v21 }
 0x644   :  { %1255 = vmatprep.subr.bf16.mxu0 %v4478_v10  ;;  %3309 = vmatprep.subr.bf16.mxu1 %v5094_v55 }
 0x647   :  { %1256 = vmatpush1.bf16.msra.mxu0 %v4482_v19  ;;  %3310 = vmatpush3.bf16.msra.mxu1 %v4485_v24 }
 0x648   :  { %1257 = vmatprep.subr.bf16.mxu0 %v4488_v6  ;;  %3311 = vmatprep.subr.bf16.mxu1 %v5094_v55 }
 0x64b   :  { %1258 = vmatpush1.bf16.msra.mxu0 %v4492_v56  ;;  %3312 = vmatpush3.bf16.msra.mxu1 %v3821_v59  ;;  %v3601_v59 = vld [vmem:[#allocation9 + $0x8] ss:$12 sps:$4 sm:$0xff]  }
 0x64c   :  { %1259 = vmatprep.subr.bf16.mxu0 %v4496_v11  ;;  %3313 = vmatprep.subr.bf16.mxu1 %v5094_v55 }
 0x64f   :  { %1260 = vmatpush1.bf16.msra.mxu0 %v4500_v27  ;;  %3314 = vmatpush3.bf16.msra.mxu1 %v3822_v25  ;;  %v5097_v27 = vld [vmem:[#allocation17_spill] sm:$0xff]  ;;  %v3598_v25 = vld [vmem:[#allocation9] ss:$12 sps:$4 sm:$0xff]  }
 0x650   :  { %1261 = vmatprep.subr.bf16.mxu0 %v3823_v7  ;;  %3315 = vmatprep.subr.bf16.mxu1 %v5094_v55  ;;  %v1361_v7 = vpack.c.bf16 %v4389_v3, %v4345_v51  ;;  %v4573_v51 = vld [vmem:[#allocation11 + $0x94] ss:$12 sps:$4 sm:$0xff]   ;;  %v4575_v3 = vld [vmem:[#allocation11 + $0x90] ss:$12 sps:$4 sm:$0xff]  }
 0x653   :  { %1262 = vmatpush1.bf16.msra.mxu0 %v3824_v61  ;;  %3316 = vmatpush3.bf16.msra.mxu1 %v3825_v5  ;;  %v1362_v61 = vpack.c.bf16 %v4515_v20, %v4439_v0  ;;  %v4567_v5 = vld [vmem:[#allocation11 + $0xac] ss:$12 sps:$4 sm:$0xff]   ;;  %v4579_v0 = vld [vmem:[#allocation11 + $0x7c] ss:$12 sps:$4 sm:$0xff]  }
 0x654   :  { %1541 = vmatprep.subr.bf16.mxu0 %v3572_v54  ;;  %3321 = vmatprep.subr.bf16.mxu1 %v3573_v4  ;;  %v4569_v54 = vld [vmem:[#allocation11 + $0xa8] ss:$12 sps:$4 sm:$0xff]  }
 0x6f6   :  { %v1173_v58 = vpop.f32.mrf.mxu0  ;;  %v1214_v60 = vpop.f32.mrf.mxu1 }
 0x6f7   :  { %v1220_v2 = vadd.f32 %v1173_v58, %v4241_v18  ;;  %v1234_v56 = vadd.f32 %v4252_v52, %v1214_v60  ;;  %v3577_v52 = vld [vmem:[#allocation9 + $0x98] ss:$12 sps:$4 sm:$0xff]   ;;  %v4587_v58 = vld [vmem:[#allocation11 + $0x60] ss:$12 sps:$4 sm:$0xff]  }
 0x6f8   :  { %v1175_v17 = vpop.f32.mrf.mxu0  ;;  %v3299_v30 = vpop.f32.mrf.mxu1  ;;  %v4591_v60 = vld [vmem:[#allocation11 + $0x4c] ss:$12 sps:$4 sm:$0xff]  }
 0x6f9   :  { %v2903_v22 = vmul.f32 -1.442695, %v1220_v2  ;;  %v1227_v9 = vadd.f32 %v1175_v17, %v5096_v62  ;;  %v4593_v2 = vld [vmem:[#allocation11 + $0x48] ss:$12 sps:$4 sm:$0xff]   ;;  %v4599_v30 = vld [vmem:[#allocation11 + $0x30] ss:$12 sps:$4 sm:$0xff]  }
 0x6fa   :  { %v1177_v1 = vpop.f32.mrf.mxu0  ;;  %v1217_v23 = vpop.f32.mrf.mxu1  ;;  %v4597_v17 = vld [vmem:[#allocation11 + $0x34] ss:$12 sps:$4 sm:$0xff]   ;;  %v4619_v62 = vld [vmem:[#allocation11 + $0x98] ss:$12 sps:$4 sm:$0xff]  }
 0x6fb   :  { %3702 = vpow2.f32 %v2903_v22  ;;  %v2904_v21 = vmul.f32 -1.442695, %v1227_v9  ;;  %v4603_v22 = vld [vmem:[#allocation11 + $0x1c] ss:$12 sps:$4 sm:$0xff]   ;;  %v4605_v1 = vld [vmem:[#allocation11 + $0x18] ss:$12 sps:$4 sm:$0xff]  }
 0x6fc   :  { %v1178_v14 = vpop.f32.mrf.mxu0  ;;  %v3300_v35 = vpop.f32.mrf.mxu1  ;;  %v4607_v23 = vld [vmem:[#allocation11 + $0x4] ss:$12 sps:$4 sm:$0xff]   ;;  %v4623_v9 = vld [vmem:[#allocation11 + $0x80] ss:$12 sps:$4 sm:$0xff]  }
 0x6fd   :  { %3704 = vpow2.f32 %v2904_v21  ;;  %v4609_v14 = vld [vmem:[#allocation11 + $0xb0] ss:$12 sps:$4 sm:$0xff]   ;;  %v4614_v35 = vld [vmem:[#allocation11] ss:$12 sps:$4 sm:$0xff]   ;;  %v4627_v21 = vld [vmem:[#allocation11 + $0x68] ss:$12 sps:$4 sm:$0xff]  }
 0x708   :  { %v3703_v10 = vpop.eup %3702 }
 0x709   :  { %v1224_v19 = vadd.f32 1.0, %v3703_v10  ;;  %v4631_v10 = vld [vmem:[#allocation11 + $0x50] ss:$12 sps:$4 sm:$0xff]  }
 0x70a   :  { %v3705_v24 = vpop.eup %3704 }
 0x70b   :  { %3706 = vrcp.f32 %v1224_v19  ;;  %v1231_v6 = vadd.f32 1.0, %v3705_v24  ;;  %v4635_v19 = vld [vmem:[#allocation11 + $0x38] ss:$12 sps:$4 sm:$0xff]   ;;  %v4639_v24 = vld [vmem:[#allocation11 + $0x20] ss:$12 sps:$4 sm:$0xff]  }
 0x70d   :  { %3708 = vrcp.f32 %v1231_v6  ;;  %v4643_v6 = vld [vmem:[#allocation11 + $0x8] ss:$12 sps:$4 sm:$0xff]  }
 0x718   :  { %v3707_v18 = vpop.eup %3706 }
 0x719   :  { %v1235_v11 = vmul.f32 %v3707_v18, %v1234_v56 }
 0x71a   :  { %v3709_v15 = vpop.eup %3708 }
 0x71b   :  { %v1236_v47 = vadd.f32 %v1235_v11, %v5097_v27  ;;  %v1238_v28 = vsub.f32 1.0, %v3709_v15  ;;  %v1240_v33 = vmul.f32 %v3709_v15, %v4515_v20  ;;  %v4581_v20 = vld [vmem:[#allocation11 + $0x78] ss:$12 sps:$4 sm:$0xff]   ;;  %v5098_v11 = vld [vmem:[#allocation20_spill] sm:$0xff] }
 0x71d   :  { %3710 = vtanh.f32 %v1236_v47 }
 0x72a   :  { %v3711_v29 = vpop.eup %3710 }
 0x72b   :  { %v1239_v32 = vmul.f32 %v3711_v29, %v1238_v28 }
 0x72d   :  { %v4552_v49 = vadd.f32 %v1240_v33, %v1239_v32 }
 0x72f   :  { %v1246_v46 = vpack.c.bf16 %v4552_v49, %v4552_v49 }
 0x731   :  { %1280 = vmatmul.mubr.bf16.vlgmr.msra.gmra.mxu0 %v1246_v46  ;;  %3318 = vmatmul.mubr.bf16.vlgmr.msra.gmra.mxu1 %v1246_v46 }
 0x732   :  { %1542 = vmatpush1.bf16.msra.mxu0 %v3570_v34  ;;  %3322 = vmatpush3.bf16.msra.mxu1 %v3573_v4  ;;  %v4585_v4 = vld [vmem:[#allocation11 + $0x64] ss:$12 sps:$4 sm:$0xff]  }
 0x733   :  { %3337 = vmatprep.mubr.bf16.mxu1 %v1360_v48  ;;  %1543 = vmatprep.subr.bf16.mxu0 %v3576_v36 }
 0x734   :  { %3323 = vmatprep.subr.bf16.mxu1 %v3577_v52  ;;  %1573 = vmatprep.mubr.bf16.mxu0 %v5095_v63 }
 0x736   :  { %1544 = vmatpush1.bf16.msra.mxu0 %v3574_v37  ;;  %3324 = vmatpush3.bf16.msra.mxu1 %v3577_v52 }
 0x737   :  { %1545 = vmatprep.subr.bf16.mxu0 %v3580_v50  ;;  %3325 = vmatprep.subr.bf16.mxu1 %v3581_v26 }
 0x73a   :  { %1546 = vmatpush1.bf16.msra.mxu0 %v3578_v38  ;;  %3326 = vmatpush3.bf16.msra.mxu1 %v3581_v26  ;;  %v3826_v26 = vld [vmem:[%s5070_s4] ss:$0 sm:$0xff] }
 0x73b   :  { %1547 = vmatprep.subr.bf16.mxu0 %v3584_v39  ;;  %3327 = vmatprep.subr.bf16.mxu1 %v3585_v40 }
 0x73e   :  { %1548 = vmatpush1.bf16.msra.mxu0 %v3582_v31  ;;  %3328 = vmatpush3.bf16.msra.mxu1 %v3585_v40  ;;  %v5099_v31 = vld [vmem:[#allocation18_spill] sm:$0xff] }
 0x73f   :  { %1549 = vmatprep.subr.bf16.mxu0 %v3588_v13  ;;  %3329 = vmatprep.subr.bf16.mxu1 %v3589_v8 }
 0x742   :  { %1550 = vmatpush1.bf16.msra.mxu0 %v3586_v41  ;;  %3330 = vmatpush3.bf16.msra.mxu1 %v3589_v8 }
 0x743   :  { %1551 = vmatprep.subr.bf16.mxu0 %v3592_v42  ;;  %3331 = vmatprep.subr.bf16.mxu1 %v3593_v43 }
 0x746   :  { %1552 = vmatpush1.bf16.msra.mxu0 %v3590_v44  ;;  %3332 = vmatpush3.bf16.msra.mxu1 %v3593_v43 }
 0x747   :  { %1553 = vmatprep.subr.bf16.mxu0 %v3596_v45  ;;  %3333 = vmatprep.subr.bf16.mxu1 %v3597_v16 }
 0x74a   :  { %1554 = vmatpush1.bf16.msra.mxu0 %v3594_v12  ;;  %3334 = vmatpush3.bf16.msra.mxu1 %v3597_v16  ;;  %v5100_v16 = vmov 0.0|0.0  }
 0x74b   :  { %1555 = vmatprep.subr.bf16.mxu0 %v3600_v53  ;;  %3335 = vmatprep.subr.bf16.mxu1 %v3601_v59 }
 0x74e   :  { %1556 = vmatpush1.bf16.msra.mxu0 %v3598_v25  ;;  %3336 = vmatpush3.bf16.msra.mxu1 %v3601_v59 }
 0x74f   :  { %3345 = vmatprep.subr.bf16.mxu1 %v5094_v55  ;;  %1875 = vmatprep.subr.bf16.mxu0 %v4567_v5 }
 0x751   :  { %1574 = vmatmul.mubr.bf16.vlgmr.msra.gmra.mxu0 %v1360_v48  ;;  %3338 = vmatmul.mubr.bf16.vlgmr.msra.gmra.mxu1 %v1361_v7 }
 0x752   :  { %3341 = vmatprep.mubr.bf16.mxu1 %v1362_v61  ;;  %1583 = vmatprep.mubr.bf16.mxu0 %v5095_v63 }
 0x753   :  { %1876 = vmatpush1.bf16.msra.mxu0 %v4569_v54  ;;  %3346 = vmatpush3.bf16.msra.mxu1 %v4609_v14 }
 0x754   :  { %1877 = vmatprep.subr.bf16.mxu0 %v4573_v51  ;;  %3347 = vmatprep.subr.bf16.mxu1 %v5094_v55 }
 0x757   :  { %1878 = vmatpush1.bf16.msra.mxu0 %v4575_v3  ;;  %3348 = vmatpush3.bf16.msra.mxu1 %v4619_v62 }
 0x758   :  { %1879 = vmatprep.subr.bf16.mxu0 %v4579_v0  ;;  %3349 = vmatprep.subr.bf16.mxu1 %v5094_v55 }
 0x759   :  { %1584 = vmatmul.mubr.bf16.gmra.mxu0 %v1361_v7 }
 0x75a   :  { %1593 = vmatprep.mubr.bf16.mxu0 %v5095_v63 }
 0x75b   :  { %1880 = vmatpush1.bf16.msra.mxu0 %v4581_v20  ;;  %3350 = vmatpush3.bf16.msra.mxu1 %v4623_v9 }
 0x75c   :  { %1881 = vmatprep.subr.bf16.mxu0 %v4585_v4  ;;  %3351 = vmatprep.subr.bf16.mxu1 %v5094_v55 }
 0x75f   :  { %1882 = vmatpush1.bf16.msra.mxu0 %v4587_v58  ;;  %3352 = vmatpush3.bf16.msra.mxu1 %v4627_v21 }
 0x760   :  { %1883 = vmatprep.subr.bf16.mxu0 %v4591_v60  ;;  %3353 = vmatprep.subr.bf16.mxu1 %v5094_v55 }
 0x761   :  { %1594 = vmatmul.mubr.bf16.gmra.mxu0 %v1362_v61 }
 0x762   :  { %1603 = vmatprep.mubr.bf16.mxu0 %v5095_v63 }
 0x763   :  { %1884 = vmatpush1.bf16.msra.mxu0 %v4593_v2  ;;  %3354 = vmatpush3.bf16.msra.mxu1 %v4631_v10 }
 0x764   :  { %1885 = vmatprep.subr.bf16.mxu0 %v4597_v17  ;;  %3355 = vmatprep.subr.bf16.mxu1 %v5094_v55 }
 0x767   :  { %1886 = vmatpush1.bf16.msra.mxu0 %v4599_v30  ;;  %3356 = vmatpush3.bf16.msra.mxu1 %v4635_v19 }
 0x768   :  { %1887 = vmatprep.subr.bf16.mxu0 %v4603_v22  ;;  %3357 = vmatprep.subr.bf16.mxu1 %v5094_v55 }
 0x76b   :  { %1888 = vmatpush1.bf16.msra.mxu0 %v4605_v1  ;;  %3358 = vmatpush3.bf16.msra.mxu1 %v4639_v24 }
 0x76c   :  { %1889 = vmatprep.subr.bf16.mxu0 %v4607_v23  ;;  %3359 = vmatprep.subr.bf16.mxu1 %v5094_v55 }
 0x76f   :  { %1890 = vmatpush1.bf16.msra.mxu0 %v4614_v35  ;;  %3360 = vmatpush3.bf16.msra.mxu1 %v4643_v6 }
 0x770   :  { %1982 = vmatprep.subr.bf16.mxu0 %v4567_v5  ;;  %3365 = vmatprep.subr.bf16.mxu1 %v5094_v55 }
 0x7f1   :  { %v1281_v56 = vpop.f32.mrf.mxu0  ;;  %v1322_v18 = vpop.f32.mrf.mxu1 }
 0x7f2   :  { %v1328_v27 = vadd.f32 %v1281_v56, %v5098_v11  ;;  %v1342_v38 = vadd.f32 %v3826_v26, %v1322_v18 }
 0x7f3   :  { %v1283_v47 = vpop.f32.mrf.mxu0  ;;  %v3319_v15 = vpop.f32.mrf.mxu1 }
 0x7f4   :  { %v2905_v28 = vmul.f32 -1.442695, %v1328_v27  ;;  %v1335_v46 = vadd.f32 %v1283_v47, %v4247_v57 }
 0x7f5   :  { %v1285_v29 = vpop.f32.mrf.mxu0  ;;  %v1325_v32 = vpop.f32.mrf.mxu1 }
 0x7f6   :  { %3712 = vpow2.f32 %v2905_v28  ;;  %v2906_v36 = vmul.f32 -1.442695, %v1335_v46 }
 0x7f7   :  { %v1286_v33 = vpop.f32.mrf.mxu0  ;;  %v3320_v34 = vpop.f32.mrf.mxu1 }
 0x7f8   :  { %3714 = vpow2.f32 %v2906_v36  ;;  %v1396_v33 = vld [vmem:[%s5073_s7] sm:$0x7] }
 0x803   :  { %v3713_v52 = vpop.eup %3712 }
 0x804   :  { %v1332_v48 = vadd.f32 1.0, %v3713_v52 }
 0x805   :  { %v3715_v37 = vpop.eup %3714 }
 0x806   :  { %3716 = vrcp.f32 %v1332_v48  ;;  %v1339_v50 = vadd.f32 1.0, %v3715_v37  ;;  %v5104_v48 = vld [vmem:[#allocation16_spill] sm:$0xff] }
 0x807   :  { %v5105_v37 = vsub.s32 0, %v5104_v48 }
 0x808   :  { %3718 = vrcp.f32 %v1339_v50 }
 0x809   :  { %v4735_v50 = vrot.slane %v1396_v33, %v5105_v37 }
 0x811   :  { %v4708_v18 = vpop.f32.mrf.mxu1 }
 0x813   :  { %v3717_v39 = vpop.eup %3716  ;;  %v1648_v27 = vpop.f32.mrf.mxu1 }
 0x814   :  { %v1343_v40 = vmul.f32 %v3717_v39, %v1342_v38 }
 0x815   :  { %v3719_v8 = vpop.eup %3718  ;;  %v4714_v15 = vpop.f32.mrf.mxu1 }
 0x816   :  { %v1344_v13 = vadd.f32 %v1343_v40, %v5099_v31  ;;  %v1346_v57 = vsub.f32 1.0, %v3719_v8  ;;  %v1348_v43 = vmul.f32 %v3719_v8, %v4552_v49 }
 0x817   :  { %v4718_v29 = vpop.f32.mrf.mxu1 }
 0x818   :  { %3720 = vtanh.f32 %v1344_v13 }
 0x825   :  { %v3721_v41 = vpop.eup %3720 }
 0x826   :  { %v1347_v42 = vmul.f32 %v3721_v41, %v1346_v57  ;;  %v5110_v57 = vsub.s32 1, %v5104_v48 }
 0x828   :  { %v1349_v44 = vadd.f32 %v1348_v43, %v1347_v42  ;;  %v4748_v41 = vrot.slane %v1396_v33, %v5110_v57 }
 0x82a   :  { %v1363_v45 = vpack.c.bf16 %v1349_v44, %v4552_v49  ;;  %v1575_v49 = vpop.f32.mrf.mxu0 }
 0x82b   :  { %v1576_v31 = vadd.f32 %v1575_v49, %v4735_v50 }
 0x82c   :  { %1604 = vmatmul.mubr.bf16.gmra.mxu0 %v1363_v45  ;;  %3342 = vmatmul.mubr.bf16.gmra.mxu1 %v1363_v45  ;;  %v1577_v12 = vpop.f32.mrf.mxu0 }
 0x82d   :  { %1907 = vmatprep.mubr.bf16.mxu0 %v5095_v63  ;;  %3361 = vmatprep.mubr.msk.bf16.mxu1 %vm3944_vm2, %v5094_v55 }
 0x82e   :  { %v4696_v53 = vpop.f32.mrf.mxu0 }
 0x830   :  { %v4698_v59 = vpop.f32.mrf.mxu0 }
 0x832   :  { %v4700_v25 = vpop.f32.mrf.mxu0 }
 0x834   :  { %1908 = vmatmul.mubr.bf16.vlgmr.msra.gmra.mxu0 %v5100_v16  ;;  %3362 = vmatmul.mubr.bf16.vlgmr.msra.gmra.mxu1 %v5100_v16  ;;  %v4702_v7 = vpop.f32.mrf.mxu0 }
 0x835   :  { %1983 = vmatpush1.bf16.msra.mxu0 %v4569_v54  ;;  %3366 = vmatpush3.bf16.msra.mxu1 %v4609_v14 }
 0x836   :  { %1984 = vmatprep.subr.bf16.mxu0 %v4573_v51  ;;  %3367 = vmatprep.subr.bf16.mxu1 %v5094_v55  ;;  %v4704_v61 = vpop.f32.mrf.mxu0 }
 0x837   :  { %2014 = vmatprep.mubr.bf16.mxu0 %v5095_v63  ;;  %3381 = vmatprep.mubr.msk.bf16.mxu1 %vm3944_vm2, %v5094_v55 }
 0x838   :  { %v4706_v56 = vpop.f32.mrf.mxu0 }
 0x839   :  { %1985 = vmatpush1.bf16.msra.mxu0 %v4575_v3  ;;  %3368 = vmatpush3.bf16.msra.mxu1 %v4619_v62 }
 0x83a   :  { %1986 = vmatprep.subr.bf16.mxu0 %v4579_v0  ;;  %3369 = vmatprep.subr.bf16.mxu1 %v5094_v55  ;;  %v4710_v11 = vpop.f32.mrf.mxu0 }
 0x83c   :  { %v4712_v47 = vpop.f32.mrf.mxu0 }
 0x83d   :  { %1987 = vmatpush1.bf16.msra.mxu0 %v4581_v20  ;;  %3370 = vmatpush3.bf16.msra.mxu1 %v4623_v9 }
 0x83e   :  { %1988 = vmatprep.subr.bf16.mxu0 %v4585_v4  ;;  %3371 = vmatprep.subr.bf16.mxu1 %v5094_v55  ;;  %v4716_v28 = vpop.f32.mrf.mxu0 }
 0x840   :  { %v4720_v32 = vpop.f32.mrf.mxu0 }
 0x841   :  { %1989 = vmatpush1.bf16.msra.mxu0 %v4587_v58  ;;  %3372 = vmatpush3.bf16.msra.mxu1 %v4627_v21 }
 0x842   :  { %1990 = vmatprep.subr.bf16.mxu0 %v4591_v60  ;;  %3373 = vmatprep.subr.bf16.mxu1 %v5094_v55 }
 0x845   :  { %1991 = vmatpush1.bf16.msra.mxu0 %v4593_v2  ;;  %3374 = vmatpush3.bf16.msra.mxu1 %v4631_v10 }
 0x846   :  { %1992 = vmatprep.subr.bf16.mxu0 %v4597_v17  ;;  %3375 = vmatprep.subr.bf16.mxu1 %v5094_v55 }
 0x849   :  { %1993 = vmatpush1.bf16.msra.mxu0 %v4599_v30  ;;  %3376 = vmatpush3.bf16.msra.mxu1 %v4635_v19 }
 0x84a   :  { %1994 = vmatprep.subr.bf16.mxu0 %v4603_v22  ;;  %3377 = vmatprep.subr.bf16.mxu1 %v5094_v55 }
 0x84d   :  { %1995 = vmatpush1.bf16.msra.mxu0 %v4605_v1  ;;  %3378 = vmatpush3.bf16.msra.mxu1 %v4639_v24 }
 0x84e   :  { %1996 = vmatprep.subr.bf16.mxu0 %v4607_v23  ;;  %3379 = vmatprep.subr.bf16.mxu1 %v5094_v55 }
 0x851   :  { %1997 = vmatpush1.bf16.msra.mxu0 %v4614_v35  ;;  %3380 = vmatpush3.bf16.msra.mxu1 %v4643_v6 }
 0x852   :  { %2089 = vmatprep.subr.bf16.mxu0 %v4567_v5  ;;  %3385 = vmatprep.subr.bf16.mxu1 %v5094_v55 }
 0x8ec   :  { %v4725_v34 = vpop.f32.mrf.mxu0  ;;  %v4727_v46 = vpop.f32.mrf.mxu1 }
 0x8ed   :  { %5101 = vst [vmem:[#allocation19_spill] sm:$0xff] %v4725_v34  ;;  %5102 = vst [vmem:[#allocation17_spill] sm:$0xff] %v4727_v46 }
 0x8ee   :  { %v4729_v36 = vpop.f32.mrf.mxu0  ;;  %v4731_v52 = vpop.f32.mrf.mxu1 }
 0x8ef   :  { %5103 = vst [vmem:[#allocation20_spill] sm:$0xff] %v4729_v36 }
 0x8f0   :  { %v4737_v26 = vpop.f32.mrf.mxu0  ;;  %v4739_v38 = vpop.f32.mrf.mxu1 }
 0x8f1   :  { %5106 = vst [vmem:[#allocation18_spill] sm:$0xff] %v4737_v26  ;;  %5107 = vst [vmem:[#allocation16_spill] sm:$0xff] %v4739_v38  ;;  %v1578_v38 = vadd.f32 %v1577_v12, %v4748_v41  ;;  %v5111_v12 = vsub.s32 2, %v5104_v48 }
 0x8f2   :  { %v4741_v39 = vpop.f32.mrf.mxu0  ;;  %v4743_v40 = vpop.f32.mrf.mxu1 }
 0x8f3   :  { %5108 = vst [vmem:[#allocation21_spill] sm:$0xff] %v4741_v39  ;;  %5109 = vst [vmem:[#allocation22_spill] sm:$0xff] %v4743_v40 }
 0x8f4   :  { %v1909_v13 = vpop.f32.mrf.mxu0  ;;  %v1950_v8 = vpop.f32.mrf.mxu1 }
 0x8f5   :  { %v1956_v42 = vadd.f32 %v1909_v13, %v1576_v31  ;;  %v4754_v31 = vld [vmem:[%s5074_s8] ss:$0 sm:$0xff] }
 0x8f6   :  { %v1911_v43 = vpop.f32.mrf.mxu0  ;;  %v3363_v44 = vpop.f32.mrf.mxu1  ;;  %v1970_v57 = vadd.f32 %v4754_v31, %v1950_v8 }
 0x8f7   :  { %v2956_v45 = vmul.f32 -1.442695, %v1956_v42  ;;  %v1963_v46 = vadd.f32 %v1911_v43, %v1578_v38  ;;  %v4759_v42 = vrot.slane %v1396_v33, %v5111_v12 }
 0x8f8   :  { %v1913_v16 = vpop.f32.mrf.mxu0  ;;  %v1953_v37 = vpop.f32.mrf.mxu1 }
 0x8f9   :  { %3722 = vpow2.f32 %v2956_v45  ;;  %v2957_v36 = vmul.f32 -1.442695, %v1963_v46  ;;  %v1649_v46 = vadd.f32 %v1648_v27, %v4759_v42  ;;  %v1580_v27 = vadd.f32 %v4696_v53, %v4735_v50 }
 0x8fa   :  { %v1914_v39 = vpop.f32.mrf.mxu0  ;;  %v3364_v26 = vpop.f32.mrf.mxu1 }
 0x8fb   :  { %3724 = vpow2.f32 %v2957_v36 }
 0x906   :  { %v3723_v49 = vpop.eup %3722 }
 0x907   :  { %v1960_v34 = vadd.f32 1.0, %v3723_v49 }
 0x908   :  { %v3725_v40 = vpop.eup %3724 }
 0x909   :  { %3726 = vrcp.f32 %v1960_v34  ;;  %v1967_v13 = vadd.f32 1.0, %v3725_v40 }
 0x90b   :  { %3728 = vrcp.f32 %v1967_v13 }
 0x916   :  { %v3727_v26 = vpop.eup %3726 }
 0x917   :  { %v1971_v36 = vmul.f32 %v3727_v26, %v1970_v57  ;;  %v1582_v26 = vadd.f32 %v4698_v59, %v4748_v41 }
 0x918   :  { %v3729_v34 = vpop.eup %3728 }
 0x919   :  { %v1972_v38 = vadd.f32 %v1971_v36, %v1649_v46  ;;  %v1974_v39 = vsub.f32 1.0, %v3729_v34  ;;  %v1976_v45 = vmul.f32 0.0, %v3729_v34 }
 0x91b   :  { %3730 = vtanh.f32 %v1972_v38 }
 0x928   :  { %v3731_v43 = vpop.eup %3730 }
 0x929   :  { %v1975_v44 = vmul.f32 %v3731_v43, %v1974_v39 }
 0x92b   :  { %v4762_v16 = vadd.f32 %v1976_v45, %v1975_v44 }
 0x92d   :  { %v1981_v40 = vpack.c.bf16 %v4762_v16, %v4762_v16 }
 0x92f   :  { %2015 = vmatmul.mubr.bf16.vlgmr.msra.gmra.mxu0 %v1981_v40  ;;  %3382 = vmatmul.mubr.bf16.vlgmr.msra.gmra.mxu1 %v1981_v40 }
 0x930   :  { %2090 = vmatpush1.bf16.msra.mxu0 %v4569_v54  ;;  %3386 = vmatpush3.bf16.msra.mxu1 %v4609_v14 }
 0x931   :  { %2091 = vmatprep.subr.bf16.mxu0 %v4573_v51  ;;  %3387 = vmatprep.subr.bf16.mxu1 %v5094_v55 }
 0x932   :  { %2121 = vmatprep.mubr.bf16.mxu0 %v5095_v63  ;;  %3401 = vmatprep.mubr.msk.bf16.mxu1 %vm3944_vm2, %v5094_v55 }
 0x934   :  { %2092 = vmatpush1.bf16.msra.mxu0 %v4575_v3  ;;  %3388 = vmatpush3.bf16.msra.mxu1 %v4619_v62 }
 0x935   :  { %2093 = vmatprep.subr.bf16.mxu0 %v4579_v0  ;;  %3389 = vmatprep.subr.bf16.mxu1 %v5094_v55 }
 0x938   :  { %2094 = vmatpush1.bf16.msra.mxu0 %v4581_v20  ;;  %3390 = vmatpush3.bf16.msra.mxu1 %v4623_v9 }
 0x939   :  { %2095 = vmatprep.subr.bf16.mxu0 %v4585_v4  ;;  %3391 = vmatprep.subr.bf16.mxu1 %v5094_v55 }
 0x93c   :  { %2096 = vmatpush1.bf16.msra.mxu0 %v4587_v58  ;;  %3392 = vmatpush3.bf16.msra.mxu1 %v4627_v21 }
 0x93d   :  { %2097 = vmatprep.subr.bf16.mxu0 %v4591_v60  ;;  %3393 = vmatprep.subr.bf16.mxu1 %v5094_v55 }
 0x940   :  { %2098 = vmatpush1.bf16.msra.mxu0 %v4593_v2  ;;  %3394 = vmatpush3.bf16.msra.mxu1 %v4631_v10 }
 0x941   :  { %2099 = vmatprep.subr.bf16.mxu0 %v4597_v17  ;;  %3395 = vmatprep.subr.bf16.mxu1 %v5094_v55 }
 0x944   :  { %2100 = vmatpush1.bf16.msra.mxu0 %v4599_v30  ;;  %3396 = vmatpush3.bf16.msra.mxu1 %v4635_v19 }
 0x945   :  { %2101 = vmatprep.subr.bf16.mxu0 %v4603_v22  ;;  %3397 = vmatprep.subr.bf16.mxu1 %v5094_v55 }
 0x948   :  { %2102 = vmatpush1.bf16.msra.mxu0 %v4605_v1  ;;  %3398 = vmatpush3.bf16.msra.mxu1 %v4639_v24 }
 0x949   :  { %2103 = vmatprep.subr.bf16.mxu0 %v4607_v23  ;;  %3399 = vmatprep.subr.bf16.mxu1 %v5094_v55 }
 0x94c   :  { %2104 = vmatpush1.bf16.msra.mxu0 %v4614_v35  ;;  %3400 = vmatpush3.bf16.msra.mxu1 %v4643_v6 }
 0x94d   :  { %2196 = vmatprep.subr.bf16.mxu0 %v4567_v5  ;;  %3405 = vmatprep.subr.bf16.mxu1 %v5094_v55 }
 0x9ef   :  { %v2016_v33 = vpop.f32.mrf.mxu0  ;;  %v2057_v48 = vpop.f32.mrf.mxu1 }
 0x9f0   :  { %v2063_v8 = vadd.f32 %v2016_v33, %v1580_v27  ;;  %v2077_v45 = vadd.f32 %v4754_v31, %v2057_v48  ;;  %v1652_v27 = vadd.f32 %v4718_v29, %v4759_v42  ;;  %v1586_v29 = vadd.f32 %v4700_v25, %v4735_v50 }
 0x9f1   :  { %v2018_v37 = vpop.f32.mrf.mxu0  ;;  %v3383_v49 = vpop.f32.mrf.mxu1 }
 0x9f2   :  { %v2958_v13 = vmul.f32 -1.442695, %v2063_v8  ;;  %v2070_v38 = vadd.f32 %v2018_v37, %v1582_v26 }
 0x9f3   :  { %v2020_v57 = vpop.f32.mrf.mxu0  ;;  %v2060_v12 = vpop.f32.mrf.mxu1 }
 0x9f4   :  { %3732 = vpow2.f32 %v2958_v13  ;;  %v2959_v34 = vmul.f32 -1.442695, %v2070_v38 }
 0x9f5   :  { %v2021_v46 = vpop.f32.mrf.mxu0  ;;  %v3384_v36 = vpop.f32.mrf.mxu1 }
 0x9f6   :  { %3734 = vpow2.f32 %v2959_v34 }
 0xa01   :  { %v3733_v39 = vpop.eup %3732 }
 0xa02   :  { %v2067_v43 = vadd.f32 1.0, %v3733_v39 }
 0xa03   :  { %v3735_v53 = vpop.eup %3734 }
 0xa04   :  { %3736 = vrcp.f32 %v2067_v43  ;;  %v2074_v44 = vadd.f32 1.0, %v3735_v53  ;;  %v1588_v53 = vadd.f32 %v4702_v7, %v4748_v41 }
 0xa06   :  { %3738 = vrcp.f32 %v2074_v44 }
 0xa11   :  { %v3737_v40 = vpop.eup %3736 }
 0xa12   :  { %v2078_v33 = vmul.f32 %v3737_v40, %v2077_v45 }
 0xa13   :  { %v3739_v8 = vpop.eup %3738 }
 0xa14   :  { %v2079_v59 = vadd.f32 %v2078_v33, %v1652_v27  ;;  %v2081_v49 = vsub.f32 1.0, %v3739_v8  ;;  %v2083_v57 = vmul.f32 %v3739_v8, %v4762_v16 }
 0xa16   :  { %3740 = vtanh.f32 %v2079_v59 }
 0xa23   :  { %v3741_v37 = vpop.eup %3740 }
 0xa24   :  { %v2082_v13 = vmul.f32 %v3741_v37, %v2081_v49 }
 0xa26   :  { %v4809_v12 = vadd.f32 %v2083_v57, %v2082_v13  ;;  %v1657_v13 = vadd.f32 %v4708_v18, %v4759_v42  ;;  %v1590_v18 = vadd.f32 %v4704_v61, %v4735_v50 }
 0xa28   :  { %v2088_v26 = vpack.c.bf16 %v4809_v12, %v4809_v12 }
 0xa2a   :  { %2122 = vmatmul.mubr.bf16.vlgmr.msra.gmra.mxu0 %v2088_v26  ;;  %3402 = vmatmul.mubr.bf16.vlgmr.msra.gmra.mxu1 %v2088_v26 }
 0xa2b   :  { %2197 = vmatpush1.bf16.msra.mxu0 %v4569_v54  ;;  %3406 = vmatpush3.bf16.msra.mxu1 %v4609_v14 }
 0xa2c   :  { %2198 = vmatprep.subr.bf16.mxu0 %v4573_v51  ;;  %3407 = vmatprep.subr.bf16.mxu1 %v5094_v55 }
 0xa2d   :  { %2228 = vmatprep.mubr.bf16.mxu0 %v5095_v63  ;;  %3421 = vmatprep.mubr.msk.bf16.mxu1 %vm3944_vm2, %v5094_v55 }
 0xa2f   :  { %2199 = vmatpush1.bf16.msra.mxu0 %v4575_v3  ;;  %3408 = vmatpush3.bf16.msra.mxu1 %v4619_v62 }
 0xa30   :  { %2200 = vmatprep.subr.bf16.mxu0 %v4579_v0  ;;  %3409 = vmatprep.subr.bf16.mxu1 %v5094_v55 }
 0xa33   :  { %2201 = vmatpush1.bf16.msra.mxu0 %v4581_v20  ;;  %3410 = vmatpush3.bf16.msra.mxu1 %v4623_v9 }
 0xa34   :  { %2202 = vmatprep.subr.bf16.mxu0 %v4585_v4  ;;  %3411 = vmatprep.subr.bf16.mxu1 %v5094_v55 }
 0xa37   :  { %2203 = vmatpush1.bf16.msra.mxu0 %v4587_v58  ;;  %3412 = vmatpush3.bf16.msra.mxu1 %v4627_v21 }
 0xa38   :  { %2204 = vmatprep.subr.bf16.mxu0 %v4591_v60  ;;  %3413 = vmatprep.subr.bf16.mxu1 %v5094_v55 }
 0xa3b   :  { %2205 = vmatpush1.bf16.msra.mxu0 %v4593_v2  ;;  %3414 = vmatpush3.bf16.msra.mxu1 %v4631_v10 }
 0xa3c   :  { %2206 = vmatprep.subr.bf16.mxu0 %v4597_v17  ;;  %3415 = vmatprep.subr.bf16.mxu1 %v5094_v55 }
 0xa3f   :  { %2207 = vmatpush1.bf16.msra.mxu0 %v4599_v30  ;;  %3416 = vmatpush3.bf16.msra.mxu1 %v4635_v19 }
 0xa40   :  { %2208 = vmatprep.subr.bf16.mxu0 %v4603_v22  ;;  %3417 = vmatprep.subr.bf16.mxu1 %v5094_v55 }
 0xa43   :  { %2209 = vmatpush1.bf16.msra.mxu0 %v4605_v1  ;;  %3418 = vmatpush3.bf16.msra.mxu1 %v4639_v24 }
 0xa44   :  { %2210 = vmatprep.subr.bf16.mxu0 %v4607_v23  ;;  %3419 = vmatprep.subr.bf16.mxu1 %v5094_v55 }
 0xa47   :  { %2211 = vmatpush1.bf16.msra.mxu0 %v4614_v35  ;;  %3420 = vmatpush3.bf16.msra.mxu1 %v4643_v6 }
 0xa48   :  { %2303 = vmatprep.subr.bf16.mxu0 %v4567_v5  ;;  %3425 = vmatprep.subr.bf16.mxu1 %v5094_v55 }
 0xaea   :  { %v2123_v16 = vpop.f32.mrf.mxu0  ;;  %v2164_v48 = vpop.f32.mrf.mxu1 }
 0xaeb   :  { %v2170_v46 = vadd.f32 %v2123_v16, %v1586_v29  ;;  %v2184_v49 = vadd.f32 %v4754_v31, %v2164_v48 }
 0xaec   :  { %v2125_v36 = vpop.f32.mrf.mxu0  ;;  %v3403_v38 = vpop.f32.mrf.mxu1 }
 0xaed   :  { %v2960_v34 = vmul.f32 -1.442695, %v2170_v46  ;;  %v2177_v40 = vadd.f32 %v2125_v36, %v1588_v53 }
 0xaee   :  { %v2127_v39 = vpop.f32.mrf.mxu0  ;;  %v2167_v43 = vpop.f32.mrf.mxu1 }
 0xaef   :  { %3742 = vpow2.f32 %v2960_v34  ;;  %v2961_v27 = vmul.f32 -1.442695, %v2177_v40 }
 0xaf0   :  { %v2128_v44 = vpop.f32.mrf.mxu0  ;;  %v3404_v45 = vpop.f32.mrf.mxu1 }
 0xaf1   :  { %3744 = vpow2.f32 %v2961_v27  ;;  %v1592_v27 = vadd.f32 %v4706_v56, %v4748_v41 }
 0xafc   :  { %v3743_v33 = vpop.eup %3742 }
 0xafd   :  { %v2174_v59 = vadd.f32 1.0, %v3743_v33 }
 0xafe   :  { %v3745_v25 = vpop.eup %3744 }
 0xaff   :  { %3746 = vrcp.f32 %v2174_v59  ;;  %v2181_v8 = vadd.f32 1.0, %v3745_v25 }
 0xb01   :  { %3748 = vrcp.f32 %v2181_v8 }
 0xb0c   :  { %v3747_v37 = vpop.eup %3746 }
 0xb0d   :  { %v2185_v57 = vmul.f32 %v3747_v37, %v2184_v49 }
 0xb0e   :  { %v3749_v26 = vpop.eup %3748 }
 0xb0f   :  { %v2186_v7 = vadd.f32 %v2185_v57, %v1657_v13  ;;  %v2188_v29 = vsub.f32 1.0, %v3749_v26  ;;  %v2190_v36 = vmul.f32 %v3749_v26, %v4809_v12  ;;  %v1660_v26 = vadd.f32 %v4714_v15, %v4759_v42 }
 0xb10   :  { %v1596_v15 = vadd.f32 %v4710_v11, %v4735_v50 }
 0xb11   :  { %3750 = vtanh.f32 %v2186_v7 }
 0xb1e   :  { %v3751_v16 = vpop.eup %3750 }
 0xb1f   :  { %v2189_v46 = vmul.f32 %v3751_v16, %v2188_v29 }
 0xb21   :  { %v4856_v38 = vadd.f32 %v2190_v36, %v2189_v46 }
 0xb23   :  { %v2195_v34 = vpack.c.bf16 %v4856_v38, %v4856_v38 }
 0xb25   :  { %2229 = vmatmul.mubr.bf16.vlgmr.msra.gmra.mxu0 %v2195_v34  ;;  %3422 = vmatmul.mubr.bf16.vlgmr.msra.gmra.mxu1 %v2195_v34 }
 0xb26   :  { %2304 = vmatpush1.bf16.msra.mxu0 %v4569_v54  ;;  %3426 = vmatpush3.bf16.msra.mxu1 %v4609_v14 }
 0xb27   :  { %2305 = vmatprep.subr.bf16.mxu0 %v4573_v51  ;;  %3427 = vmatprep.subr.bf16.mxu1 %v5094_v55 }
 0xb28   :  { %2335 = vmatprep.mubr.bf16.mxu0 %v5095_v63  ;;  %3441 = vmatprep.mubr.msk.bf16.mxu1 %vm3944_vm2, %v5094_v55 }
 0xb2a   :  { %2306 = vmatpush1.bf16.msra.mxu0 %v4575_v3  ;;  %3428 = vmatpush3.bf16.msra.mxu1 %v4619_v62 }
 0xb2b   :  { %2307 = vmatprep.subr.bf16.mxu0 %v4579_v0  ;;  %3429 = vmatprep.subr.bf16.mxu1 %v5094_v55 }
 0xb2e   :  { %2308 = vmatpush1.bf16.msra.mxu0 %v4581_v20  ;;  %3430 = vmatpush3.bf16.msra.mxu1 %v4623_v9 }
 0xb2f   :  { %2309 = vmatprep.subr.bf16.mxu0 %v4585_v4  ;;  %3431 = vmatprep.subr.bf16.mxu1 %v5094_v55 }
 0xb32   :  { %2310 = vmatpush1.bf16.msra.mxu0 %v4587_v58  ;;  %3432 = vmatpush3.bf16.msra.mxu1 %v4627_v21 }
 0xb33   :  { %2311 = vmatprep.subr.bf16.mxu0 %v4591_v60  ;;  %3433 = vmatprep.subr.bf16.mxu1 %v5094_v55 }
 0xb36   :  { %2312 = vmatpush1.bf16.msra.mxu0 %v4593_v2  ;;  %3434 = vmatpush3.bf16.msra.mxu1 %v4631_v10 }
 0xb37   :  { %2313 = vmatprep.subr.bf16.mxu0 %v4597_v17  ;;  %3435 = vmatprep.subr.bf16.mxu1 %v5094_v55 }
 0xb3a   :  { %2314 = vmatpush1.bf16.msra.mxu0 %v4599_v30  ;;  %3436 = vmatpush3.bf16.msra.mxu1 %v4635_v19 }
 0xb3b   :  { %2315 = vmatprep.subr.bf16.mxu0 %v4603_v22  ;;  %3437 = vmatprep.subr.bf16.mxu1 %v5094_v55 }
 0xb3e   :  { %2316 = vmatpush1.bf16.msra.mxu0 %v4605_v1  ;;  %3438 = vmatpush3.bf16.msra.mxu1 %v4639_v24 }
 0xb3f   :  { %2317 = vmatprep.subr.bf16.mxu0 %v4607_v23  ;;  %3439 = vmatprep.subr.bf16.mxu1 %v5094_v55 }
 0xb42   :  { %2318 = vmatpush1.bf16.msra.mxu0 %v4614_v35  ;;  %3440 = vmatpush3.bf16.msra.mxu1 %v4643_v6 }
 0xb43   :  { %2410 = vmatprep.subr.bf16.mxu0 %v4567_v5  ;;  %3445 = vmatprep.subr.bf16.mxu1 %v5094_v55 }
 0xbe5   :  { %v2230_v12 = vpop.f32.mrf.mxu0  ;;  %v2271_v48 = vpop.f32.mrf.mxu1 }
 0xbe6   :  { %v2277_v39 = vadd.f32 %v2230_v12, %v1590_v18  ;;  %v2291_v57 = vadd.f32 %v4754_v31, %v2271_v48 }
 0xbe7   :  { %v2232_v43 = vpop.f32.mrf.mxu0  ;;  %v3423_v53 = vpop.f32.mrf.mxu1 }
 0xbe8   :  { %v2962_v44 = vmul.f32 -1.442695, %v2277_v39  ;;  %v2284_v25 = vadd.f32 %v2232_v43, %v1592_v27 }
 0xbe9   :  { %v2234_v45 = vpop.f32.mrf.mxu0  ;;  %v2274_v40 = vpop.f32.mrf.mxu1 }
 0xbea   :  { %3752 = vpow2.f32 %v2962_v44  ;;  %v2963_v8 = vmul.f32 -1.442695, %v2284_v25 }
 0xbeb   :  { %v2235_v33 = vpop.f32.mrf.mxu0  ;;  %v3424_v59 = vpop.f32.mrf.mxu1 }
 0xbec   :  { %3754 = vpow2.f32 %v2963_v8  ;;  %v1598_v33 = vadd.f32 %v4712_v47, %v4748_v41 }
 0xbf7   :  { %v3753_v49 = vpop.eup %3752 }
 0xbf8   :  { %v2281_v37 = vadd.f32 1.0, %v3753_v49 }
 0xbf9   :  { %v3755_v61 = vpop.eup %3754 }
 0xbfa   :  { %3756 = vrcp.f32 %v2281_v37  ;;  %v2288_v13 = vadd.f32 1.0, %v3755_v61 }
 0xbfc   :  { %3758 = vrcp.f32 %v2288_v13 }
 0xc07   :  { %v3757_v7 = vpop.eup %3756 }
 0xc08   :  { %v2292_v29 = vmul.f32 %v3757_v7, %v2291_v57 }
 0xc09   :  { %v3759_v16 = vpop.eup %3758 }
 0xc0a   :  { %v2293_v56 = vadd.f32 %v2292_v29, %v1660_v26  ;;  %v2295_v46 = vsub.f32 1.0, %v3759_v16  ;;  %v2297_v18 = vmul.f32 %v3759_v16, %v4856_v38  ;;  %v1665_v26 = vadd.f32 %v4731_v52, %v4759_v42 }
 0xc0c   :  { %3760 = vtanh.f32 %v2293_v56 }
 0xc19   :  { %v3761_v36 = vpop.eup %3760 }
 0xc1a   :  { %v2296_v34 = vmul.f32 %v3761_v36, %v2295_v46 }
 0xc1c   :  { %v4903_v12 = vadd.f32 %v2297_v18, %v2296_v34 }
 0xc1e   :  { %v2302_v39 = vpack.c.bf16 %v4903_v12, %v4903_v12 }
 0xc20   :  { %2336 = vmatmul.mubr.bf16.vlgmr.msra.gmra.mxu0 %v2302_v39  ;;  %3442 = vmatmul.mubr.bf16.vlgmr.msra.gmra.mxu1 %v2302_v39 }
 0xc21   :  { %2411 = vmatpush1.bf16.msra.mxu0 %v4569_v54  ;;  %3446 = vmatpush3.bf16.msra.mxu1 %v4609_v14 }
 0xc22   :  { %2412 = vmatprep.subr.bf16.mxu0 %v4573_v51  ;;  %3447 = vmatprep.subr.bf16.mxu1 %v5094_v55 }
 0xc23   :  { %2442 = vmatprep.mubr.bf16.mxu0 %v5095_v63  ;;  %3461 = vmatprep.mubr.msk.bf16.mxu1 %vm3944_vm2, %v5094_v55 }
 0xc25   :  { %2413 = vmatpush1.bf16.msra.mxu0 %v4575_v3  ;;  %3448 = vmatpush3.bf16.msra.mxu1 %v4619_v62 }
 0xc26   :  { %2414 = vmatprep.subr.bf16.mxu0 %v4579_v0  ;;  %3449 = vmatprep.subr.bf16.mxu1 %v5094_v55 }
 0xc29   :  { %2415 = vmatpush1.bf16.msra.mxu0 %v4581_v20  ;;  %3450 = vmatpush3.bf16.msra.mxu1 %v4623_v9 }
 0xc2a   :  { %2416 = vmatprep.subr.bf16.mxu0 %v4585_v4  ;;  %3451 = vmatprep.subr.bf16.mxu1 %v5094_v55 }
 0xc2d   :  { %2417 = vmatpush1.bf16.msra.mxu0 %v4587_v58  ;;  %3452 = vmatpush3.bf16.msra.mxu1 %v4627_v21 }
 0xc2e   :  { %2418 = vmatprep.subr.bf16.mxu0 %v4591_v60  ;;  %3453 = vmatprep.subr.bf16.mxu1 %v5094_v55 }
 0xc31   :  { %2419 = vmatpush1.bf16.msra.mxu0 %v4593_v2  ;;  %3454 = vmatpush3.bf16.msra.mxu1 %v4631_v10 }
 0xc32   :  { %2420 = vmatprep.subr.bf16.mxu0 %v4597_v17  ;;  %3455 = vmatprep.subr.bf16.mxu1 %v5094_v55 }
 0xc35   :  { %2421 = vmatpush1.bf16.msra.mxu0 %v4599_v30  ;;  %3456 = vmatpush3.bf16.msra.mxu1 %v4635_v19 }
 0xc36   :  { %2422 = vmatprep.subr.bf16.mxu0 %v4603_v22  ;;  %3457 = vmatprep.subr.bf16.mxu1 %v5094_v55 }
 0xc39   :  { %2423 = vmatpush1.bf16.msra.mxu0 %v4605_v1  ;;  %3458 = vmatpush3.bf16.msra.mxu1 %v4639_v24 }
 0xc3a   :  { %2424 = vmatprep.subr.bf16.mxu0 %v4607_v23  ;;  %3459 = vmatprep.subr.bf16.mxu1 %v5094_v55 }
 0xc3d   :  { %2425 = vmatpush1.bf16.msra.mxu0 %v4614_v35  ;;  %3460 = vmatpush3.bf16.msra.mxu1 %v4643_v6 }
 0xc3e   :  { %2517 = vmatprep.subr.bf16.mxu0 %v4567_v5  ;;  %3465 = vmatprep.subr.bf16.mxu1 %v5094_v55 }
 0xce0   :  { %v2337_v38 = vpop.f32.mrf.mxu0  ;;  %v2378_v48 = vpop.f32.mrf.mxu1 }
 0xce1   :  { %v2384_v43 = vadd.f32 %v2337_v38, %v1596_v15  ;;  %v2398_v57 = vadd.f32 %v4754_v31, %v2378_v48 }
 0xce2   :  { %v2339_v53 = vpop.f32.mrf.mxu0  ;;  %v3443_v44 = vpop.f32.mrf.mxu1 }
 0xce3   :  { %v2964_v45 = vmul.f32 -1.442695, %v2384_v43  ;;  %v2391_v8 = vadd.f32 %v2339_v53, %v1598_v33  ;;  %v3827_v43 = vld [vmem:[#allocation11 + $0xa8] ss:$12 sps:$4 sm:$0xff]   ;;  %v3828_v53 = vld [vmem:[#allocation11 + $0xb0] ss:$12 sps:$4 sm:$0xff]  }
 0xce4   :  { %v2341_v40 = vpop.f32.mrf.mxu0  ;;  %v2381_v27 = vpop.f32.mrf.mxu1  ;;  %v3829_v44 = vld [vmem:[#allocation11 + $0x94] ss:$12 sps:$4 sm:$0xff]   ;;  %v3833_v33 = vld [vmem:[#allocation11 + $0x78] ss:$12 sps:$4 sm:$0xff]  }
 0xce5   :  { %3762 = vpow2.f32 %v2964_v45  ;;  %v2965_v49 = vmul.f32 -1.442695, %v2391_v8  ;;  %v3830_v45 = vld [vmem:[#allocation11 + $0x90] ss:$12 sps:$4 sm:$0xff]   ;;  %v3831_v40 = vld [vmem:[#allocation11 + $0x98] ss:$12 sps:$4 sm:$0xff]  }
 0xce6   :  { %v2342_v59 = vpop.f32.mrf.mxu0  ;;  %v3444_v25 = vpop.f32.mrf.mxu1  ;;  %v3832_v27 = vld [vmem:[#allocation11 + $0x7c] ss:$12 sps:$4 sm:$0xff]  }
 0xce7   :  { %3764 = vpow2.f32 %v2965_v49  ;;  %v3834_v59 = vld [vmem:[#allocation11 + $0x80] ss:$12 sps:$4 sm:$0xff]   ;;  %v3835_v25 = vld [vmem:[#allocation11 + $0x64] ss:$12 sps:$4 sm:$0xff]   ;;  %v3837_v8 = vld [vmem:[#allocation11 + $0x68] ss:$12 sps:$4 sm:$0xff]  }
 0xce8   :  { %v3838_v49 = vld [vmem:[#allocation11 + $0x4c] ss:$12 sps:$4 sm:$0xff]  }
 0xcf2   :  { %v3763_v37 = vpop.eup %3762 }
 0xcf3   :  { %v2388_v61 = vadd.f32 1.0, %v3763_v37  ;;  %v3839_v37 = vld [vmem:[#allocation11 + $0x48] ss:$12 sps:$4 sm:$0xff]  }
 0xcf4   :  { %v3765_v11 = vpop.eup %3764 }
 0xcf5   :  { %3766 = vrcp.f32 %v2388_v61  ;;  %v2395_v13 = vadd.f32 1.0, %v3765_v11  ;;  %v3840_v61 = vld [vmem:[#allocation11 + $0x50] ss:$12 sps:$4 sm:$0xff]   ;;  %v3841_v11 = vld [vmem:[#allocation11 + $0x34] ss:$12 sps:$4 sm:$0xff]  }
 0xcf7   :  { %3768 = vrcp.f32 %v2395_v13  ;;  %v3842_v13 = vld [vmem:[#allocation11 + $0x30] ss:$12 sps:$4 sm:$0xff]  }
 0xd02   :  { %v3767_v7 = vpop.eup %3766 }
 0xd03   :  { %v2399_v29 = vmul.f32 %v3767_v7, %v2398_v57  ;;  %v3843_v57 = vld [vmem:[#allocation11 + $0x38] ss:$12 sps:$4 sm:$0xff]   ;;  %v3844_v7 = vld [vmem:[#allocation11 + $0x1c] ss:$12 sps:$4 sm:$0xff]  }
 0xd04   :  { %v3769_v56 = vpop.eup %3768 }
 0xd05   :  { %v2400_v47 = vadd.f32 %v2399_v29, %v1665_v26  ;;  %v2402_v16 = vsub.f32 1.0, %v3769_v56  ;;  %v2404_v34 = vmul.f32 %v3769_v56, %v4903_v12  ;;  %v3845_v26 = vld [vmem:[#allocation11 + $0x18] ss:$12 sps:$4 sm:$0xff]   ;;  %v3846_v29 = vld [vmem:[#allocation11 + $0x20] ss:$12 sps:$4 sm:$0xff]  }
 0xd06   :  { %v3848_v56 = vld [vmem:[#allocation11] ss:$12 sps:$4 sm:$0xff]  }
 0xd07   :  { %3770 = vtanh.f32 %v2400_v47  ;;  %v3847_v47 = vld [vmem:[#allocation11 + $0x4] ss:$12 sps:$4 sm:$0xff]  }
 0xd14   :  { %v3771_v46 = vpop.eup %3770 }
 0xd15   :  { %v2403_v36 = vmul.f32 %v3771_v46, %v2402_v16  ;;  %v3849_v16 = vld [vmem:[#allocation11 + $0x8] ss:$12 sps:$4 sm:$0xff]   ;;  %v5113_v46 = vld [vmem:[#allocation19_spill] sm:$0xff] }
 0xd17   :  { %v4950_v18 = vadd.f32 %v2404_v34, %v2403_v36  ;;  %v1606_v36 = vadd.f32 %v5113_v46, %v4735_v50 }
 0xd19   :  { %v2409_v39 = vpack.c.bf16 %v4950_v18, %v4950_v18 }
 0xd1b   :  { %2443 = vmatmul.mubr.bf16.vlgmr.msra.gmra.mxu0 %v2409_v39  ;;  %3462 = vmatmul.mubr.bf16.vlgmr.msra.gmra.mxu1 %v2409_v39 }
 0xd1c   :  { %2518 = vmatpush1.bf16.msra.mxu0 %v4569_v54  ;;  %3466 = vmatpush3.bf16.msra.mxu1 %v4609_v14  ;;  %v1600_v54 = vadd.f32 %v4716_v28, %v4735_v50 }
 0xd1d   :  { %2519 = vmatprep.subr.bf16.mxu0 %v4573_v51  ;;  %3467 = vmatprep.subr.bf16.mxu1 %v5094_v55 }
 0xd1e   :  { %2549 = vmatprep.mubr.bf16.mxu0 %v5095_v63  ;;  %3481 = vmatprep.mubr.msk.bf16.mxu1 %vm3944_vm2, %v5094_v55 }
 0xd20   :  { %2520 = vmatpush1.bf16.msra.mxu0 %v4575_v3  ;;  %3468 = vmatpush3.bf16.msra.mxu1 %v4619_v62 }
 0xd21   :  { %2521 = vmatprep.subr.bf16.mxu0 %v4579_v0  ;;  %3469 = vmatprep.subr.bf16.mxu1 %v5094_v55 }
 0xd24   :  { %2522 = vmatpush1.bf16.msra.mxu0 %v4581_v20  ;;  %3470 = vmatpush3.bf16.msra.mxu1 %v4623_v9 }
 0xd25   :  { %2523 = vmatprep.subr.bf16.mxu0 %v4585_v4  ;;  %3471 = vmatprep.subr.bf16.mxu1 %v5094_v55 }
 0xd28   :  { %2524 = vmatpush1.bf16.msra.mxu0 %v4587_v58  ;;  %3472 = vmatpush3.bf16.msra.mxu1 %v4627_v21 }
 0xd29   :  { %2525 = vmatprep.subr.bf16.mxu0 %v4591_v60  ;;  %3473 = vmatprep.subr.bf16.mxu1 %v5094_v55 }
 0xd2c   :  { %2526 = vmatpush1.bf16.msra.mxu0 %v4593_v2  ;;  %3474 = vmatpush3.bf16.msra.mxu1 %v4631_v10  ;;  %v5112_v10 = vld [vmem:[#allocation22_spill] sm:$0xff] }
 0xd2d   :  { %2527 = vmatprep.subr.bf16.mxu0 %v4597_v17  ;;  %3475 = vmatprep.subr.bf16.mxu1 %v5094_v55  ;;  %v1602_v17 = vadd.f32 %v4720_v32, %v4748_v41 }
 0xd30   :  { %2528 = vmatpush1.bf16.msra.mxu0 %v4599_v30  ;;  %3476 = vmatpush3.bf16.msra.mxu1 %v4635_v19  ;;  %v1668_v19 = vadd.f32 %v5112_v10, %v4759_v42 }
 0xd31   :  { %2529 = vmatprep.subr.bf16.mxu0 %v4603_v22  ;;  %3477 = vmatprep.subr.bf16.mxu1 %v5094_v55 }
 0xd34   :  { %2530 = vmatpush1.bf16.msra.mxu0 %v4605_v1  ;;  %3478 = vmatpush3.bf16.msra.mxu1 %v4639_v24 }
 0xd35   :  { %2531 = vmatprep.subr.bf16.mxu0 %v4607_v23  ;;  %3479 = vmatprep.subr.bf16.mxu1 %v5094_v55 }
 0xd38   :  { %2532 = vmatpush1.bf16.msra.mxu0 %v4614_v35  ;;  %3480 = vmatpush3.bf16.msra.mxu1 %v4643_v6 }
 0xd39   :  { %2624 = vmatprep.subr.bf16.mxu0 %v4567_v5  ;;  %3485 = vmatprep.subr.bf16.mxu1 %v5094_v55 }
 0xddb   :  { %v2444_v51 = vpop.f32.mrf.mxu0  ;;  %v2485_v3 = vpop.f32.mrf.mxu1 }
 0xddc   :  { %v2491_v0 = vadd.f32 %v2444_v51, %v1600_v54  ;;  %v2505_v9 = vadd.f32 %v4754_v31, %v2485_v3 }
 0xddd   :  { %v2446_v20 = vpop.f32.mrf.mxu0  ;;  %v3463_v4 = vpop.f32.mrf.mxu1 }
 0xdde   :  { %v2966_v58 = vmul.f32 -1.442695, %v2491_v0  ;;  %v2498_v5 = vadd.f32 %v2446_v20, %v1602_v17  ;;  %v5114_v4 = vld [vmem:[#allocation20_spill] sm:$0xff] }
 0xddf   :  { %v2448_v60 = vpop.f32.mrf.mxu0  ;;  %v2488_v2 = vpop.f32.mrf.mxu1 }
 0xde0   :  { %3772 = vpow2.f32 %v2966_v58  ;;  %v2967_v1 = vmul.f32 -1.442695, %v2498_v5  ;;  %v1608_v58 = vadd.f32 %v5114_v4, %v4748_v41 }
 0xde1   :  { %v2449_v30 = vpop.f32.mrf.mxu0  ;;  %v3464_v22 = vpop.f32.mrf.mxu1 }
 0xde2   :  { %3774 = vpow2.f32 %v2967_v1 }
 0xded   :  { %v3773_v23 = vpop.eup %3772 }
 0xdee   :  { %v2495_v14 = vadd.f32 1.0, %v3773_v23 }
 0xdef   :  { %v3775_v35 = vpop.eup %3774 }
 0xdf0   :  { %3776 = vrcp.f32 %v2495_v14  ;;  %v2502_v62 = vadd.f32 1.0, %v3775_v35 }
 0xdf2   :  { %3778 = vrcp.f32 %v2502_v62  ;;  %v5115_v62 = vld [vmem:[#allocation17_spill] sm:$0xff] }
 0xdfd   :  { %v3777_v21 = vpop.eup %3776 }
 0xdfe   :  { %v2506_v24 = vmul.f32 %v3777_v21, %v2505_v9  ;;  %v1673_v9 = vadd.f32 %v5115_v62, %v4759_v42 }
 0xdff   :  { %v3779_v28 = vpop.eup %3778 }
 0xe00   :  { %v2507_v6 = vadd.f32 %v2506_v24, %v1668_v19  ;;  %v2509_v32 = vsub.f32 1.0, %v3779_v28  ;;  %v2511_v15 = vmul.f32 %v3779_v28, %v4950_v18 }
 0xe02   :  { %3780 = vtanh.f32 %v2507_v6 }
 0xe0f   :  { %v3781_v52 = vpop.eup %3780 }
 0xe10   :  { %v2510_v12 = vmul.f32 %v3781_v52, %v2509_v32 }
 0xe12   :  { %v4997_v38 = vadd.f32 %v2511_v15, %v2510_v12  ;;  %v3634_v15 = vld [vmem:[%s5075_s9 + $0x38] sm:$0xff]  }
 0xe14   :  { %v2516_v48 = vpack.c.bf16 %v4997_v38, %v4997_v38 }
 0xe16   :  { %2550 = vmatmul.mubr.bf16.vlgmr.msra.gmra.mxu0 %v2516_v48  ;;  %3482 = vmatmul.mubr.bf16.vlgmr.msra.gmra.mxu1 %v2516_v48  ;;  %v3635_v48 = vld [vmem:[%s5075_s9 + $0x30] sm:$0xff]  }
 0xe17   :  { %2625 = vmatpush1.bf16.msra.mxu0 %v3827_v43  ;;  %3486 = vmatpush3.bf16.msra.mxu1 %v3828_v53  ;;  %v3637_v43 = vld [vmem:[%s5075_s9 + $0x20] sm:$0xff]   ;;  %v3638_v53 = vld [vmem:[%s5075_s9 + $0x18] sm:$0xff]  }
 0xe18   :  { %2626 = vmatprep.subr.bf16.mxu0 %v3829_v44  ;;  %3487 = vmatprep.subr.bf16.mxu1 %v5094_v55  ;;  %v3639_v44 = vld [vmem:[%s5075_s9 + $0x10] sm:$0xff]  }
 0xe19   :  { %2656 = vmatprep.mubr.bf16.mxu0 %v5095_v63  ;;  %3501 = vmatprep.mubr.msk.bf16.mxu1 %vm3944_vm2, %v5094_v55  ;;  %v3836_v63 = vld [vmem:[#allocation11 + $0x60] ss:$12 sps:$4 sm:$0xff]  }
 0xe1b   :  { %2627 = vmatpush1.bf16.msra.mxu0 %v3830_v45  ;;  %3488 = vmatpush3.bf16.msra.mxu1 %v3831_v40  ;;  %v3640_v45 = vld [vmem:[%s5075_s9 + $0x8] sm:$0xff]   ;;  %v3641_v40 = vld [vmem:[%s5075_s9] sm:$0xff]  }
 0xe1c   :  { %2628 = vmatprep.subr.bf16.mxu0 %v3832_v27  ;;  %3489 = vmatprep.subr.bf16.mxu1 %v5094_v55  ;;  %v5116_v27 = vld [vmem:[#allocation18_spill] sm:$0xff] }
 0xe1f   :  { %2629 = vmatpush1.bf16.msra.mxu0 %v3833_v33  ;;  %3490 = vmatpush3.bf16.msra.mxu1 %v3834_v59  ;;  %v1610_v33 = vadd.f32 %v5116_v27, %v4735_v50 }
 0xe20   :  { %2630 = vmatprep.subr.bf16.mxu0 %v3835_v25  ;;  %3491 = vmatprep.subr.bf16.mxu1 %v5094_v55 }
 0xe23   :  { %2631 = vmatpush1.bf16.msra.mxu0 %v3836_v63  ;;  %3492 = vmatpush3.bf16.msra.mxu1 %v3837_v8 }
 0xe24   :  { %2632 = vmatprep.subr.bf16.mxu0 %v3838_v49  ;;  %3493 = vmatprep.subr.bf16.mxu1 %v5094_v55 }
 0xe27   :  { %2633 = vmatpush1.bf16.msra.mxu0 %v3839_v37  ;;  %3494 = vmatpush3.bf16.msra.mxu1 %v3840_v61 }
 0xe28   :  { %2634 = vmatprep.subr.bf16.mxu0 %v3841_v11  ;;  %3495 = vmatprep.subr.bf16.mxu1 %v5094_v55 }
 0xe2b   :  { %2635 = vmatpush1.bf16.msra.mxu0 %v3842_v13  ;;  %3496 = vmatpush3.bf16.msra.mxu1 %v3843_v57  ;;  %v5117_v13 = vld [vmem:[#allocation21_spill] sm:$0xff] }
 0xe2c   :  { %2636 = vmatprep.subr.bf16.mxu0 %v3844_v7  ;;  %3497 = vmatprep.subr.bf16.mxu1 %v5094_v55  ;;  %v1612_v57 = vadd.f32 %v5117_v13, %v4748_v41 }
 0xe2f   :  { %2637 = vmatpush1.bf16.msra.mxu0 %v3845_v26  ;;  %3498 = vmatpush3.bf16.msra.mxu1 %v3846_v29 }
 0xe30   :  { %2638 = vmatprep.subr.bf16.mxu0 %v3847_v47  ;;  %3499 = vmatprep.subr.bf16.mxu1 %v5094_v55 }
 0xe33   :  { %2639 = vmatpush1.bf16.msra.mxu0 %v3848_v56  ;;  %3500 = vmatpush3.bf16.msra.mxu1 %v3849_v16 }
 0xe34   :  { %3505 = vmatprep.subr.bf16.mxu0 %v5094_v55 }
 0xed6   :  { %v2551_v34 = vpop.f32.mrf.mxu0  ;;  %v2592_v18 = vpop.f32.mrf.mxu1 }
 0xed7   :  { %v2598_v39 = vadd.f32 %v2551_v34, %v1606_v36  ;;  %v2612_v14 = vadd.f32 %v4754_v31, %v2592_v18  ;;  %v5118_v34 = vld [vmem:[#allocation16_spill] sm:$0xff] }
 0xed8   :  { %v2553_v54 = vpop.f32.mrf.mxu0  ;;  %v3483_v51 = vpop.f32.mrf.mxu1  ;;  %v1676_v18 = vadd.f32 %v5118_v34, %v4759_v42 }
 0xed9   :  { %v2968_v3 = vmul.f32 -1.442695, %v2598_v39  ;;  %v2605_v17 = vadd.f32 %v2553_v54, %v1608_v58 }
 0xeda   :  { %v2555_v0 = vpop.f32.mrf.mxu0  ;;  %v2595_v20 = vpop.f32.mrf.mxu1 }
 0xedb   :  { %3782 = vpow2.f32 %v2968_v3  ;;  %v2969_v30 = vmul.f32 -1.442695, %v2605_v17 }
 0xedc   :  { %v2556_v60 = vpop.f32.mrf.mxu0  ;;  %v3484_v2 = vpop.f32.mrf.mxu1 }
 0xedd   :  { %3784 = vpow2.f32 %v2969_v30 }
 0xee8   :  { %v3783_v22 = vpop.eup %3782 }
 0xee9   :  { %v2602_v5 = vadd.f32 1.0, %v3783_v22 }
 0xeea   :  { %v3785_v1 = vpop.eup %3784 }
 0xeeb   :  { %3786 = vrcp.f32 %v2602_v5  ;;  %v2609_v23 = vadd.f32 1.0, %v3785_v1 }
 0xeed   :  { %3788 = vrcp.f32 %v2609_v23 }
 0xef8   :  { %v3787_v35 = vpop.eup %3786 }
 0xef9   :  { %v2613_v21 = vmul.f32 %v3787_v35, %v2612_v14 }
 0xefa   :  { %v3789_v19 = vpop.eup %3788 }
 0xefb   :  { %v2614_v10 = vadd.f32 %v2613_v21, %v1673_v9  ;;  %v2616_v24 = vsub.f32 1.0, %v3789_v19  ;;  %v2618_v32 = vmul.f32 %v3789_v19, %v4997_v38  ;;  %v3636_v38 = vld [vmem:[%s5075_s9 + $0x28] sm:$0xff]  }
 0xefd   :  { %3790 = vtanh.f32 %v2614_v10 }
 0xf0a   :  { %v3791_v6 = vpop.eup %3790 }
 0xf0b   :  { %v2617_v28 = vmul.f32 %v3791_v6, %v2616_v24 }
 0xf0d   :  { %v2619_v52 = vadd.f32 %v2618_v32, %v2617_v28 }
 0xf0f   :  { %v2623_v12 = vpack.c.bf16 %v2619_v52, %v2619_v52 }
 0xf11   :  { %2657 = vmatmul.mubr.bf16.vlgmr.msra.gmra.mxu0 %v2623_v12  ;;  %3502 = vmatmul.mubr.bf16.vlgmr.msra.gmra.mxu1 %v2623_v12 }
 0xf12   :  { %3521 = vmatprep.mubr.msk.bf16.mxu0 %vm3944_vm2, %v5094_v55  ;;  %3506 = vmatpush3.bf16.msra.mxu0 %v3634_v15 }
 0xf13   :  { %3507 = vmatprep.subr.bf16.mxu0 %v5094_v55 }
 0xf16   :  { %3508 = vmatpush3.bf16.msra.mxu0 %v3635_v48 }
 0xf17   :  { %3509 = vmatprep.subr.bf16.mxu0 %v5094_v55 }
 0xf1a   :  { %3510 = vmatpush3.bf16.msra.mxu0 %v3636_v38 }
 0xf1b   :  { %3511 = vmatprep.subr.bf16.mxu0 %v5094_v55 }
 0xf1e   :  { %3512 = vmatpush3.bf16.msra.mxu0 %v3637_v43 }
 0xf1f   :  { %3513 = vmatprep.subr.bf16.mxu0 %v5094_v55 }
 0xf22   :  { %3514 = vmatpush3.bf16.msra.mxu0 %v3638_v53 }
 0xf23   :  { %3515 = vmatprep.subr.bf16.mxu0 %v5094_v55 }
 0xf26   :  { %3516 = vmatpush3.bf16.msra.mxu0 %v3639_v44 }
 0xf27   :  { %3517 = vmatprep.subr.bf16.mxu0 %v5094_v55 }
 0xf2a   :  { %3518 = vmatpush3.bf16.msra.mxu0 %v3640_v45 }
 0xf2b   :  { %3519 = vmatprep.subr.bf16.mxu0 %v5094_v55 }
 0xf2e   :  { %3520 = vmatpush3.bf16.msra.mxu0 %v3641_v40 }
 0xfd1   :  { %v2658_v59 = vpop.f32.mrf.mxu0  ;;  %v2699_v25 = vpop.f32.mrf.mxu1 }
 0xfd2   :  { %v2705_v63 = vadd.f32 %v2658_v59, %v1610_v33  ;;  %v2719_v46 = vadd.f32 %v4754_v31, %v2699_v25  ;;  %v2972_v31 = vld [vmem:[%s5076_s10] ss:$0 sm:$0xff] }
 0xfd3   :  { %v2660_v8 = vpop.f32.mrf.mxu0  ;;  %v3503_v49 = vpop.f32.mrf.mxu1 }
 0xfd4   :  { %v2970_v37 = vmul.f32 -1.442695, %v2705_v63  ;;  %v2712_v29 = vadd.f32 %v2660_v8, %v1612_v57 }
 0xfd5   :  { %v2662_v61 = vpop.f32.mrf.mxu0  ;;  %v2702_v11 = vpop.f32.mrf.mxu1 }
 0xfd6   :  { %3792 = vpow2.f32 %v2970_v37  ;;  %v2971_v55 = vmul.f32 -1.442695, %v2712_v29 }
 0xfd7   :  { %v2663_v7 = vpop.f32.mrf.mxu0  ;;  %v3504_v26 = vpop.f32.mrf.mxu1 }
 0xfd8   :  { %3794 = vpow2.f32 %v2971_v55 }
 0xfe3   :  { %v3793_v47 = vpop.eup %3792 }
 0xfe4   :  { %v2709_v56 = vadd.f32 1.0, %v3793_v47 }
 0xfe5   :  { %v3795_v50 = vpop.eup %3794 }
 0xfe6   :  { %3796 = vrcp.f32 %v2709_v56  ;;  %v2716_v16 = vadd.f32 1.0, %v3795_v50 }
 0xfe8   :  { %3798 = vrcp.f32 %v2716_v16 }
 0xff3   :  { %v3797_v36 = vpop.eup %3796 }
 0xff4   :  { %v2720_v39 = vmul.f32 %v3797_v36, %v2719_v46 }
 0xff5   :  { %v3799_v54 = vpop.eup %3798 }
 0xff6   :  { %v2721_v41 = vadd.f32 %v2720_v39, %v1676_v18  ;;  %v2723_v51 = vsub.f32 1.0, %v3799_v54  ;;  %v2725_v20 = vmul.f32 %v3799_v54, %v2619_v52 }
 0xff8   :  { %3800 = vtanh.f32 %v2721_v41 }
0x1005   :  { %v3801_v3 = vpop.eup %3800 }
0x1006   :  { %v2724_v0 = vmul.f32 %v3801_v3, %v2723_v51 }
0x1008   :  { %v2726_v4 = vadd.f32 %v2725_v20, %v2724_v0 }
0x100a   :  { %v2728_v58 = vpack.c.bf16 %v2726_v4, %v2726_v4 }
0x100c   :  { %3522 = vmatmul.mubr.bf16.vlgmr.msra.gmra.mxu0 %v2728_v58 }
0x10cc   :  { %v2834_v60 = vpop.f32.mrf.mxu0 }
0x10cd   :  { %v2835_v42 = vadd.f32 %v2972_v31, %v2834_v60 }
0x10ce   :  { %v3523_v2 = vpop.f32.mrf.mxu0 }
0x10cf   :  { %2840 = vst [vmem:[#allocation12] sm:$0xff] %v2835_v42 }
0x10d0   :  { %v2837_v17 = vpop.f32.mrf.mxu0 }
0x10d1   :  { %3921 = shalt.err (!%p3918_p5)
}
0x10d2   :  { %2850 = dma.vmem_to_hbm [thread:$0]  %s2848_s0, 128, %s5077_s11, [#allocation8]   ;;  %v3524_v30 = vpop.f32.mrf.mxu0 }
0x10d3   :  { %3934 = dma.done.wait [#allocation8], 128  }
0x10d4   :  { %3935 = vsyncadd [#allocation8], 4294967168 }
0x10d5   :  { %2854 = vsyncpa [#allocation7], 1 }
0x10d6   :  { %2855 = vsyncpa [#allocation10], 1 }
0x10d7   :  { %2856 = vsyncpa [#allocation8], 1 }

</bundles_post_ra>
